<compile_context>
chip_gen: v6e
topology: v6e:2x2x1
jax: 0.10.0
libtpu: 0.0.40
codegen_flags: <defaults>
</compile_context>

<pallas_src>
import functools

import jax
import jax.numpy as jnp
import numpy as np
from jax import lax
from jax.experimental import pallas as pl
from jax.experimental.pallas import tpu as pltpu


def _relu(v):
    return jnp.maximum(v, 0.0)


def _round_up(v, m):
    return ((v + m - 1) // m) * m


def _pad2(a, rows, cols, dtype=None):
    out = jnp.pad(a, ((0, rows - a.shape[0]), (0, cols - a.shape[1])))
    return out.astype(dtype) if dtype is not None else out


# ----------------------------------------------------------------------------
# Fused Pallas kernel: donor encoder + acceptor encoder + predictor head
# ----------------------------------------------------------------------------
def dmpnn_fused_kernel(
        # donor graph operands
        msgd_ref, xd_ref, md_ref, ttd_ref, btd_ref, invd_ref,
        # acceptor graph operands
        msga_ref, xa_ref, ma_ref, tta_ref, bta_ref, inva_ref,
        # donor encoder weights
        dw1_ref, dw2_ref, dw3x_ref, dw3v_ref, db3_ref,
        # acceptor encoder weights
        aw1_ref, aw2_ref, aw3x_ref, aw3v_ref, ab3_ref,
        # predictor head weights
        wp1d_ref, wp1a_ref, bp1_ref, wp2_ref, bp2_ref,
        # output
        out_ref, *, depth):
    f32 = jnp.float32
    bf16 = jnp.bfloat16

    def encode(msg0, x, M, Tt, Bt, inv_cnt, w1, w2, w3x, w3v, b3):
        # h0 = relu(W1 @ cat([x[src], edge_attr]))  (concat done in wrapper)
        h0 = _relu(jnp.dot(msg0, w1, preferred_element_type=f32))        # [E,H]

        # (depth-1) rounds of directed message passing with the fused operator
        #   m = (S @ Tt - R) @ h == scatter_sum(h, dst)[src] - h[rev]
        def body(_, h):
            m = jnp.dot(M, h.astype(bf16), preferred_element_type=f32)   # [E,H]
            return _relu(h0 + jnp.dot(m.astype(bf16), w2,
                                      preferred_element_type=f32))

        h = lax.fori_loop(0, depth - 1, body, h0, unroll=True)

        # aggregate_at_nodes + relu(W3 @ cat([x, v_msg]) + b3)
        v_msg = jnp.dot(Tt, h.astype(bf16), preferred_element_type=f32)  # [N,H]
        node_attr = _relu(jnp.dot(x, w3x, preferred_element_type=f32)
                          + jnp.dot(v_msg.astype(bf16), w3v,
                                    preferred_element_type=f32)
                          + b3)                                          # [N,H]
        # global_mean_pool: exact {0,1} bf16 sum-pool on MXU, then exact f32
        # 1/count scale on the VPU.
        pooled = jnp.dot(Bt, node_attr.astype(bf16),
                         preferred_element_type=f32)                     # [G,H]
        return pooled * inv_cnt

    x_d = encode(msgd_ref[...], xd_ref[...], md_ref[...], ttd_ref[...],
                 btd_ref[...], invd_ref[...],
                 dw1_ref[...], dw2_ref[...], dw3x_ref[...], dw3v_ref[...],
                 db3_ref[...])
    x_a = encode(msga_ref[...], xa_ref[...], ma_ref[...], tta_ref[...],
                 bta_ref[...], inva_ref[...],
                 aw1_ref[...], aw2_ref[...], aw3x_ref[...], aw3v_ref[...],
                 ab3_ref[...])

    # predictor head: Linear(2H, H) folded into [Wp1d; Wp1a], ReLU, Linear(H,O)
    hcat = _relu(jnp.dot(x_d.astype(bf16), wp1d_ref[...],
                         preferred_element_type=f32)
                 + jnp.dot(x_a.astype(bf16), wp1a_ref[...],
                           preferred_element_type=f32)
                 + bp1_ref[...])
    out_ref[...] = (jnp.dot(hcat.astype(bf16), wp2_ref[...],
                            preferred_element_type=f32)
                    + bp2_ref[...])


# ----------------------------------------------------------------------------
# Wrapper: graph preprocessing (dense operators, padding, dtype policy) + call
# ----------------------------------------------------------------------------
def prepare_graph(x, edge_index, revedge_index, edge_attr, batch, num_graphs,
                  h_pad):
    """Builds padded dense graph operators for one batched graph."""
    N, Fn = x.shape
    E, Fe = edge_attr.shape
    src, dst = edge_index[0], edge_index[1]

    Np, Ep = _round_up(N, 128), _round_up(E, 128)
    Fnp = _round_up(Fn, 128)
    Fcp = _round_up(Fn + Fe, 128)
    Gp = _round_up(num_graphs, 8)

    S = jax.nn.one_hot(src, N, dtype=jnp.float32)             # [E,N] gather@src
    Tt = jax.nn.one_hot(dst, N, dtype=jnp.float32).T          # [N,E] scatter@dst
    R = jax.nn.one_hot(revedge_index, E, dtype=jnp.float32)   # [E,E] reverse perm
    M = S @ Tt - R                                            # fused MP operator
    B = jax.nn.one_hot(batch, num_graphs, dtype=jnp.float32)  # [N,G]
    counts = B.sum(axis=0)                                    # nodes per graph
    inv = jnp.where(counts > 0, 1.0 / counts, 0.0)
    inv_cnt = jnp.broadcast_to(inv[:, None], (num_graphs, h_pad))

    # init_msg = cat([x[src], edge_attr])  (the torch.cat, done once here)
    msg0 = jnp.concatenate([x[src], edge_attr], axis=1)       # [E, Fn+Fe]

    bf16 = jnp.bfloat16
    return {
        "msg0": _pad2(msg0, Ep, Fcp, bf16),
        "x": _pad2(x, Np, Fnp, bf16),
        "M": _pad2(M, Ep, Ep, bf16),            # entries {-1,0,1}: exact bf16
        "Tt": _pad2(Tt, Np, Ep, bf16),          # entries {0,1}:    exact bf16
        "Bt": _pad2(B.T, Gp, Np, bf16),         # entries {0,1}:    exact bf16
        "inv": _pad2(inv_cnt, Gp, h_pad, jnp.float32),   # exact f32 1/count
    }


def pad_encoder_params(p, fn_pad, fc_pad, h_pad):
    bf16 = jnp.bfloat16
    w1 = jnp.concatenate([p["W1x"], p["W1e"]], axis=0)   # matches msg0 concat
    return {
        "W1": _pad2(w1, fc_pad, h_pad, bf16),
        "W2": _pad2(p["W2"], h_pad, h_pad, bf16),
        "W3x": _pad2(p["W3x"], fn_pad, h_pad, bf16),
        "W3v": _pad2(p["W3v"], h_pad, h_pad, bf16),
        "b3": _pad2(p["b3"], 1, h_pad, jnp.float32),
    }


def pad_head_params(p, h_pad, out_pad):
    bf16 = jnp.bfloat16
    return {
        "Wp1d": _pad2(p["Wp1d"], h_pad, h_pad, bf16),
        "Wp1a": _pad2(p["Wp1a"], h_pad, h_pad, bf16),
        "bp1": _pad2(p["bp1"], 1, h_pad, jnp.float32),
        "Wp2": _pad2(p["Wp2"], h_pad, out_pad, bf16),
        "bp2": _pad2(p["bp2"], 1, out_pad, jnp.float32),
    }


def dmpnn_predictor(donor, acceptor, padded_params, depth, num_graphs, out_dim):
    dp, ap, hp = (padded_params["donor"], padded_params["acceptor"],
                  padded_params["head"])
    args = (
        donor["msg0"], donor["x"], donor["M"], donor["Tt"], donor["Bt"],
        donor["inv"],
        acceptor["msg0"], acceptor["x"], acceptor["M"], acceptor["Tt"],
        acceptor["Bt"], acceptor["inv"],
        dp["W1"], dp["W2"], dp["W3x"], dp["W3v"], dp["b3"],
        ap["W1"], ap["W2"], ap["W3x"], ap["W3v"], ap["b3"],
        hp["Wp1d"], hp["Wp1a"], hp["bp1"], hp["Wp2"], hp["bp2"],
    )
    g_pad = donor["Bt"].shape[0]
    out_pad = hp["Wp2"].shape[1]

    out = pl.pallas_call(
        functools.partial(dmpnn_fused_kernel, depth=depth),
        out_shape=jax.ShapeDtypeStruct((g_pad, out_pad), jnp.float32),
        grid=(1,),
        in_specs=[pl.BlockSpec(a.shape, lambda i: (0, 0)) for a in args],
        out_specs=pl.BlockSpec((g_pad, out_pad), lambda i: (0, 0)),
        compiler_params=pltpu.CompilerParams(
            dimension_semantics=("arbitrary",),
            # raise the scoped VMEM limit so medium graphs keep the monolithic
            # single-block design on v5e/v6e; toy sizes use a tiny fraction.
            vmem_limit_bytes=64 * 1024 * 1024),
    )(*args)
    return out[:num_graphs, :out_dim]


# ----------------------------------------------------------------------------
# Pure-JAX references (real scatter/gather) for correctness checking
# ----------------------------------------------------------------------------
def _mm(a, b, mxu_dtype):
    return jnp.dot(a.astype(mxu_dtype), b.astype(mxu_dtype),
                   preferred_element_type=jnp.float32)


def encoder_ref(x, edge_index, revedge_index, edge_attr, batch, num_graphs,
                p, depth, mxu_dtype):
    src, dst = edge_index[0], edge_index[1]
    n = x.shape[0]
    init_msg = jnp.concatenate([x[src], edge_attr], axis=1)
    w1 = jnp.concatenate([p["W1x"], p["W1e"]], axis=0)
    h0 = _relu(_mm(init_msg, w1, mxu_dtype))
    h = h0
    for _ in range(depth - 1):
        hq = h.astype(mxu_dtype).astype(jnp.float32)
        m_node = jax.ops.segment_sum(hq, dst, num_segments=n)
        m = m_node[src] - hq[revedge_index]
        h = _relu(h0 + _mm(m, p["W2"], mxu_dtype))
    hq = h.astype(mxu_dtype).astype(jnp.float32)
    v_msg = jax.ops.segment_sum(hq, dst, num_segments=n)
    node_attr = _relu(_mm(x, p["W3x"], mxu_dtype)
                      + _mm(v_msg, p["W3v"], mxu_dtype) + p["b3"])
    counts = jax.ops.segment_sum(jnp.ones((n,), jnp.float32), batch,
                                 num_segments=num_graphs)
    na_q = node_attr.astype(mxu_dtype).astype(jnp.float32)
    pooled = jax.ops.segment_sum(na_q, batch, num_segments=num_graphs)
    return pooled / counts[:, None]


def predictor_ref(donor_raw, acceptor_raw, params, depth, num_graphs,
                  mxu_dtype):
    xd = encoder_ref(*donor_raw, num_graphs, params["donor"], depth, mxu_dtype)
    xa = encoder_ref(*acceptor_raw, num_graphs, params["acceptor"], depth,
                     mxu_dtype)
    hp = params["head"]
    h = _relu(_mm(xd, hp["Wp1d"], mxu_dtype) + _mm(xa, hp["Wp1a"], mxu_dtype)
              + hp["bp1"])
    return _mm(h, hp["Wp2"], mxu_dtype) + hp["bp2"]


# ----------------------------------------------------------------------------
# Graph / parameter construction (deterministic, in-script)
# ----------------------------------------------------------------------------
def make_cycle_batch(nodes_per_graph, num_graphs):
    src, dst, rev = [], [], []
    offset = 0
    for _ in range(num_graphs):
        n = nodes_per_graph
        for i in range(n):
            a = offset + i
            b = offset + (i + 1) % n
            e0 = len(src)
            src += [a, b]
            dst += [b, a]
            rev += [e0 + 1, e0]
        offset += n
    edge_index = jnp.array([src, dst], dtype=jnp.int32)
    revedge_index = jnp.array(rev, dtype=jnp.int32)
    batch = jnp.repeat(jnp.arange(num_graphs, dtype=jnp.int32),
                       nodes_per_graph)
    return edge_index, revedge_index, batch, offset


def init_encoder_params(key, node_fdim, edge_fdim, hidden):
    k1, k2, k3, k4, k5 = jax.random.split(key, 5)
    s = 0.1
    return {
        "W1x": s * jax.random.normal(k1, (node_fdim, hidden), jnp.float32),
        "W1e": s * jax.random.normal(k2, (edge_fdim, hidden), jnp.float32),
        "W2": s * jax.random.normal(k3, (hidden, hidden), jnp.float32),
        "W3x": s * jax.random.normal(k4, (node_fdim, hidden), jnp.float32),
        "W3v": s * jax.random.normal(k5, (hidden, hidden), jnp.float32),
        "b3": 0.01 * jnp.ones((1, hidden), jnp.float32),
    }


def init_head_params(key, hidden, out_dim):
    k1, k2, k3 = jax.random.split(key, 3)
    s = 0.1
    return {
        "Wp1d": s * jax.random.normal(k1, (hidden, hidden), jnp.float32),
        "Wp1a": s * jax.random.normal(k2, (hidden, hidden), jnp.float32),
        "bp1": 0.01 * jnp.ones((1, hidden), jnp.float32),
        "Wp2": s * jax.random.normal(k3, (hidden, out_dim), jnp.float32),
        "bp2": 0.01 * jnp.ones((1, out_dim), jnp.float32),
    }


if __name__ == "__main__":
    HIDDEN = 32
    NODE_FDIM = 8
    EDGE_FDIM = 4
    DEPTH = 3
    OUT_DIM = 2
    NUM_GRAPHS = 2

    key = jax.random.PRNGKey(0)
    k_don, k_acc, k_head, k_xd, k_ed, k_xa, k_ea = jax.random.split(key, 7)

    params = {
        "donor": init_encoder_params(k_don, NODE_FDIM, EDGE_FDIM, HIDDEN),
        "acceptor": init_encoder_params(k_acc, NODE_FDIM, EDGE_FDIM, HIDDEN),
        "head": init_head_params(k_head, HIDDEN, OUT_DIM),
    }

    Hp = _round_up(HIDDEN, 128)
    Fnp = _round_up(NODE_FDIM, 128)
    Fcp = _round_up(NODE_FDIM + EDGE_FDIM, 128)
    Op = _round_up(OUT_DIM, 128)

    # donor batch: 2 cycle graphs of 6 nodes -> N=12, E=24
    ei_d, rev_d, batch_d, n_d = make_cycle_batch(6, NUM_GRAPHS)
    xnd = jax.random.normal(k_xd, (n_d, NODE_FDIM), jnp.float32)
    ead = jax.random.normal(k_ed, (ei_d.shape[1], EDGE_FDIM), jnp.float32)
    donor = prepare_graph(xnd, ei_d, rev_d, ead, batch_d, NUM_GRAPHS, Hp)

    # acceptor batch: 2 cycle graphs of 5 nodes -> N=10, E=20
    ei_a, rev_a, batch_a, n_a = make_cycle_batch(5, NUM_GRAPHS)
    xna = jax.random.normal(k_xa, (n_a, NODE_FDIM), jnp.float32)
    eaa = jax.random.normal(k_ea, (ei_a.shape[1], EDGE_FDIM), jnp.float32)
    acceptor = prepare_graph(xna, ei_a, rev_a, eaa, batch_a, NUM_GRAPHS, Hp)

    padded_params = {
        "donor": pad_encoder_params(params["donor"], Fnp, Fcp, Hp),
        "acceptor": pad_encoder_params(params["acceptor"], Fnp, Fcp, Hp),
        "head": pad_head_params(params["head"], Hp, Op),
    }

    y = dmpnn_predictor(donor, acceptor, padded_params, DEPTH, NUM_GRAPHS,
                        OUT_DIM)
    y = jax.block_until_ready(y)

    donor_raw = (xnd, ei_d, rev_d, ead, batch_d)
    acceptor_raw = (xna, ei_a, rev_a, eaa, batch_a)

    # 1) tight check vs a scatter/gather reference with the SAME bf16-input /
    #    f32-accumulate policy as the kernel (validates the Pallas math).
    y_mixed = predictor_ref(donor_raw, acceptor_raw, params, DEPTH,
                            NUM_GRAPHS, jnp.bfloat16)
    np.testing.assert_allclose(np.asarray(y), np.asarray(y_mixed),
                               rtol=2e-3, atol=2e-3)

    # 2) loose check vs the full-f32 reference (original PyTorch semantics;
    #    only bf16 MXU-input rounding separates the two).
    y_f32 = predictor_ref(donor_raw, acceptor_raw, params, DEPTH,
                          NUM_GRAPHS, jnp.float32)
    np.testing.assert_allclose(np.asarray(y), np.asarray(y_f32),
                               rtol=5e-2, atol=5e-2)

    print("KERNEL_OK")
</pallas_src>

<mosaic_0001>
module attributes {stable_mosaic.version = 11 : i64} {
  func.func @dmpnn_fused_kernel(%arg0: i32, %arg1: memref<128x128xbf16, #tpu.memory_space<vmem>>, %arg2: memref<128x128xbf16, #tpu.memory_space<vmem>>, %arg3: memref<128x128xbf16, #tpu.memory_space<vmem>>, %arg4: memref<128x128xbf16, #tpu.memory_space<vmem>>, %arg5: memref<8x128xbf16, #tpu.memory_space<vmem>>, %arg6: memref<8x128xf32, #tpu.memory_space<vmem>>, %arg7: memref<128x128xbf16, #tpu.memory_space<vmem>>, %arg8: memref<128x128xbf16, #tpu.memory_space<vmem>>, %arg9: memref<128x128xbf16, #tpu.memory_space<vmem>>, %arg10: memref<128x128xbf16, #tpu.memory_space<vmem>>, %arg11: memref<8x128xbf16, #tpu.memory_space<vmem>>, %arg12: memref<8x128xf32, #tpu.memory_space<vmem>>, %arg13: memref<128x128xbf16, #tpu.memory_space<vmem>>, %arg14: memref<128x128xbf16, #tpu.memory_space<vmem>>, %arg15: memref<128x128xbf16, #tpu.memory_space<vmem>>, %arg16: memref<128x128xbf16, #tpu.memory_space<vmem>>, %arg17: memref<1x128xf32, #tpu.memory_space<vmem>>, %arg18: memref<128x128xbf16, #tpu.memory_space<vmem>>, %arg19: memref<128x128xbf16, #tpu.memory_space<vmem>>, %arg20: memref<128x128xbf16, #tpu.memory_space<vmem>>, %arg21: memref<128x128xbf16, #tpu.memory_space<vmem>>, %arg22: memref<1x128xf32, #tpu.memory_space<vmem>>, %arg23: memref<128x128xbf16, #tpu.memory_space<vmem>>, %arg24: memref<128x128xbf16, #tpu.memory_space<vmem>>, %arg25: memref<1x128xf32, #tpu.memory_space<vmem>>, %arg26: memref<128x128xbf16, #tpu.memory_space<vmem>>, %arg27: memref<1x128xf32, #tpu.memory_space<vmem>>, %arg28: memref<8x128xf32, #tpu.memory_space<vmem>>) attributes {dimension_semantics = [#tpu.dimension_semantics<arbitrary>], iteration_bounds = array<i64: 1>, scalar_prefetch = 0 : i64, scratch_operands = 0 : i64, tpu.core_type = #tpu.core_type<tc>, window_params = [{pipeline_mode = #tpu.pipeline_mode<synchronous>, transform_indices = @transform_0, window_bounds = array<i64: 128, 128>}, {pipeline_mode = #tpu.pipeline_mode<synchronous>, transform_indices = @transform_1, window_bounds = array<i64: 128, 128>}, {pipeline_mode = #tpu.pipeline_mode<synchronous>, transform_indices = @transform_2, window_bounds = array<i64: 128, 128>}, {pipeline_mode = #tpu.pipeline_mode<synchronous>, transform_indices = @transform_3, window_bounds = array<i64: 128, 128>}, {pipeline_mode = #tpu.pipeline_mode<synchronous>, transform_indices = @transform_4, window_bounds = array<i64: 8, 128>}, {pipeline_mode = #tpu.pipeline_mode<synchronous>, transform_indices = @transform_5, window_bounds = array<i64: 8, 128>}, {pipeline_mode = #tpu.pipeline_mode<synchronous>, transform_indices = @transform_6, window_bounds = array<i64: 128, 128>}, {pipeline_mode = #tpu.pipeline_mode<synchronous>, transform_indices = @transform_7, window_bounds = array<i64: 128, 128>}, {pipeline_mode = #tpu.pipeline_mode<synchronous>, transform_indices = @transform_8, window_bounds = array<i64: 128, 128>}, {pipeline_mode = #tpu.pipeline_mode<synchronous>, transform_indices = @transform_9, window_bounds = array<i64: 128, 128>}, {pipeline_mode = #tpu.pipeline_mode<synchronous>, transform_indices = @transform_10, window_bounds = array<i64: 8, 128>}, {pipeline_mode = #tpu.pipeline_mode<synchronous>, transform_indices = @transform_11, window_bounds = array<i64: 8, 128>}, {pipeline_mode = #tpu.pipeline_mode<synchronous>, transform_indices = @transform_12, window_bounds = array<i64: 128, 128>}, {pipeline_mode = #tpu.pipeline_mode<synchronous>, transform_indices = @transform_13, window_bounds = array<i64: 128, 128>}, {pipeline_mode = #tpu.pipeline_mode<synchronous>, transform_indices = @transform_14, window_bounds = array<i64: 128, 128>}, {pipeline_mode = #tpu.pipeline_mode<synchronous>, transform_indices = @transform_15, window_bounds = array<i64: 128, 128>}, {pipeline_mode = #tpu.pipeline_mode<synchronous>, transform_indices = @transform_16, window_bounds = array<i64: 1, 128>}, {pipeline_mode = #tpu.pipeline_mode<synchronous>, transform_indices = @transform_17, window_bounds = array<i64: 128, 128>}, {pipeline_mode = #tpu.pipeline_mode<synchronous>, transform_indices = @transform_18, window_bounds = array<i64: 128, 128>}, {pipeline_mode = #tpu.pipeline_mode<synchronous>, transform_indices = @transform_19, window_bounds = array<i64: 128, 128>}, {pipeline_mode = #tpu.pipeline_mode<synchronous>, transform_indices = @transform_20, window_bounds = array<i64: 128, 128>}, {pipeline_mode = #tpu.pipeline_mode<synchronous>, transform_indices = @transform_21, window_bounds = array<i64: 1, 128>}, {pipeline_mode = #tpu.pipeline_mode<synchronous>, transform_indices = @transform_22, window_bounds = array<i64: 128, 128>}, {pipeline_mode = #tpu.pipeline_mode<synchronous>, transform_indices = @transform_23, window_bounds = array<i64: 128, 128>}, {pipeline_mode = #tpu.pipeline_mode<synchronous>, transform_indices = @transform_24, window_bounds = array<i64: 1, 128>}, {pipeline_mode = #tpu.pipeline_mode<synchronous>, transform_indices = @transform_25, window_bounds = array<i64: 128, 128>}, {pipeline_mode = #tpu.pipeline_mode<synchronous>, transform_indices = @transform_26, window_bounds = array<i64: 1, 128>}, {pipeline_mode = #tpu.pipeline_mode<synchronous>, transform_indices = @transform_27, window_bounds = array<i64: 8, 128>}]} {
    %c0 = arith.constant 0 : index
    %c0_0 = arith.constant 0 : index
    %0 = vector.load %arg1[%c0, %c0_0] : memref<128x128xbf16, #tpu.memory_space<vmem>>, vector<128x128xbf16>
    %c0_1 = arith.constant 0 : index
    %c0_2 = arith.constant 0 : index
    %1 = vector.load %arg2[%c0_1, %c0_2] : memref<128x128xbf16, #tpu.memory_space<vmem>>, vector<128x128xbf16>
    %c0_3 = arith.constant 0 : index
    %c0_4 = arith.constant 0 : index
    %2 = vector.load %arg3[%c0_3, %c0_4] : memref<128x128xbf16, #tpu.memory_space<vmem>>, vector<128x128xbf16>
    %c0_5 = arith.constant 0 : index
    %c0_6 = arith.constant 0 : index
    %3 = vector.load %arg4[%c0_5, %c0_6] : memref<128x128xbf16, #tpu.memory_space<vmem>>, vector<128x128xbf16>
    %c0_7 = arith.constant 0 : index
    %c0_8 = arith.constant 0 : index
    %4 = vector.load %arg5[%c0_7, %c0_8] : memref<8x128xbf16, #tpu.memory_space<vmem>>, vector<8x128xbf16>
    %c0_9 = arith.constant 0 : index
    %c0_10 = arith.constant 0 : index
    %5 = vector.load %arg6[%c0_9, %c0_10] : memref<8x128xf32, #tpu.memory_space<vmem>>, vector<8x128xf32>
    %c0_11 = arith.constant 0 : index
    %c0_12 = arith.constant 0 : index
    %6 = vector.load %arg13[%c0_11, %c0_12] : memref<128x128xbf16, #tpu.memory_space<vmem>>, vector<128x128xbf16>
    %c0_13 = arith.constant 0 : index
    %c0_14 = arith.constant 0 : index
    %7 = vector.load %arg14[%c0_13, %c0_14] : memref<128x128xbf16, #tpu.memory_space<vmem>>, vector<128x128xbf16>
    %c0_15 = arith.constant 0 : index
    %c0_16 = arith.constant 0 : index
    %8 = vector.load %arg15[%c0_15, %c0_16] : memref<128x128xbf16, #tpu.memory_space<vmem>>, vector<128x128xbf16>
    %c0_17 = arith.constant 0 : index
    %c0_18 = arith.constant 0 : index
    %9 = vector.load %arg16[%c0_17, %c0_18] : memref<128x128xbf16, #tpu.memory_space<vmem>>, vector<128x128xbf16>
    %c0_19 = arith.constant 0 : index
    %c0_20 = arith.constant 0 : index
    %10 = vector.load %arg17[%c0_19, %c0_20] : memref<1x128xf32, #tpu.memory_space<vmem>>, vector<1x128xf32>
    %cst = arith.constant dense<0.000000e+00> : vector<128x128xf32>
    %11 = tpu.matmul %0, %6, %cst {dimension_numbers = #tpu.dot_dimension_numbers<[1], [0], [0], [1], [0, 0, 1, 1], [], []>} : vector<128x128xbf16>, vector<128x128xbf16>, vector<128x128xf32> -> vector<128x128xf32>
    %cst_21 = arith.constant 0.000000e+00 : f32
    %12 = vector.broadcast %cst_21 : f32 to vector<128x128xf32>
    %13 = arith.maximumf %11, %12 : vector<128x128xf32>
    %c0_i32 = arith.constant 0 : i32
    %14 = arith.truncf %13 : vector<128x128xf32> to vector<128x128xbf16>
    %cst_22 = arith.constant dense<0.000000e+00> : vector<128x128xf32>
    %15 = tpu.matmul %2, %14, %cst_22 {dimension_numbers = #tpu.dot_dimension_numbers<[1], [0], [0], [1], [0, 0, 1, 1], [], []>} : vector<128x128xbf16>, vector<128x128xbf16>, vector<128x128xf32> -> vector<128x128xf32>
    %16 = arith.truncf %15 : vector<128x128xf32> to vector<128x128xbf16>
    %cst_23 = arith.constant dense<0.000000e+00> : vector<128x128xf32>
    %17 = tpu.matmul %16, %7, %cst_23 {dimension_numbers = #tpu.dot_dimension_numbers<[1], [0], [0], [1], [0, 0, 1, 1], [], []>} : vector<128x128xbf16>, vector<128x128xbf16>, vector<128x128xf32> -> vector<128x128xf32>
    %18 = arith.addf %13, %17 : vector<128x128xf32>
    %cst_24 = arith.constant 0.000000e+00 : f32
    %19 = vector.broadcast %cst_24 : f32 to vector<128x128xf32>
    %20 = arith.maximumf %18, %19 : vector<128x128xf32>
    %c1_i32 = arith.constant 1 : i32
    %21 = arith.truncf %20 : vector<128x128xf32> to vector<128x128xbf16>
    %cst_25 = arith.constant dense<0.000000e+00> : vector<128x128xf32>
    %22 = tpu.matmul %2, %21, %cst_25 {dimension_numbers = #tpu.dot_dimension_numbers<[1], [0], [0], [1], [0, 0, 1, 1], [], []>} : vector<128x128xbf16>, vector<128x128xbf16>, vector<128x128xf32> -> vector<128x128xf32>
    %23 = arith.truncf %22 : vector<128x128xf32> to vector<128x128xbf16>
    %cst_26 = arith.constant dense<0.000000e+00> : vector<128x128xf32>
    %24 = tpu.matmul %23, %7, %cst_26 {dimension_numbers = #tpu.dot_dimension_numbers<[1], [0], [0], [1], [0, 0, 1, 1], [], []>} : vector<128x128xbf16>, vector<128x128xbf16>, vector<128x128xf32> -> vector<128x128xf32>
    %25 = arith.addf %13, %24 : vector<128x128xf32>
    %cst_27 = arith.constant 0.000000e+00 : f32
    %26 = vector.broadcast %cst_27 : f32 to vector<128x128xf32>
    %27 = arith.maximumf %25, %26 : vector<128x128xf32>
    %28 = arith.truncf %27 : vector<128x128xf32> to vector<128x128xbf16>
    %cst_28 = arith.constant dense<0.000000e+00> : vector<128x128xf32>
    %29 = tpu.matmul %3, %28, %cst_28 {dimension_numbers = #tpu.dot_dimension_numbers<[1], [0], [0], [1], [0, 0, 1, 1], [], []>} : vector<128x128xbf16>, vector<128x128xbf16>, vector<128x128xf32> -> vector<128x128xf32>
    %cst_29 = arith.constant dense<0.000000e+00> : vector<128x128xf32>
    %30 = tpu.matmul %1, %8, %cst_29 {dimension_numbers = #tpu.dot_dimension_numbers<[1], [0], [0], [1], [0, 0, 1, 1], [], []>} : vector<128x128xbf16>, vector<128x128xbf16>, vector<128x128xf32> -> vector<128x128xf32>
    %31 = arith.truncf %29 : vector<128x128xf32> to vector<128x128xbf16>
    %cst_30 = arith.constant dense<0.000000e+00> : vector<128x128xf32>
    %32 = tpu.matmul %31, %9, %cst_30 {dimension_numbers = #tpu.dot_dimension_numbers<[1], [0], [0], [1], [0, 0, 1, 1], [], []>} : vector<128x128xbf16>, vector<128x128xbf16>, vector<128x128xf32> -> vector<128x128xf32>
    %33 = arith.addf %30, %32 : vector<128x128xf32>
    %34 = vector.broadcast %10 : vector<1x128xf32> to vector<128x128xf32>
    %35 = arith.addf %33, %34 : vector<128x128xf32>
    %cst_31 = arith.constant 0.000000e+00 : f32
    %36 = vector.broadcast %cst_31 : f32 to vector<128x128xf32>
    %37 = arith.maximumf %35, %36 : vector<128x128xf32>
    %38 = arith.truncf %37 : vector<128x128xf32> to vector<128x128xbf16>
    %cst_32 = arith.constant dense<0.000000e+00> : vector<8x128xf32>
    %39 = tpu.matmul %4, %38, %cst_32 {dimension_numbers = #tpu.dot_dimension_numbers<[1], [0], [0], [1], [0, 0, 1, 1], [], []>} : vector<8x128xbf16>, vector<128x128xbf16>, vector<8x128xf32> -> vector<8x128xf32>
    %40 = arith.mulf %39, %5 : vector<8x128xf32>
    %c0_33 = arith.constant 0 : index
    %c0_34 = arith.constant 0 : index
    %41 = vector.load %arg7[%c0_33, %c0_34] : memref<128x128xbf16, #tpu.memory_space<vmem>>, vector<128x128xbf16>
    %c0_35 = arith.constant 0 : index
    %c0_36 = arith.constant 0 : index
    %42 = vector.load %arg8[%c0_35, %c0_36] : memref<128x128xbf16, #tpu.memory_space<vmem>>, vector<128x128xbf16>
    %c0_37 = arith.constant 0 : index
    %c0_38 = arith.constant 0 : index
    %43 = vector.load %arg9[%c0_37, %c0_38] : memref<128x128xbf16, #tpu.memory_space<vmem>>, vector<128x128xbf16>
    %c0_39 = arith.constant 0 : index
    %c0_40 = arith.constant 0 : index
    %44 = vector.load %arg10[%c0_39, %c0_40] : memref<128x128xbf16, #tpu.memory_space<vmem>>, vector<128x128xbf16>
    %c0_41 = arith.constant 0 : index
    %c0_42 = arith.constant 0 : index
    %45 = vector.load %arg11[%c0_41, %c0_42] : memref<8x128xbf16, #tpu.memory_space<vmem>>, vector<8x128xbf16>
    %c0_43 = arith.constant 0 : index
    %c0_44 = arith.constant 0 : index
    %46 = vector.load %arg12[%c0_43, %c0_44] : memref<8x128xf32, #tpu.memory_space<vmem>>, vector<8x128xf32>
    %c0_45 = arith.constant 0 : index
    %c0_46 = arith.constant 0 : index
    %47 = vector.load %arg18[%c0_45, %c0_46] : memref<128x128xbf16, #tpu.memory_space<vmem>>, vector<128x128xbf16>
    %c0_47 = arith.constant 0 : index
    %c0_48 = arith.constant 0 : index
    %48 = vector.load %arg19[%c0_47, %c0_48] : memref<128x128xbf16, #tpu.memory_space<vmem>>, vector<128x128xbf16>
    %c0_49 = arith.constant 0 : index
    %c0_50 = arith.constant 0 : index
    %49 = vector.load %arg20[%c0_49, %c0_50] : memref<128x128xbf16, #tpu.memory_space<vmem>>, vector<128x128xbf16>
    %c0_51 = arith.constant 0 : index
    %c0_52 = arith.constant 0 : index
    %50 = vector.load %arg21[%c0_51, %c0_52] : memref<128x128xbf16, #tpu.memory_space<vmem>>, vector<128x128xbf16>
    %c0_53 = arith.constant 0 : index
    %c0_54 = arith.constant 0 : index
    %51 = vector.load %arg22[%c0_53, %c0_54] : memref<1x128xf32, #tpu.memory_space<vmem>>, vector<1x128xf32>
    %cst_55 = arith.constant dense<0.000000e+00> : vector<128x128xf32>
    %52 = tpu.matmul %41, %47, %cst_55 {dimension_numbers = #tpu.dot_dimension_numbers<[1], [0], [0], [1], [0, 0, 1, 1], [], []>} : vector<128x128xbf16>, vector<128x128xbf16>, vector<128x128xf32> -> vector<128x128xf32>
    %cst_56 = arith.constant 0.000000e+00 : f32
    %53 = vector.broadcast %cst_56 : f32 to vector<128x128xf32>
    %54 = arith.maximumf %52, %53 : vector<128x128xf32>
    %c0_i32_57 = arith.constant 0 : i32
    %55 = arith.truncf %54 : vector<128x128xf32> to vector<128x128xbf16>
    %cst_58 = arith.constant dense<0.000000e+00> : vector<128x128xf32>
    %56 = tpu.matmul %43, %55, %cst_58 {dimension_numbers = #tpu.dot_dimension_numbers<[1], [0], [0], [1], [0, 0, 1, 1], [], []>} : vector<128x128xbf16>, vector<128x128xbf16>, vector<128x128xf32> -> vector<128x128xf32>
    %57 = arith.truncf %56 : vector<128x128xf32> to vector<128x128xbf16>
    %cst_59 = arith.constant dense<0.000000e+00> : vector<128x128xf32>
    %58 = tpu.matmul %57, %48, %cst_59 {dimension_numbers = #tpu.dot_dimension_numbers<[1], [0], [0], [1], [0, 0, 1, 1], [], []>} : vector<128x128xbf16>, vector<128x128xbf16>, vector<128x128xf32> -> vector<128x128xf32>
    %59 = arith.addf %54, %58 : vector<128x128xf32>
    %cst_60 = arith.constant 0.000000e+00 : f32
    %60 = vector.broadcast %cst_60 : f32 to vector<128x128xf32>
    %61 = arith.maximumf %59, %60 : vector<128x128xf32>
    %c1_i32_61 = arith.constant 1 : i32
    %62 = arith.truncf %61 : vector<128x128xf32> to vector<128x128xbf16>
    %cst_62 = arith.constant dense<0.000000e+00> : vector<128x128xf32>
    %63 = tpu.matmul %43, %62, %cst_62 {dimension_numbers = #tpu.dot_dimension_numbers<[1], [0], [0], [1], [0, 0, 1, 1], [], []>} : vector<128x128xbf16>, vector<128x128xbf16>, vector<128x128xf32> -> vector<128x128xf32>
    %64 = arith.truncf %63 : vector<128x128xf32> to vector<128x128xbf16>
    %cst_63 = arith.constant dense<0.000000e+00> : vector<128x128xf32>
    %65 = tpu.matmul %64, %48, %cst_63 {dimension_numbers = #tpu.dot_dimension_numbers<[1], [0], [0], [1], [0, 0, 1, 1], [], []>} : vector<128x128xbf16>, vector<128x128xbf16>, vector<128x128xf32> -> vector<128x128xf32>
    %66 = arith.addf %54, %65 : vector<128x128xf32>
    %cst_64 = arith.constant 0.000000e+00 : f32
    %67 = vector.broadcast %cst_64 : f32 to vector<128x128xf32>
    %68 = arith.maximumf %66, %67 : vector<128x128xf32>
    %69 = arith.truncf %68 : vector<128x128xf32> to vector<128x128xbf16>
    %cst_65 = arith.constant dense<0.000000e+00> : vector<128x128xf32>
    %70 = tpu.matmul %44, %69, %cst_65 {dimension_numbers = #tpu.dot_dimension_numbers<[1], [0], [0], [1], [0, 0, 1, 1], [], []>} : vector<128x128xbf16>, vector<128x128xbf16>, vector<128x128xf32> -> vector<128x128xf32>
    %cst_66 = arith.constant dense<0.000000e+00> : vector<128x128xf32>
    %71 = tpu.matmul %42, %49, %cst_66 {dimension_numbers = #tpu.dot_dimension_numbers<[1], [0], [0], [1], [0, 0, 1, 1], [], []>} : vector<128x128xbf16>, vector<128x128xbf16>, vector<128x128xf32> -> vector<128x128xf32>
    %72 = arith.truncf %70 : vector<128x128xf32> to vector<128x128xbf16>
    %cst_67 = arith.constant dense<0.000000e+00> : vector<128x128xf32>
    %73 = tpu.matmul %72, %50, %cst_67 {dimension_numbers = #tpu.dot_dimension_numbers<[1], [0], [0], [1], [0, 0, 1, 1], [], []>} : vector<128x128xbf16>, vector<128x128xbf16>, vector<128x128xf32> -> vector<128x128xf32>
    %74 = arith.addf %71, %73 : vector<128x128xf32>
    %75 = vector.broadcast %51 : vector<1x128xf32> to vector<128x128xf32>
    %76 = arith.addf %74, %75 : vector<128x128xf32>
    %cst_68 = arith.constant 0.000000e+00 : f32
    %77 = vector.broadcast %cst_68 : f32 to vector<128x128xf32>
    %78 = arith.maximumf %76, %77 : vector<128x128xf32>
    %79 = arith.truncf %78 : vector<128x128xf32> to vector<128x128xbf16>
    %cst_69 = arith.constant dense<0.000000e+00> : vector<8x128xf32>
    %80 = tpu.matmul %45, %79, %cst_69 {dimension_numbers = #tpu.dot_dimension_numbers<[1], [0], [0], [1], [0, 0, 1, 1], [], []>} : vector<8x128xbf16>, vector<128x128xbf16>, vector<8x128xf32> -> vector<8x128xf32>
    %81 = arith.mulf %80, %46 : vector<8x128xf32>
    %82 = arith.truncf %40 : vector<8x128xf32> to vector<8x128xbf16>
    %c0_70 = arith.constant 0 : index
    %c0_71 = arith.constant 0 : index
    %83 = vector.load %arg23[%c0_70, %c0_71] : memref<128x128xbf16, #tpu.memory_space<vmem>>, vector<128x128xbf16>
    %cst_72 = arith.constant dense<0.000000e+00> : vector<8x128xf32>
    %84 = tpu.matmul %82, %83, %cst_72 {dimension_numbers = #tpu.dot_dimension_numbers<[1], [0], [0], [1], [0, 0, 1, 1], [], []>} : vector<8x128xbf16>, vector<128x128xbf16>, vector<8x128xf32> -> vector<8x128xf32>
    %85 = arith.truncf %81 : vector<8x128xf32> to vector<8x128xbf16>
    %c0_73 = arith.constant 0 : index
    %c0_74 = arith.constant 0 : index
    %86 = vector.load %arg24[%c0_73, %c0_74] : memref<128x128xbf16, #tpu.memory_space<vmem>>, vector<128x128xbf16>
    %cst_75 = arith.constant dense<0.000000e+00> : vector<8x128xf32>
    %87 = tpu.matmul %85, %86, %cst_75 {dimension_numbers = #tpu.dot_dimension_numbers<[1], [0], [0], [1], [0, 0, 1, 1], [], []>} : vector<8x128xbf16>, vector<128x128xbf16>, vector<8x128xf32> -> vector<8x128xf32>
    %88 = arith.addf %84, %87 : vector<8x128xf32>
    %c0_76 = arith.constant 0 : index
    %c0_77 = arith.constant 0 : index
    %89 = vector.load %arg25[%c0_76, %c0_77] : memref<1x128xf32, #tpu.memory_space<vmem>>, vector<1x128xf32>
    %90 = vector.broadcast %89 : vector<1x128xf32> to vector<8x128xf32>
    %91 = arith.addf %88, %90 : vector<8x128xf32>
    %cst_78 = arith.constant 0.000000e+00 : f32
    %92 = vector.broadcast %cst_78 : f32 to vector<8x128xf32>
    %93 = arith.maximumf %91, %92 : vector<8x128xf32>
    %94 = arith.truncf %93 : vector<8x128xf32> to vector<8x128xbf16>
    %c0_79 = arith.constant 0 : index
    %c0_80 = arith.constant 0 : index
    %95 = vector.load %arg26[%c0_79, %c0_80] : memref<128x128xbf16, #tpu.memory_space<vmem>>, vector<128x128xbf16>
    %cst_81 = arith.constant dense<0.000000e+00> : vector<8x128xf32>
    %96 = tpu.matmul %94, %95, %cst_81 {dimension_numbers = #tpu.dot_dimension_numbers<[1], [0], [0], [1], [0, 0, 1, 1], [], []>} : vector<8x128xbf16>, vector<128x128xbf16>, vector<8x128xf32> -> vector<8x128xf32>
    %c0_82 = arith.constant 0 : index
    %c0_83 = arith.constant 0 : index
    %97 = vector.load %arg27[%c0_82, %c0_83] : memref<1x128xf32, #tpu.memory_space<vmem>>, vector<1x128xf32>
    %98 = vector.broadcast %97 : vector<1x128xf32> to vector<8x128xf32>
    %99 = arith.addf %96, %98 : vector<8x128xf32>
    %c0_84 = arith.constant 0 : index
    %c0_85 = arith.constant 0 : index
    %100 = vector.load %arg28[%c0_84, %c0_85] : memref<8x128xf32, #tpu.memory_space<vmem>>, vector<8x128xf32>
    tpu.vector_store %arg28[%c0_84, %c0_85], %99 {strides = array<i32>} : memref<8x128xf32, #tpu.memory_space<vmem>>, vector<8x128xf32>,
    return
  }
  func.func @transform_0(%arg0: i32) -> (i32, i32) {
    %c0_i32 = arith.constant 0 : i32
    %c0_i32_0 = arith.constant 0 : i32
    %c0_i32_1 = arith.constant 0 : i32
    return %c0_i32, %c0_i32_0 : i32, i32
  }
  func.func @transform_1(%arg0: i32) -> (i32, i32) {
    %c0_i32 = arith.constant 0 : i32
    %c0_i32_0 = arith.constant 0 : i32
    %c0_i32_1 = arith.constant 0 : i32
    return %c0_i32, %c0_i32_0 : i32, i32
  }
  func.func @transform_2(%arg0: i32) -> (i32, i32) {
    %c0_i32 = arith.constant 0 : i32
    %c0_i32_0 = arith.constant 0 : i32
    %c0_i32_1 = arith.constant 0 : i32
    return %c0_i32, %c0_i32_0 : i32, i32
  }
  func.func @transform_3(%arg0: i32) -> (i32, i32) {
    %c0_i32 = arith.constant 0 : i32
    %c0_i32_0 = arith.constant 0 : i32
    %c0_i32_1 = arith.constant 0 : i32
    return %c0_i32, %c0_i32_0 : i32, i32
  }
  func.func @transform_4(%arg0: i32) -> (i32, i32) {
    %c0_i32 = arith.constant 0 : i32
    %c0_i32_0 = arith.constant 0 : i32
    %c0_i32_1 = arith.constant 0 : i32
    return %c0_i32, %c0_i32_0 : i32, i32
  }
  func.func @transform_5(%arg0: i32) -> (i32, i32) {
    %c0_i32 = arith.constant 0 : i32
    %c0_i32_0 = arith.constant 0 : i32
    %c0_i32_1 = arith.constant 0 : i32
    return %c0_i32, %c0_i32_0 : i32, i32
  }
  func.func @transform_6(%arg0: i32) -> (i32, i32) {
    %c0_i32 = arith.constant 0 : i32
    %c0_i32_0 = arith.constant 0 : i32
    %c0_i32_1 = arith.constant 0 : i32
    return %c0_i32, %c0_i32_0 : i32, i32
  }
  func.func @transform_7(%arg0: i32) -> (i32, i32) {
    %c0_i32 = arith.constant 0 : i32
    %c0_i32_0 = arith.constant 0 : i32
    %c0_i32_1 = arith.constant 0 : i32
    return %c0_i32, %c0_i32_0 : i32, i32
  }
  func.func @transform_8(%arg0: i32) -> (i32, i32) {
    %c0_i32 = arith.constant 0 : i32
    %c0_i32_0 = arith.constant 0 : i32
    %c0_i32_1 = arith.constant 0 : i32
    return %c0_i32, %c0_i32_0 : i32, i32
  }
  func.func @transform_9(%arg0: i32) -> (i32, i32) {
    %c0_i32 = arith.constant 0 : i32
    %c0_i32_0 = arith.constant 0 : i32
    %c0_i32_1 = arith.constant 0 : i32
    return %c0_i32, %c0_i32_0 : i32, i32
  }
  func.func @transform_10(%arg0: i32) -> (i32, i32) {
    %c0_i32 = arith.constant 0 : i32
    %c0_i32_0 = arith.constant 0 : i32
    %c0_i32_1 = arith.constant 0 : i32
    return %c0_i32, %c0_i32_0 : i32, i32
  }
  func.func @transform_11(%arg0: i32) -> (i32, i32) {
    %c0_i32 = arith.constant 0 : i32
    %c0_i32_0 = arith.constant 0 : i32
    %c0_i32_1 = arith.constant 0 : i32
    return %c0_i32, %c0_i32_0 : i32, i32
  }
  func.func @transform_12(%arg0: i32) -> (i32, i32) {
    %c0_i32 = arith.constant 0 : i32
    %c0_i32_0 = arith.constant 0 : i32
    %c0_i32_1 = arith.constant 0 : i32
    return %c0_i32, %c0_i32_0 : i32, i32
  }
  func.func @transform_13(%arg0: i32) -> (i32, i32) {
    %c0_i32 = arith.constant 0 : i32
    %c0_i32_0 = arith.constant 0 : i32
    %c0_i32_1 = arith.constant 0 : i32
    return %c0_i32, %c0_i32_0 : i32, i32
  }
  func.func @transform_14(%arg0: i32) -> (i32, i32) {
    %c0_i32 = arith.constant 0 : i32
    %c0_i32_0 = arith.constant 0 : i32
    %c0_i32_1 = arith.constant 0 : i32
    return %c0_i32, %c0_i32_0 : i32, i32
  }
  func.func @transform_15(%arg0: i32) -> (i32, i32) {
    %c0_i32 = arith.constant 0 : i32
    %c0_i32_0 = arith.constant 0 : i32
    %c0_i32_1 = arith.constant 0 : i32
    return %c0_i32, %c0_i32_0 : i32, i32
  }
  func.func @transform_16(%arg0: i32) -> (i32, i32) {
    %c0_i32 = arith.constant 0 : i32
    %c0_i32_0 = arith.constant 0 : i32
    %c0_i32_1 = arith.constant 0 : i32
    return %c0_i32, %c0_i32_0 : i32, i32
  }
  func.func @transform_17(%arg0: i32) -> (i32, i32) {
    %c0_i32 = arith.constant 0 : i32
    %c0_i32_0 = arith.constant 0 : i32
    %c0_i32_1 = arith.constant 0 : i32
    return %c0_i32, %c0_i32_0 : i32, i32
  }
  func.func @transform_18(%arg0: i32) -> (i32, i32) {
    %c0_i32 = arith.constant 0 : i32
    %c0_i32_0 = arith.constant 0 : i32
    %c0_i32_1 = arith.constant 0 : i32
    return %c0_i32, %c0_i32_0 : i32, i32
  }
  func.func @transform_19(%arg0: i32) -> (i32, i32) {
    %c0_i32 = arith.constant 0 : i32
    %c0_i32_0 = arith.constant 0 : i32
    %c0_i32_1 = arith.constant 0 : i32
    return %c0_i32, %c0_i32_0 : i32, i32
  }
  func.func @transform_20(%arg0: i32) -> (i32, i32) {
    %c0_i32 = arith.constant 0 : i32
    %c0_i32_0 = arith.constant 0 : i32
    %c0_i32_1 = arith.constant 0 : i32
    return %c0_i32, %c0_i32_0 : i32, i32
  }
  func.func @transform_21(%arg0: i32) -> (i32, i32) {
    %c0_i32 = arith.constant 0 : i32
    %c0_i32_0 = arith.constant 0 : i32
    %c0_i32_1 = arith.constant 0 : i32
    return %c0_i32, %c0_i32_0 : i32, i32
  }
  func.func @transform_22(%arg0: i32) -> (i32, i32) {
    %c0_i32 = arith.constant 0 : i32
    %c0_i32_0 = arith.constant 0 : i32
    %c0_i32_1 = arith.constant 0 : i32
    return %c0_i32, %c0_i32_0 : i32, i32
  }
  func.func @transform_23(%arg0: i32) -> (i32, i32) {
    %c0_i32 = arith.constant 0 : i32
    %c0_i32_0 = arith.constant 0 : i32
    %c0_i32_1 = arith.constant 0 : i32
    return %c0_i32, %c0_i32_0 : i32, i32
  }
  func.func @transform_24(%arg0: i32) -> (i32, i32) {
    %c0_i32 = arith.constant 0 : i32
    %c0_i32_0 = arith.constant 0 : i32
    %c0_i32_1 = arith.constant 0 : i32
    return %c0_i32, %c0_i32_0 : i32, i32
  }
  func.func @transform_25(%arg0: i32) -> (i32, i32) {
    %c0_i32 = arith.constant 0 : i32
    %c0_i32_0 = arith.constant 0 : i32
    %c0_i32_1 = arith.constant 0 : i32
    return %c0_i32, %c0_i32_0 : i32, i32
  }
  func.func @transform_26(%arg0: i32) -> (i32, i32) {
    %c0_i32 = arith.constant 0 : i32
    %c0_i32_0 = arith.constant 0 : i32
    %c0_i32_1 = arith.constant 0 : i32
    return %c0_i32, %c0_i32_0 : i32, i32
  }
  func.func @transform_27(%arg0: i32) -> (i32, i32) {
    %c0_i32 = arith.constant 0 : i32
    %c0_i32_0 = arith.constant 0 : i32
    %c0_i32_1 = arith.constant 0 : i32
    return %c0_i32, %c0_i32_0 : i32, i32
  }
}

</mosaic_0001>

<bundles_post_ra>
// kernel: tpu_custom_call.1
= control target key start
LH: loop header
LB: loop body
LE: loop exit
PB: predicated region body
PF: predicated region fallthrough
CT: control target
= control target key end

     0   :  { %s6190_s0 = inlined_call_operand.hbm [shape: bf16[128,128], index: 0, kind: input, shape index: {}]   ;;  %s6191_s1 = inlined_call_operand.hbm [shape: bf16[128,128], index: 1, kind: input, shape index: {}]   ;;  %s6192_s2 = inlined_call_operand.hbm [shape: bf16[128,128], index: 2, kind: input, shape index: {}]   ;;  %s6193_s3 = inlined_call_operand.hbm [shape: bf16[128,128], index: 3, kind: input, shape index: {}]   ;;  %s6194_s4 = inlined_call_operand.hbm [shape: bf16[8,128], index: 4, kind: input, shape index: {}]   ;;  %s6195_s5 = inlined_call_operand.vmem [shape: f32[8,128], index: 5, kind: input, shape index: {}]   ;;  %s6196_s6 = inlined_call_operand.hbm [shape: bf16[128,128], index: 6, kind: input, shape index: {}]   ;;  %s6197_s7 = inlined_call_operand.hbm [shape: bf16[128,128], index: 7, kind: input, shape index: {}]   ;;  %s6198_s8 = inlined_call_operand.hbm [shape: bf16[128,128], index: 8, kind: input, shape index: {}]   ;;  %s6199_s9 = inlined_call_operand.hbm [shape: bf16[128,128], index: 9, kind: input, shape index: {}]   ;;  %s6200_s10 = inlined_call_operand.hbm [shape: bf16[8,128], index: 10, kind: input, shape index: {}]   ;;  %s6201_s11 = inlined_call_operand.vmem [shape: f32[8,128], index: 11, kind: input, shape index: {}]   ;;  %s6202_s12 = inlined_call_operand.hbm [shape: bf16[128,128], index: 12, kind: input, shape index: {}]   ;;  %s6203_s13 = inlined_call_operand.hbm [shape: bf16[128,128], index: 13, kind: input, shape index: {}]   ;;  %s6204_s14 = inlined_call_operand.hbm [shape: bf16[128,128], index: 14, kind: input, shape index: {}]   ;;  %s6205_s15 = inlined_call_operand.hbm [shape: bf16[128,128], index: 15, kind: input, shape index: {}]   ;;  %s6206_s16 = inlined_call_operand.vmem [shape: f32[1,128], index: 16, kind: input, shape index: {}]   ;;  %s6207_s17 = inlined_call_operand.hbm [shape: bf16[128,128], index: 17, kind: input, shape index: {}]   ;;  %s6208_s18 = inlined_call_operand.hbm [shape: bf16[128,128], index: 18, kind: input, shape index: {}]   ;;  %s6209_s19 = inlined_call_operand.hbm [shape: bf16[128,128], index: 19, kind: input, shape index: {}]   ;;  %s6210_s20 = inlined_call_operand.hbm [shape: bf16[128,128], index: 20, kind: input, shape index: {}]   ;;  %s6211_s21 = inlined_call_operand.vmem [shape: f32[1,128], index: 21, kind: input, shape index: {}]   ;;  %s6212_s22 = inlined_call_operand.hbm [shape: bf16[128,128], index: 22, kind: input, shape index: {}]   ;;  %s6213_s23 = inlined_call_operand.hbm [shape: bf16[128,128], index: 23, kind: input, shape index: {}]   ;;  %s6214_s24 = inlined_call_operand.vmem [shape: f32[1,128], index: 24, kind: input, shape index: {}]   ;;  %s6215_s25 = inlined_call_operand.hbm [shape: bf16[128,128], index: 25, kind: input, shape index: {}]   ;;  %s6216_s26 = inlined_call_operand.vmem [shape: f32[1,128], index: 26, kind: input, shape index: {}]   ;;  %s6217_s27 = inlined_call_operand.hbm [shape: f32[8,128], index: 27, kind: output, shape index: {}]  }
   0x1   :  { %6218 = sst [smem:[#allocation48_spill]] %s6190_s0 }
   0x2   :  { %6219 = sst [smem:[#allocation49_spill]] %s6191_s1 }
   0x3   :  { %6220 = sst [smem:[#allocation50_spill]] %s6192_s2 }
   0x4   :  { %6221 = sst [smem:[#allocation51_spill]] %s6193_s3 }
   0x5   :  { %6222 = sst [smem:[#allocation52_spill]] %s6194_s4 }
   0x6   :  { %6223 = sst [smem:[#allocation53_spill]] %s6195_s5 }
   0x7   :  { %6224 = sst [smem:[#allocation54_spill]] %s6196_s6 }
   0x8   :  { %6225 = sst [smem:[#allocation55_spill]] %s6197_s7 }
   0x9   :  { %6226 = sst [smem:[#allocation56_spill]] %s6198_s8 }
   0xa   :  { %6227 = sst [smem:[#allocation57_spill]] %s6199_s9 }
   0xb   :  { %6228 = sst [smem:[#allocation58_spill]] %s6200_s10 }
   0xc   :  { %6229 = sst [smem:[#allocation59_spill]] %s6201_s11 }
   0xd   :  { %32 = vsyncpa [#allocation3], 0 }
   0xe   :  { %33 = vsyncpa [#allocation6], 0 }
   0xf   :  { %34 = vsyncpa [#allocation9], 0 }
  0x10   :  { %35 = vsyncpa [#allocation12], 0 }
  0x11   :  { %36 = vsyncpa [#allocation15], 0 }
  0x12   :  { %37 = vsyncpa [#allocation18], 0 }
  0x13   :  { %38 = vsyncpa [#allocation21], 0 }
  0x14   :  { %39 = vsyncpa [#allocation24], 0 }
  0x15   :  { %40 = vsyncpa [#allocation27], 0 }
  0x16   :  { %41 = vsyncpa [#allocation30], 0 }
  0x17   :  { %42 = vsyncpa [#allocation33], 0 }
  0x18   :  { %43 = vsyncpa [#allocation4], 0  ;;  %s5448_s7 = smov [#allocation5]   ;;  %s5449_s8 = smov [#allocation8]  }
  0x19   :  { %s61_s4 = sshll.u32 %s5448_s7, 4  ;;  %s85_s30 = sshll.u32 %s5449_s8, 4  ;;  %s62_s4 = int_to_ptr.vmem [resolvable:$true] %s61_s4  ;;  %s86_s30 = int_to_ptr.vmem [resolvable:$true] %s85_s30 }
  0x1a   :  { %s4992_s9 = scalar_lea.vmem %s62_s4, 1024  ;;  %p4997_p1 = scmp.lt.s32.totalorder %s62_s4, %s62_s4 }
  0x1b   :  { %p4993_p0 = scmp.ne.s32.totalorder %s62_s4, %s4992_s9  ;;  %p4998_p2 = scmp.lt.s32.totalorder %s4992_s9, %s4992_s9 }
  0x1d   :  { %p4999_p3 = por %p4998_p2, %p4997_p1 }
  0x1f   :  { %p5000_p4 = pnand %p4999_p3, %p4993_p0 }
  0x21   :  { %5003 = shalt.err (!%p5000_p4)
}
  0x22   :  { %s5450_s5 = smov 64   ;;  %s5451_s28 = smov 4  }
  0x23   :  { %s6230_s29 = sld [smem:[#allocation49_spill]]  ;;  %s5012_s1 = scalar_lea.vmem %s86_s30, 1024 }
  0x24   :  { %p5013_p5 = scmp.ne.s32.totalorder %s86_s30, %s5012_s1  ;;  %p5017_p6 = scmp.lt.s32.totalorder %s86_s30, %s86_s30 }
  0x25   :  { %p5018_p7 = scmp.lt.s32.totalorder %s5012_s1, %s5012_s1 }
  0x27   :  { %p5019_p8 = por %p5018_p7, %p5017_p6 }
  0x29   :  { %67 = dma.hbm_to_vmem [thread:$0]  %s6230_s29, 1024, %s62_s4, [#allocation6], %s5450_s5, %s5450_s5, %s5451_s28  }
  0x2a   :  { %p5020_p9 = pnand %p5019_p8, %p5013_p5 }
  0x2c   :  { %5023 = shalt.err (!%p5020_p9)
}
  0x2d   :  { %s6231_s2 = sld [smem:[#allocation51_spill]]  ;;  %s5452_s3 = smov [#allocation11]  }
  0x2e   :  { %s109_s7 = sshll.u32 %s5452_s3, 4  ;;  %s5453_s8 = smov [#allocation14]   ;;  %s110_s7 = int_to_ptr.vmem [resolvable:$true] %s109_s7 }
  0x2f   :  { %s133_s9 = sshll.u32 %s5453_s8, 4  ;;  %s5032_s4 = scalar_lea.vmem %s110_s7, 1024  ;;  %s134_s9 = int_to_ptr.vmem [resolvable:$true] %s133_s9 }
  0x30   :  { %p5033_p10 = scmp.ne.s32.totalorder %s110_s7, %s5032_s4  ;;  %p5037_p11 = scmp.lt.s32.totalorder %s110_s7, %s110_s7 }
  0x31   :  { %p5038_p12 = scmp.lt.s32.totalorder %s5032_s4, %s5032_s4 }
  0x33   :  { %91 = dma.hbm_to_vmem [thread:$0]  %s6231_s2, 1024, %s86_s30, [#allocation9], %s5450_s5, %s5450_s5, %s5451_s28  }
  0x34   :  { %p5039_p13 = por %p5038_p12, %p5037_p11 }
  0x36   :  { %p5040_p0 = pnand %p5039_p13, %p5033_p10 }
  0x38   :  { %5043 = shalt.err (!%p5040_p0)
}
  0x39   :  { %s6232_s29 = sld [smem:[#allocation54_spill]]  ;;  %s5052_s30 = scalar_lea.vmem %s134_s9, 1024 }
  0x3a   :  { %p5053_p1 = scmp.ne.s32.totalorder %s134_s9, %s5052_s30  ;;  %p5057_p2 = scmp.lt.s32.totalorder %s134_s9, %s134_s9 }
  0x3b   :  { %p5058_p3 = scmp.lt.s32.totalorder %s5052_s30, %s5052_s30 }
  0x3d   :  { %p5059_p4 = por %p5058_p3, %p5057_p2 }
  0x3f   :  { %115 = dma.hbm_to_vmem [thread:$0]  %s6232_s29, 1024, %s110_s7, [#allocation12], %s5450_s5, %s5450_s5, %s5451_s28  }
  0x40   :  { %p5060_p5 = pnand %p5059_p4, %p5053_p1 }
  0x42   :  { %5063 = shalt.err (!%p5060_p5)
}
  0x43   :  { %s6233_s11 = sld [smem:[#allocation56_spill]]  ;;  %s5454_s2 = smov [#allocation17]  }
  0x44   :  { %s158_s3 = sshll.u32 %s5454_s2, 4  ;;  %s5455_s8 = smov [#allocation20]   ;;  %s159_s3 = int_to_ptr.vmem [resolvable:$true] %s158_s3 }
  0x45   :  { %s181_s4 = sshll.u32 %s5455_s8, 4  ;;  %s5072_s7 = scalar_lea.vmem %s159_s3, 64  ;;  %s182_s4 = int_to_ptr.vmem [resolvable:$true] %s181_s4 }
  0x46   :  { %p5073_p6 = scmp.ne.s32.totalorder %s159_s3, %s5072_s7  ;;  %p5077_p7 = scmp.lt.s32.totalorder %s159_s3, %s159_s3 }
  0x47   :  { %p5078_p8 = scmp.lt.s32.totalorder %s5072_s7, %s5072_s7 }
  0x49   :  { %139 = dma.hbm_to_vmem [thread:$0]  %s6233_s11, 1024, %s134_s9, [#allocation15], %s5450_s5, %s5450_s5, %s5451_s28  }
  0x4a   :  { %p5079_p9 = por %p5078_p8, %p5077_p7 }
  0x4c   :  { %p5080_p10 = pnand %p5079_p9, %p5073_p6 }
  0x4e   :  { %5083 = shalt.err (!%p5080_p10)
}
  0x4f   :  { %s6234_s29 = sld [smem:[#allocation58_spill]]  ;;  %s5092_s30 = scalar_lea.vmem %s182_s4, 1024 }
  0x50   :  { %p5093_p11 = scmp.ne.s32.totalorder %s182_s4, %s5092_s30  ;;  %p5097_p12 = scmp.lt.s32.totalorder %s182_s4, %s182_s4 }
  0x51   :  { %p5098_p13 = scmp.lt.s32.totalorder %s5092_s30, %s5092_s30 }
  0x53   :  { %p5099_p0 = por %p5098_p13, %p5097_p12 }
  0x55   :  { %161 = dma.hbm_to_vmem [thread:$0]  %s6234_s29, 64, %s159_s3, [#allocation18]  }
  0x56   :  { %p5100_p1 = pnand %p5099_p0, %p5093_p11 }
  0x58   :  { %5103 = shalt.err (!%p5100_p1)
}
  0x59   :  { %187 = dma.hbm_to_vmem [thread:$0]  %s6203_s13, 1024, %s182_s4, [#allocation21], %s5450_s5, %s5450_s5, %s5451_s28  }
  0x5a   :  { %s5456_s6 = smov [#allocation23]   ;;  %s5457_s2 = smov [#allocation26]  }
  0x5b   :  { %s205_s11 = sshll.u32 %s5456_s6, 4  ;;  %s231_s8 = sshll.u32 %s5457_s2, 4  ;;  %s206_s11 = int_to_ptr.vmem [resolvable:$true] %s205_s11  ;;  %s232_s8 = int_to_ptr.vmem [resolvable:$true] %s231_s8 }
  0x5c   :  { %s5112_s3 = scalar_lea.vmem %s206_s11, 1024  ;;  %p5117_p3 = scmp.lt.s32.totalorder %s206_s11, %s206_s11 }
  0x5d   :  { %p5113_p2 = scmp.ne.s32.totalorder %s206_s11, %s5112_s3  ;;  %p5118_p4 = scmp.lt.s32.totalorder %s5112_s3, %s5112_s3 }
  0x5f   :  { %p5119_p5 = por %p5118_p4, %p5117_p3 }
  0x61   :  { %p5120_p6 = pnand %p5119_p5, %p5113_p2 }
  0x63   :  { %5123 = shalt.err (!%p5120_p6)
}
  0x64   :  { %211 = dma.hbm_to_vmem [thread:$0]  %s6205_s15, 1024, %s206_s11, [#allocation24], %s5450_s5, %s5450_s5, %s5451_s28  }
  0x65   :  { %s5132_s13 = scalar_lea.vmem %s232_s8, 1024  ;;  %p5137_p8 = scmp.lt.s32.totalorder %s232_s8, %s232_s8 }
  0x66   :  { %p5133_p7 = scmp.ne.s32.totalorder %s232_s8, %s5132_s13  ;;  %p5138_p9 = scmp.lt.s32.totalorder %s5132_s13, %s5132_s13 }
  0x68   :  { %p5139_p10 = por %p5138_p9, %p5137_p8 }
  0x6a   :  { %p5140_p11 = pnand %p5139_p10, %p5133_p7 }
  0x6c   :  { %5143 = shalt.err (!%p5140_p11)
}
  0x6d   :  { %237 = dma.hbm_to_vmem [thread:$0]  %s6208_s18, 1024, %s232_s8, [#allocation27], %s5450_s5, %s5450_s5, %s5451_s28  }
  0x6e   :  { %s5458_s29 = smov [#allocation29]   ;;  %s5459_s9 = smov [#allocation32]  }
  0x6f   :  { %s255_s30 = sshll.u32 %s5458_s29, 4  ;;  %s281_s1 = sshll.u32 %s5459_s9, 4  ;;  %s256_s30 = int_to_ptr.vmem [resolvable:$true] %s255_s30  ;;  %s282_s1 = int_to_ptr.vmem [resolvable:$true] %s281_s1 }
  0x70   :  { %s5152_s15 = scalar_lea.vmem %s256_s30, 1024  ;;  %p5157_p13 = scmp.lt.s32.totalorder %s256_s30, %s256_s30 }
  0x71   :  { %p5153_p12 = scmp.ne.s32.totalorder %s256_s30, %s5152_s15  ;;  %p5158_p0 = scmp.lt.s32.totalorder %s5152_s15, %s5152_s15 }
  0x73   :  { %p5159_p1 = por %p5158_p0, %p5157_p13 }
  0x75   :  { %p5160_p2 = pnand %p5159_p1, %p5153_p12 }
  0x77   :  { %5163 = shalt.err (!%p5160_p2)
}
  0x78   :  { %261 = dma.hbm_to_vmem [thread:$0]  %s6210_s20, 1024, %s256_s30, [#allocation30], %s5450_s5, %s5450_s5, %s5451_s28  }
  0x79   :  { %s5172_s18 = scalar_lea.vmem %s282_s1, 1024  ;;  %p5177_p4 = scmp.lt.s32.totalorder %s282_s1, %s282_s1 }
  0x7a   :  { %p5173_p3 = scmp.ne.s32.totalorder %s282_s1, %s5172_s18  ;;  %p5178_p5 = scmp.lt.s32.totalorder %s5172_s18, %s5172_s18 }
  0x7c   :  { %p5179_p6 = por %p5178_p5, %p5177_p4 }
  0x7e   :  { %p5180_p7 = pnand %p5179_p6, %p5173_p3 }
  0x80   :  { %5183 = shalt.err (!%p5180_p7)
}
  0x81   :  { %287 = dma.hbm_to_vmem [thread:$0]  %s6213_s23, 1024, %s282_s1, [#allocation33], %s5450_s5, %s5450_s5, %s5451_s28  }
  0x82   :  { %s5460_s3 = smov [#allocation2]   ;;  %s5461_s0 = smov [#allocation7]  }
  0x83   :  { %s49_s7 = sshll.u32 %s5460_s3, 4  ;;  %s73_s13 = sshll.u32 %s5461_s0, 4  ;;  %s50_s7 = int_to_ptr.vmem [resolvable:$true] %s49_s7  ;;  %s74_s13 = int_to_ptr.vmem [resolvable:$true] %s73_s13 }
  0x84   :  { %s5192_s20 = scalar_lea.vmem %s50_s7, 1024  ;;  %p5197_p9 = scmp.lt.s32.totalorder %s50_s7, %s50_s7 }
  0x85   :  { %p5193_p8 = scmp.ne.s32.totalorder %s50_s7, %s5192_s20  ;;  %p5198_p10 = scmp.lt.s32.totalorder %s5192_s20, %s5192_s20 }
  0x87   :  { %p5199_p11 = por %p5198_p10, %p5197_p9 }
  0x89   :  { %p5200_p12 = pnand %p5199_p11, %p5193_p8 }
  0x8b   :  { %5203 = shalt.err (!%p5200_p12)
}
  0x8c   :  { %s6235_s29 = sld [smem:[#allocation48_spill]]  ;;  %s5212_s23 = scalar_lea.vmem %s74_s13, 1024 }
  0x8d   :  { %p5213_p13 = scmp.ne.s32.totalorder %s74_s13, %s5212_s23  ;;  %p5217_p0 = scmp.lt.s32.totalorder %s74_s13, %s74_s13 }
  0x8e   :  { %p5218_p1 = scmp.lt.s32.totalorder %s5212_s23, %s5212_s23 }
  0x90   :  { %p5219_p2 = por %p5218_p1, %p5217_p0 }
  0x92   :  { %55 = dma.hbm_to_vmem [thread:$0]  %s6235_s29, 1024, %s50_s7, [#allocation3], %s5450_s5, %s5450_s5, %s5451_s28  }
  0x93   :  { %p5220_p3 = pnand %p5219_p2, %p5213_p13 }
  0x95   :  { %5223 = shalt.err (!%p5220_p3)
}
  0x96   :  { %s6236_s1 = sld [smem:[#allocation50_spill]]  ;;  %s5462_s15 = smov [#allocation10]  }
  0x97   :  { %s98_s6 = sshll.u32 %s5462_s15, 4  ;;  %s5463_s11 = smov [#allocation13]   ;;  %s99_s6 = int_to_ptr.vmem [resolvable:$true] %s98_s6 }
  0x98   :  { %s121_s18 = sshll.u32 %s5463_s11, 4  ;;  %s5232_s2 = scalar_lea.vmem %s99_s6, 64  ;;  %s122_s18 = int_to_ptr.vmem [resolvable:$true] %s121_s18 }
  0x99   :  { %p5233_p4 = scmp.ne.s32.totalorder %s99_s6, %s5232_s2  ;;  %p5237_p5 = scmp.lt.s32.totalorder %s99_s6, %s99_s6 }
  0x9a   :  { %p5238_p6 = scmp.lt.s32.totalorder %s5232_s2, %s5232_s2 }
  0x9c   :  { %79 = dma.hbm_to_vmem [thread:$0]  %s6236_s1, 1024, %s74_s13, [#allocation6], %s5450_s5, %s5450_s5, %s5451_s28  }
  0x9d   :  { %p5239_p7 = por %p5238_p6, %p5237_p5 }
  0x9f   :  { %p5240_p8 = pnand %p5239_p7, %p5233_p4 }
  0xa1   :  { %5243 = shalt.err (!%p5240_p8)
}
  0xa2   :  { %s6237_s7 = sld [smem:[#allocation52_spill]]  ;;  %s5252_s0 = scalar_lea.vmem %s122_s18, 1024 }
  0xa3   :  { %p5253_p9 = scmp.ne.s32.totalorder %s122_s18, %s5252_s0  ;;  %p5257_p10 = scmp.lt.s32.totalorder %s122_s18, %s122_s18 }
  0xa4   :  { %p5258_p11 = scmp.lt.s32.totalorder %s5252_s0, %s5252_s0 }
  0xa6   :  { %p5259_p12 = por %p5258_p11, %p5257_p10 }
  0xa8   :  { %101 = dma.hbm_to_vmem [thread:$0]  %s6237_s7, 64, %s99_s6, [#allocation9]  }
  0xa9   :  { %p5260_p13 = pnand %p5259_p12, %p5253_p9 }
  0xab   :  { %5263 = shalt.err (!%p5260_p13)
}
  0xac   :  { %s6238_s4 = sld [smem:[#allocation55_spill]]  ;;  %s5464_s10 = smov [#allocation16]  }
  0xad   :  { %s145_s29 = sshll.u32 %s5464_s10, 4  ;;  %s5465_s23 = smov [#allocation19]   ;;  %s146_s29 = int_to_ptr.vmem [resolvable:$true] %s145_s29 }
  0xae   :  { %s169_s30 = sshll.u32 %s5465_s23, 4  ;;  %s5272_s9 = scalar_lea.vmem %s146_s29, 1024  ;;  %s170_s30 = int_to_ptr.vmem [resolvable:$true] %s169_s30 }
  0xaf   :  { %p5273_p0 = scmp.ne.s32.totalorder %s146_s29, %s5272_s9  ;;  %p5277_p1 = scmp.lt.s32.totalorder %s146_s29, %s146_s29 }
  0xb0   :  { %p5278_p2 = scmp.lt.s32.totalorder %s5272_s9, %s5272_s9 }
  0xb2   :  { %127 = dma.hbm_to_vmem [thread:$0]  %s6238_s4, 1024, %s122_s18, [#allocation12], %s5450_s5, %s5450_s5, %s5451_s28  }
  0xb3   :  { %p5279_p3 = por %p5278_p2, %p5277_p1 }
  0xb5   :  { %p5280_p4 = pnand %p5279_p3, %p5273_p0 }
  0xb7   :  { %5283 = shalt.err (!%p5280_p4)
}
  0xb8   :  { %s6239_s6 = sld [smem:[#allocation57_spill]]  ;;  %s5292_s11 = scalar_lea.vmem %s170_s30, 1024 }
  0xb9   :  { %p5293_p5 = scmp.ne.s32.totalorder %s170_s30, %s5292_s11  ;;  %p5297_p6 = scmp.lt.s32.totalorder %s170_s30, %s170_s30 }
  0xba   :  { %p5298_p7 = scmp.lt.s32.totalorder %s5292_s11, %s5292_s11 }
  0xbc   :  { %p5299_p8 = por %p5298_p7, %p5297_p6 }
  0xbe   :  { %151 = dma.hbm_to_vmem [thread:$0]  %s6239_s6, 1024, %s146_s29, [#allocation15], %s5450_s5, %s5450_s5, %s5451_s28  }
  0xbf   :  { %p5300_p9 = pnand %p5299_p8, %p5293_p5 }
  0xc1   :  { %5303 = shalt.err (!%p5300_p9)
}
  0xc2   :  { %175 = dma.hbm_to_vmem [thread:$0]  %s6202_s12, 1024, %s170_s30, [#allocation18], %s5450_s5, %s5450_s5, %s5451_s28  }
  0xc3   :  { %s5466_s8 = smov [#allocation22]   ;;  %s5467_s7 = smov [#allocation25]  }
  0xc4   :  { %s193_s3 = sshll.u32 %s5466_s8, 4  ;;  %s219_s0 = sshll.u32 %s5467_s7, 4  ;;  %s194_s3 = int_to_ptr.vmem [resolvable:$true] %s193_s3  ;;  %s220_s0 = int_to_ptr.vmem [resolvable:$true] %s219_s0 }
  0xc5   :  { %s5312_s13 = scalar_lea.vmem %s194_s3, 1024  ;;  %p5317_p11 = scmp.lt.s32.totalorder %s194_s3, %s194_s3 }
  0xc6   :  { %p5313_p10 = scmp.ne.s32.totalorder %s194_s3, %s5312_s13  ;;  %p5318_p12 = scmp.lt.s32.totalorder %s5312_s13, %s5312_s13 }
  0xc8   :  { %p5319_p13 = por %p5318_p12, %p5317_p11 }
  0xca   :  { %p5320_p0 = pnand %p5319_p13, %p5313_p10 }
  0xcc   :  { %5323 = shalt.err (!%p5320_p0)
}
  0xcd   :  { %199 = dma.hbm_to_vmem [thread:$0]  %s6204_s14, 1024, %s194_s3, [#allocation21], %s5450_s5, %s5450_s5, %s5451_s28  }
  0xce   :  { %s5332_s12 = scalar_lea.vmem %s220_s0, 1024  ;;  %p5337_p2 = scmp.lt.s32.totalorder %s220_s0, %s220_s0 }
  0xcf   :  { %p5333_p1 = scmp.ne.s32.totalorder %s220_s0, %s5332_s12  ;;  %p5338_p3 = scmp.lt.s32.totalorder %s5332_s12, %s5332_s12 }
  0xd1   :  { %p5339_p4 = por %p5338_p3, %p5337_p2 }
  0xd3   :  { %p5340_p5 = pnand %p5339_p4, %p5333_p1 }
  0xd5   :  { %5343 = shalt.err (!%p5340_p5)
}
  0xd6   :  { %225 = dma.hbm_to_vmem [thread:$0]  %s6207_s17, 1024, %s220_s0, [#allocation24], %s5450_s5, %s5450_s5, %s5451_s28  }
  0xd7   :  { %s5468_s23 = smov [#allocation28]   ;;  %s5469_s9 = smov [#allocation31]  }
  0xd8   :  { %s243_s30 = sshll.u32 %s5468_s23, 4  ;;  %s269_s1 = sshll.u32 %s5469_s9, 4  ;;  %s244_s30 = int_to_ptr.vmem [resolvable:$true] %s243_s30  ;;  %s270_s1 = int_to_ptr.vmem [resolvable:$true] %s269_s1 }
  0xd9   :  { %s5352_s14 = scalar_lea.vmem %s244_s30, 1024  ;;  %p5357_p7 = scmp.lt.s32.totalorder %s244_s30, %s244_s30 }
  0xda   :  { %p5353_p6 = scmp.ne.s32.totalorder %s244_s30, %s5352_s14  ;;  %p5358_p8 = scmp.lt.s32.totalorder %s5352_s14, %s5352_s14 }
  0xdc   :  { %p5359_p9 = por %p5358_p8, %p5357_p7 }
  0xde   :  { %p5360_p10 = pnand %p5359_p9, %p5353_p6 }
  0xe0   :  { %5363 = shalt.err (!%p5360_p10)
}
  0xe1   :  { %249 = dma.hbm_to_vmem [thread:$0]  %s6209_s19, 1024, %s244_s30, [#allocation27], %s5450_s5, %s5450_s5, %s5451_s28  }
  0xe2   :  { %s5372_s17 = scalar_lea.vmem %s270_s1, 1024  ;;  %p5377_p12 = scmp.lt.s32.totalorder %s270_s1, %s270_s1 }
  0xe3   :  { %p5373_p11 = scmp.ne.s32.totalorder %s270_s1, %s5372_s17  ;;  %p5378_p13 = scmp.lt.s32.totalorder %s5372_s17, %s5372_s17 }
  0xe5   :  { %p5379_p0 = por %p5378_p13, %p5377_p12 }
  0xe7   :  { %p5380_p1 = pnand %p5379_p0, %p5373_p11 }
  0xe9   :  { %5383 = shalt.err (!%p5380_p1)
}
  0xea   :  { %275 = dma.hbm_to_vmem [thread:$0]  %s6212_s22, 1024, %s270_s1, [#allocation30], %s5450_s5, %s5450_s5, %s5451_s28  }
  0xeb   :  { %s5470_s2 = smov [#allocation34]  }
  0xec   :  { %s295_s8 = sshll.u32 %s5470_s2, 4  ;;  %s296_s8 = int_to_ptr.vmem [resolvable:$true] %s295_s8 }
  0xed   :  { %s5392_s3 = scalar_lea.vmem %s296_s8, 1024  ;;  %p5397_p3 = scmp.lt.s32.totalorder %s296_s8, %s296_s8 }
  0xee   :  { %p5393_p2 = scmp.ne.s32.totalorder %s296_s8, %s5392_s3  ;;  %p5398_p4 = scmp.lt.s32.totalorder %s5392_s3, %s5392_s3 }
  0xf0   :  { %p5399_p5 = por %p5398_p4, %p5397_p3 }
  0xf2   :  { %p5400_p6 = pnand %p5399_p5, %p5393_p2 }
  0xf4   :  { %5403 = shalt.err (!%p5400_p6)
}
  0xf5   :  { %301 = dma.hbm_to_vmem [thread:$0]  %s6215_s25, 1024, %s296_s8, [#allocation33], %s5450_s5, %s5450_s5, %s5451_s28  }
  0xf6   :  { %5424 = dma.done.wait [#allocation3], 1024  }
  0xf7   :  { %5425 = vsyncadd [#allocation3], 4294966272 }
  0xf8   :  { %5426 = dma.done.wait [#allocation6], 2048  }
  0xf9   :  { %5427 = vsyncadd [#allocation6], 4294965248 }
  0xfa   :  { %5428 = dma.done.wait [#allocation9], 1088  }
  0xfb   :  { %5429 = vsyncadd [#allocation9], 4294966208 }
  0xfc   :  { %5430 = dma.done.wait [#allocation12], 2048  }
  0xfd   :  { %5431 = vsyncadd [#allocation12], 4294965248 }
  0xfe   :  { %5432 = dma.done.wait [#allocation15], 2048  }
  0xff   :  { %5433 = vsyncadd [#allocation15], 4294965248 }
 0x100   :  { %5434 = dma.done.wait [#allocation18], 1088  }
 0x101   :  { %5435 = vsyncadd [#allocation18], 4294966208 }
 0x102   :  { %5436 = dma.done.wait [#allocation21], 2048  }
 0x103   :  { %5437 = vsyncadd [#allocation21], 4294965248 }
 0x104   :  { %5438 = dma.done.wait [#allocation24], 2048  }
 0x105   :  { %5439 = vsyncadd [#allocation24], 4294965248 }
 0x106   :  { %5440 = dma.done.wait [#allocation27], 2048  }
 0x107   :  { %5441 = vsyncadd [#allocation27], 4294965248 }
 0x108   :  { %5442 = dma.done.wait [#allocation30], 2048  }
 0x109   :  { %5443 = vsyncadd [#allocation30], 4294965248 }
 0x10a   :  { %5444 = dma.done.wait [#allocation33], 2048  }
 0x10b   :  { %5445 = vsyncadd [#allocation33], 4294965248  ;;  %v4832_v0 = vld [vmem:[#allocation19 + $0x38] sm:$0xff]   ;;  %v4833_v1 = vld [vmem:[#allocation19 + $0x30] sm:$0xff]   ;;  %vm5472_vm0 = vmmov 0   ;;  %s6240_s0 = sld [smem:[#allocation53_spill]] }
 0x10c   :  { %4194 = vmatprep.subr.bf16.mxu0 %v4832_v0  ;;  %v4834_v2 = vld [vmem:[#allocation19 + $0x28] sm:$0xff]   ;;  %v4835_v3 = vld [vmem:[#allocation19 + $0x20] sm:$0xff]   ;;  %v4840_v4 = vld [vmem:[#allocation2] sm:$0xff]   ;;  %s6241_s4 = sld [smem:[#allocation59_spill]]  ;;  %s5473_s30 = smov [#allocation35]  }
 0x10d   :  { %4195 = vmatpush3.bf16.msra.mxu0 %v4832_v0  ;;  %4210 = vmatprep.mubr.bf16.mxu0 %v4840_v4  ;;  %v4836_v5 = vld [vmem:[#allocation19 + $0x18] sm:$0xff]   ;;  %v4837_v6 = vld [vmem:[#allocation19 + $0x10] sm:$0xff]   ;;  %v4838_v7 = vld [vmem:[#allocation19 + $0x8] sm:$0xff]   ;;  %s3718_s9 = sshll.u32 %s5473_s30, 4  ;;  %s3719_s9 = int_to_ptr.vmem [resolvable:$true] %s3718_s9 }
 0x10e   :  { %4196 = vmatprep.subr.bf16.mxu0 %v4833_v1  ;;  %v4839_v8 = vld [vmem:[#allocation19] sm:$0xff]   ;;  %v4842_v10 = vld [vmem:[#allocation2 + $0x10] sm:$0xff]   ;;  %v4843_v11 = vld [vmem:[#allocation2 + $0x18] sm:$0xff]   ;;  %p5409_p8 = scmp.lt.s32.totalorder %s3719_s9, %s3719_s9 }
 0x10f   :  { %v4841_v9 = vld [vmem:[#allocation2 + $0x8] sm:$0xff]   ;;  %v4844_v12 = vld [vmem:[#allocation2 + $0x20] sm:$0xff]   ;;  %v4846_v14 = vld [vmem:[#allocation2 + $0x30] sm:$0xff]  }
 0x110   :  { %v4845_v13 = vld [vmem:[#allocation2 + $0x28] sm:$0xff]   ;;  %v4847_v15 = vld [vmem:[#allocation2 + $0x38] sm:$0xff]   ;;  %v5734_v16 = vld [vmem:[#allocation7] sm:$0xff]  }
 0x111   :  { %4197 = vmatpush3.bf16.msra.mxu0 %v4833_v1  ;;  %4242 = vmatprep.mubr.bf16.mxu1 %v5734_v16  ;;  %v5737_v17 = vld [vmem:[#allocation20 + $0x38] sm:$0xff]   ;;  %v5739_v18 = vld [vmem:[#allocation20 + $0x30] sm:$0xff]   ;;  %v5744_v19 = vld [vmem:[#allocation20 + $0x28] sm:$0xff]  }
 0x112   :  { %4198 = vmatprep.subr.bf16.mxu0 %v4834_v2  ;;  %v5748_v20 = vld [vmem:[#allocation20 + $0x20] sm:$0xff]   ;;  %v5752_v21 = vld [vmem:[#allocation20 + $0x18] sm:$0xff]   ;;  %v5756_v22 = vld [vmem:[#allocation20 + $0x10] sm:$0xff]  }
 0x113   :  { %v5809_v63 = vld [vmem:[#allocation7 + $0x8] sm:$0xff]   ;;  %v5811_v0 = vld [vmem:[#allocation7 + $0x10] sm:$0xff]   ;;  %v5815_v1 = vld [vmem:[#allocation7 + $0x18] sm:$0xff]  }
 0x114   :  { %v5823_v4 = vld [vmem:[#allocation7 + $0x30] sm:$0xff]  }
 0x115   :  { %4199 = vmatpush3.bf16.msra.mxu0 %v4834_v2  ;;  %v5817_v2 = vld [vmem:[#allocation7 + $0x20] sm:$0xff]  }
 0x116   :  { %4200 = vmatprep.subr.bf16.mxu0 %v4835_v3 }
 0x119   :  { %4201 = vmatpush3.bf16.msra.mxu0 %v4835_v3  ;;  %v5821_v3 = vld [vmem:[#allocation7 + $0x28] sm:$0xff]  }
 0x11a   :  { %4202 = vmatprep.subr.bf16.mxu0 %v4836_v5 }
 0x11d   :  { %4203 = vmatpush3.bf16.msra.mxu0 %v4836_v5  ;;  %v5827_v5 = vld [vmem:[#allocation7 + $0x38] sm:$0xff]  }
 0x11e   :  { %4204 = vmatprep.subr.bf16.mxu0 %v4837_v6 }
 0x121   :  { %4205 = vmatpush3.bf16.msra.mxu0 %v4837_v6  ;;  %v4862_v6 = vld [vmem:[#allocation20 + $0x8] sm:$0xff]  }
 0x122   :  { %4206 = vmatprep.subr.bf16.mxu0 %v4838_v7 }
 0x125   :  { %4207 = vmatpush3.bf16.msra.mxu0 %v4838_v7  ;;  %v4863_v7 = vld [vmem:[#allocation20] sm:$0xff]  }
 0x126   :  { %4208 = vmatprep.subr.bf16.mxu0 %v4839_v8 }
 0x129   :  { %4209 = vmatpush3.bf16.msra.mxu0 %v4839_v8 }
 0x12a   :  { %4258 = vmatprep.subr.bf16.mxu0 %v5737_v17 }
 0x12c   :  { %4211 = vmatmul.mubr.bf16.vlgmr.msra.gmra.mxu0 %v4841_v9 }
 0x12d   :  { %4214 = vmatprep.mubr.bf16.mxu0 %v4842_v10  ;;  %4259 = vmatpush3.bf16.msra.mxu0 %v5737_v17 }
 0x12e   :  { %4260 = vmatprep.subr.bf16.mxu0 %v5739_v18 }
 0x131   :  { %4261 = vmatpush3.bf16.msra.mxu0 %v5739_v18 }
 0x132   :  { %4262 = vmatprep.subr.bf16.mxu0 %v5744_v19 }
 0x134   :  { %4215 = vmatmul.mubr.bf16.gmra.mxu0 %v4843_v11 }
 0x135   :  { %4218 = vmatprep.mubr.bf16.mxu0 %v4844_v12  ;;  %4263 = vmatpush3.bf16.msra.mxu0 %v5744_v19 }
 0x136   :  { %4264 = vmatprep.subr.bf16.mxu0 %v5748_v20 }
 0x139   :  { %4265 = vmatpush3.bf16.msra.mxu0 %v5748_v20 }
 0x13a   :  { %4266 = vmatprep.subr.bf16.mxu0 %v5752_v21 }
 0x13c   :  { %4219 = vmatmul.mubr.bf16.gmra.mxu0 %v4845_v13 }
 0x13d   :  { %4222 = vmatprep.mubr.bf16.mxu0 %v4846_v14  ;;  %4267 = vmatpush3.bf16.msra.mxu0 %v5752_v21 }
 0x13e   :  { %4268 = vmatprep.subr.bf16.mxu0 %v5756_v22 }
 0x141   :  { %4269 = vmatpush3.bf16.msra.mxu0 %v5756_v22 }
 0x142   :  { %4270 = vmatprep.subr.bf16.mxu0 %v4862_v6 }
 0x144   :  { %4223 = vmatmul.mubr.bf16.gmra.mxu0 %v4847_v15 }
 0x145   :  { %4271 = vmatpush3.bf16.msra.mxu0 %v4862_v6 }
 0x146   :  { %4272 = vmatprep.subr.bf16.mxu0 %v4863_v7 }
 0x149   :  { %4273 = vmatpush3.bf16.msra.mxu0 %v4863_v7 }
 0x14a   :  { %4322 = vmatprep.subr.bf16.mxu0 %v5737_v17 }
 0x1ec   :  { %v4212_v23 = vpop.f32.mrf.mxu0 }
 0x1ed   :  { %v5799_v58 = vmax.f32 %v4212_v23, 0.0 }
 0x1ee   :  { %v629_v24 = vpop.f32.mrf.mxu0 }
 0x1ef   :  { %v5805_v61 = vmax.f32 %v629_v24, 0.0 }
 0x1f0   :  { %v4213_v25 = vpop.f32.mrf.mxu0 }
 0x1f1   :  { %v5795_v56 = vmax.f32 %v4213_v25, 0.0 }
 0x1f2   :  { %v632_v26 = vpop.f32.mrf.mxu0 }
 0x1f3   :  { %v5801_v59 = vmax.f32 %v632_v26, 0.0  ;;  %v709_v60 = vpack.c.bf16 %v5795_v56, %v5799_v58 }
 0x1f4   :  { %v4216_v27 = vpop.f32.mrf.mxu0 }
 0x1f5   :  { %v5787_v52 = vmax.f32 %v4216_v27, 0.0  ;;  %v708_v62 = vpack.c.bf16 %v5801_v59, %v5805_v61 }
 0x1f6   :  { %v645_v28 = vpop.f32.mrf.mxu0 }
 0x1f7   :  { %v5793_v55 = vmax.f32 %v645_v28, 0.0 }
 0x1f8   :  { %v4217_v29 = vpop.f32.mrf.mxu0 }
 0x1f9   :  { %v5783_v50 = vmax.f32 %v4217_v29, 0.0 }
 0x1fa   :  { %v648_v30 = vpop.f32.mrf.mxu0 }
 0x1fb   :  { %v5789_v53 = vmax.f32 %v648_v30, 0.0  ;;  %v711_v54 = vpack.c.bf16 %v5783_v50, %v5787_v52 }
 0x1fc   :  { %v4220_v31 = vpop.f32.mrf.mxu0 }
 0x1fd   :  { %v5775_v46 = vmax.f32 %v4220_v31, 0.0  ;;  %v710_v57 = vpack.c.bf16 %v5789_v53, %v5793_v55 }
 0x1fe   :  { %v661_v32 = vpop.f32.mrf.mxu0 }
 0x1ff   :  { %v5781_v49 = vmax.f32 %v661_v32, 0.0 }
 0x200   :  { %v4221_v33 = vpop.f32.mrf.mxu0 }
 0x201   :  { %v5771_v44 = vmax.f32 %v4221_v33, 0.0 }
 0x202   :  { %v664_v34 = vpop.f32.mrf.mxu0 }
 0x203   :  { %v5777_v47 = vmax.f32 %v664_v34, 0.0  ;;  %v713_v48 = vpack.c.bf16 %v5771_v44, %v5775_v46 }
 0x204   :  { %v4224_v35 = vpop.f32.mrf.mxu0 }
 0x205   :  { %v5761_v38 = vmax.f32 %v4224_v35, 0.0  ;;  %v712_v51 = vpack.c.bf16 %v5777_v47, %v5781_v49 }
 0x206   :  { %v677_v36 = vpop.f32.mrf.mxu0 }
 0x207   :  { %v5765_v41 = vmax.f32 %v677_v36, 0.0 }
 0x208   :  { %v4225_v37 = vpop.f32.mrf.mxu0 }
 0x209   :  { %v5763_v39 = vmax.f32 %v4225_v37, 0.0 }
 0x20a   :  { %v680_v40 = vpop.f32.mrf.mxu0 }
 0x20b   :  { %v5767_v42 = vmax.f32 %v680_v40, 0.0  ;;  %v715_v43 = vpack.c.bf16 %v5763_v39, %v5761_v38 }
 0x20d   :  { %4226 = vmatprep.subr.bf16.mxu1 %v715_v43  ;;  %v714_v45 = vpack.c.bf16 %v5767_v42, %v5765_v41 }
 0x20e   :  { %4227 = vmatpush3.bf16.msra.mxu1 %v715_v43 }
 0x20f   :  { %4228 = vmatprep.subr.bf16.mxu1 %v714_v45 }
 0x212   :  { %4229 = vmatpush3.bf16.msra.mxu1 %v714_v45 }
 0x213   :  { %4230 = vmatprep.subr.bf16.mxu1 %v713_v48 }
 0x216   :  { %4231 = vmatpush3.bf16.msra.mxu1 %v713_v48 }
 0x217   :  { %4232 = vmatprep.subr.bf16.mxu1 %v712_v51 }
 0x21a   :  { %4233 = vmatpush3.bf16.msra.mxu1 %v712_v51 }
 0x21b   :  { %4234 = vmatprep.subr.bf16.mxu1 %v711_v54 }
 0x21e   :  { %4235 = vmatpush3.bf16.msra.mxu1 %v711_v54 }
 0x21f   :  { %4236 = vmatprep.subr.bf16.mxu1 %v710_v57 }
 0x222   :  { %4237 = vmatpush3.bf16.msra.mxu1 %v710_v57 }
 0x223   :  { %4238 = vmatprep.subr.bf16.mxu1 %v709_v60 }
 0x226   :  { %4239 = vmatpush3.bf16.msra.mxu1 %v709_v60 }
 0x227   :  { %4240 = vmatprep.subr.bf16.mxu1 %v708_v62 }
 0x22a   :  { %4241 = vmatpush3.bf16.msra.mxu1 %v708_v62 }
 0x22d   :  { %4243 = vmatmul.mubr.bf16.vlgmr.msra.gmra.mxu1 %v5809_v63 }
 0x22e   :  { %4246 = vmatprep.mubr.bf16.mxu1 %v5811_v0 }
 0x235   :  { %4247 = vmatmul.mubr.bf16.gmra.mxu1 %v5815_v1 }
 0x236   :  { %4250 = vmatprep.mubr.bf16.mxu1 %v5817_v2 }
 0x23d   :  { %4251 = vmatmul.mubr.bf16.gmra.mxu1 %v5821_v3 }
 0x23e   :  { %4254 = vmatprep.mubr.bf16.mxu1 %v5823_v4 }
 0x245   :  { %4255 = vmatmul.mubr.bf16.gmra.mxu1 %v5827_v5 }
 0x246   :  { %4306 = vmatprep.mubr.bf16.mxu1 %v5734_v16 }
 0x2ed   :  { %v4244_v8 = vpop.f32.mrf.mxu1 }
 0x2ef   :  { %v798_v9 = vpop.f32.mrf.mxu1 }
 0x2f1   :  { %v4245_v10 = vpop.f32.mrf.mxu1 }
 0x2f2   :  { %v862_v13 = vpack.c.bf16 %v4245_v10, %v4244_v8 }
 0x2f3   :  { %v801_v11 = vpop.f32.mrf.mxu1 }
 0x2f4   :  { %v861_v12 = vpack.c.bf16 %v801_v11, %v798_v9 }
 0x2f5   :  { %v4248_v14 = vpop.f32.mrf.mxu1 }
 0x2f6   :  { %4274 = vmatprep.mubr.bf16.mxu0 %v861_v12 }
 0x2f7   :  { %v814_v15 = vpop.f32.mrf.mxu1  ;;  %4275 = vmatmul.mubr.bf16.vlgmr.msra.gmra.mxu0 %v862_v13 }
 0x2f8   :  { %4323 = vmatpush3.bf16.msra.mxu0 %v5737_v17 }
 0x2f9   :  { %v4249_v16 = vpop.f32.mrf.mxu1  ;;  %4324 = vmatprep.subr.bf16.mxu0 %v5739_v18 }
 0x2fa   :  { %v864_v25 = vpack.c.bf16 %v4249_v16, %v4248_v14 }
 0x2fb   :  { %v817_v23 = vpop.f32.mrf.mxu1 }
 0x2fc   :  { %v863_v24 = vpack.c.bf16 %v817_v23, %v814_v15  ;;  %4325 = vmatpush3.bf16.msra.mxu0 %v5739_v18 }
 0x2fd   :  { %v4252_v26 = vpop.f32.mrf.mxu1  ;;  %4326 = vmatprep.subr.bf16.mxu0 %v5744_v19 }
 0x2fe   :  { %4278 = vmatprep.mubr.bf16.mxu0 %v863_v24 }
 0x2ff   :  { %v830_v27 = vpop.f32.mrf.mxu1  ;;  %4279 = vmatmul.mubr.bf16.gmra.mxu0 %v864_v25 }
 0x300   :  { %4327 = vmatpush3.bf16.msra.mxu0 %v5744_v19 }
 0x301   :  { %v4253_v28 = vpop.f32.mrf.mxu1  ;;  %4328 = vmatprep.subr.bf16.mxu0 %v5748_v20 }
 0x302   :  { %v866_v30 = vpack.c.bf16 %v4253_v28, %v4252_v26 }
 0x303   :  { %v833_v17 = vpop.f32.mrf.mxu1 }
 0x304   :  { %v865_v29 = vpack.c.bf16 %v833_v17, %v830_v27  ;;  %4329 = vmatpush3.bf16.msra.mxu0 %v5748_v20 }
 0x305   :  { %v4256_v31 = vpop.f32.mrf.mxu1  ;;  %4330 = vmatprep.subr.bf16.mxu0 %v5752_v21 }
 0x306   :  { %4282 = vmatprep.mubr.bf16.mxu0 %v865_v29 }
 0x307   :  { %v846_v18 = vpop.f32.mrf.mxu1  ;;  %4283 = vmatmul.mubr.bf16.gmra.mxu0 %v866_v30 }
 0x308   :  { %4331 = vmatpush3.bf16.msra.mxu0 %v5752_v21 }
 0x309   :  { %v4257_v32 = vpop.f32.mrf.mxu1  ;;  %4332 = vmatprep.subr.bf16.mxu0 %v5756_v22 }
 0x30a   :  { %v868_v34 = vpack.c.bf16 %v4257_v32, %v4256_v31 }
 0x30b   :  { %v849_v19 = vpop.f32.mrf.mxu1 }
 0x30c   :  { %v867_v33 = vpack.c.bf16 %v849_v19, %v846_v18  ;;  %4333 = vmatpush3.bf16.msra.mxu0 %v5756_v22 }
 0x30d   :  { %4334 = vmatprep.subr.bf16.mxu0 %v4862_v6 }
 0x30e   :  { %4286 = vmatprep.mubr.bf16.mxu0 %v867_v33 }
 0x30f   :  { %4287 = vmatmul.mubr.bf16.gmra.mxu0 %v868_v34 }
 0x310   :  { %4335 = vmatpush3.bf16.msra.mxu0 %v4862_v6 }
 0x311   :  { %4336 = vmatprep.subr.bf16.mxu0 %v4863_v7 }
 0x314   :  { %4337 = vmatpush3.bf16.msra.mxu0 %v4863_v7 }
 0x3b7   :  { %v4276_v20 = vpop.f32.mrf.mxu0 }
 0x3b9   :  { %v951_v35 = vpop.f32.mrf.mxu0 }
 0x3bb   :  { %v4277_v36 = vpop.f32.mrf.mxu0 }
 0x3bd   :  { %v954_v37 = vpop.f32.mrf.mxu0 }
 0x3bf   :  { %v4280_v40 = vpop.f32.mrf.mxu0 }
 0x3c0   :  { %v1020_v31 = vadd.f32 %v4280_v40, %v5787_v52 }
 0x3c1   :  { %v967_v21 = vpop.f32.mrf.mxu0 }
 0x3c2   :  { %v1036_v34 = vmax.f32 %v1020_v31, 0.0  ;;  %v4878_v31 = vld [vmem:[#allocation23 + $0x28] sm:$0xff]  }
 0x3c3   :  { %v4281_v43 = vpop.f32.mrf.mxu0 }
 0x3c4   :  { %v1021_v17 = vadd.f32 %v4281_v43, %v5783_v50 }
 0x3c5   :  { %v970_v45 = vpop.f32.mrf.mxu0 }
 0x3c6   :  { %v1037_v32 = vmax.f32 %v1021_v17, 0.0  ;;  %v1019_v19 = vadd.f32 %v970_v45, %v5789_v53  ;;  %v4864_v17 = vld [vmem:[#allocation8] sm:$0xff]  }
 0x3c7   :  { %v4284_v48 = vpop.f32.mrf.mxu0 }
 0x3c8   :  { %v1024_v14 = vadd.f32 %v4284_v48, %v5775_v46  ;;  %v1018_v48 = vadd.f32 %v967_v21, %v5793_v55  ;;  %v1035_v43 = vmax.f32 %v1019_v19, 0.0  ;;  %v4884_v19 = vld [vmem:[#allocation23 + $0x10] sm:$0xff]  }
 0x3c9   :  { %v983_v51 = vpop.f32.mrf.mxu0 }
 0x3ca   :  { %v1040_v27 = vmax.f32 %v1024_v14, 0.0  ;;  %v1022_v28 = vadd.f32 %v983_v51, %v5781_v49  ;;  %v1017_v51 = vadd.f32 %v4277_v36, %v5795_v56 }
 0x3cb   :  { %v4285_v54 = vpop.f32.mrf.mxu0 }
 0x3cc   :  { %v1025_v10 = vadd.f32 %v4285_v54, %v5771_v44  ;;  %v1038_v18 = vmax.f32 %v1022_v28, 0.0  ;;  %v1049_v54 = vpack.c.bf16 %v1037_v32, %v1036_v34  ;;  %v1033_v40 = vmax.f32 %v1017_v51, 0.0  ;;  %v4882_v32 = vld [vmem:[#allocation23 + $0x18] sm:$0xff]  }
 0x3cd   :  { %v986_v57 = vpop.f32.mrf.mxu0 }
 0x3ce   :  { %v1041_v24 = vmax.f32 %v1025_v10, 0.0  ;;  %v1023_v25 = vadd.f32 %v986_v57, %v5777_v47  ;;  %v1016_v57 = vadd.f32 %v4276_v20, %v5799_v58 }
 0x3cf   :  { %v4288_v22 = vpop.f32.mrf.mxu0 }
 0x3d0   :  { %v1028_v62 = vadd.f32 %v4288_v22, %v5761_v38  ;;  %v1051_v29 = vpack.c.bf16 %v1041_v24, %v1040_v27  ;;  %v1039_v30 = vmax.f32 %v1023_v25, 0.0  ;;  %v1034_v22 = vmax.f32 %v1018_v48, 0.0 }
 0x3d1   :  { %v999_v60 = vpop.f32.mrf.mxu0  ;;  %v1032_v45 = vmax.f32 %v1016_v57, 0.0 }
 0x3d2   :  { %v1026_v6 = vadd.f32 %v999_v60, %v5765_v41  ;;  %v1044_v11 = vmax.f32 %v1028_v62, 0.0  ;;  %v1050_v33 = vpack.c.bf16 %v1039_v30, %v1038_v18  ;;  %v1015_v60 = vadd.f32 %v954_v37, %v5801_v59  ;;  %v4876_v30 = vld [vmem:[#allocation23 + $0x30] sm:$0xff]   ;;  %v4880_v18 = vld [vmem:[#allocation23 + $0x20] sm:$0xff]  }
 0x3d3   :  { %v4289_v8 = vpop.f32.mrf.mxu0  ;;  %v1048_v62 = vpack.c.bf16 %v1035_v43, %v1034_v22  ;;  %v1047_v21 = vpack.c.bf16 %v1033_v40, %v1032_v45 }
 0x3d4   :  { %v1029_v7 = vadd.f32 %v4289_v8, %v5763_v39  ;;  %v1042_v15 = vmax.f32 %v1026_v6, 0.0  ;;  %v1014_v8 = vadd.f32 %v951_v35, %v5805_v61  ;;  %v1031_v6 = vmax.f32 %v1015_v60, 0.0 }
 0x3d5   :  { %v1002_v9 = vpop.f32.mrf.mxu0 }
 0x3d6   :  { %v1045_v12 = vmax.f32 %v1029_v7, 0.0  ;;  %v1027_v13 = vadd.f32 %v1002_v9, %v5767_v42  ;;  %v1030_v36 = vmax.f32 %v1014_v8, 0.0 }
 0x3d8   :  { %v1053_v16 = vpack.c.bf16 %v1045_v12, %v1044_v11  ;;  %v1043_v23 = vmax.f32 %v1027_v13, 0.0  ;;  %v1046_v7 = vpack.c.bf16 %v1031_v6, %v1030_v36 }
 0x3da   :  { %v1052_v26 = vpack.c.bf16 %v1043_v23, %v1042_v15  ;;  %4290 = vmatprep.subr.bf16.mxu1 %v1053_v16 }
 0x3db   :  { %4291 = vmatpush3.bf16.msra.mxu1 %v1053_v16 }
 0x3dc   :  { %4292 = vmatprep.subr.bf16.mxu1 %v1052_v26 }
 0x3df   :  { %4293 = vmatpush3.bf16.msra.mxu1 %v1052_v26 }
 0x3e0   :  { %4294 = vmatprep.subr.bf16.mxu1 %v1051_v29 }
 0x3e3   :  { %4295 = vmatpush3.bf16.msra.mxu1 %v1051_v29  ;;  %v4874_v29 = vld [vmem:[#allocation23 + $0x38] sm:$0xff]  }
 0x3e4   :  { %4296 = vmatprep.subr.bf16.mxu1 %v1050_v33  ;;  %4386 = vmatprep.subr.bf16.mxu0 %v4874_v29 }
 0x3e7   :  { %4297 = vmatpush3.bf16.msra.mxu1 %v1050_v33 }
 0x3e8   :  { %4298 = vmatprep.subr.bf16.mxu1 %v1049_v54 }
 0x3eb   :  { %4299 = vmatpush3.bf16.msra.mxu1 %v1049_v54 }
 0x3ec   :  { %4300 = vmatprep.subr.bf16.mxu1 %v1048_v62 }
 0x3ef   :  { %4301 = vmatpush3.bf16.msra.mxu1 %v1048_v62 }
 0x3f0   :  { %4302 = vmatprep.subr.bf16.mxu1 %v1047_v21 }
 0x3f3   :  { %4303 = vmatpush3.bf16.msra.mxu1 %v1047_v21 }
 0x3f4   :  { %4304 = vmatprep.subr.bf16.mxu1 %v1046_v7 }
 0x3f7   :  { %4305 = vmatpush3.bf16.msra.mxu1 %v1046_v7 }
 0x3fa   :  { %4307 = vmatmul.mubr.bf16.vlgmr.msra.gmra.mxu1 %v5809_v63 }
 0x3fb   :  { %4310 = vmatprep.mubr.bf16.mxu1 %v5811_v0 }
 0x402   :  { %4311 = vmatmul.mubr.bf16.gmra.mxu1 %v5815_v1 }
 0x403   :  { %4314 = vmatprep.mubr.bf16.mxu1 %v5817_v2 }
 0x40a   :  { %4315 = vmatmul.mubr.bf16.gmra.mxu1 %v5821_v3 }
 0x40b   :  { %4318 = vmatprep.mubr.bf16.mxu1 %v5823_v4 }
 0x412   :  { %4319 = vmatmul.mubr.bf16.gmra.mxu1 %v5827_v5 }
 0x413   :  { %4370 = vmatprep.mubr.bf16.mxu1 %v4864_v17 }
 0x4ba   :  { %v4308_v20 = vpop.f32.mrf.mxu1 }
 0x4bc   :  { %v1088_v35 = vpop.f32.mrf.mxu1 }
 0x4be   :  { %v4309_v37 = vpop.f32.mrf.mxu1 }
 0x4bf   :  { %v1152_v11 = vpack.c.bf16 %v4309_v37, %v4308_v20 }
 0x4c0   :  { %v1091_v9 = vpop.f32.mrf.mxu1 }
 0x4c1   :  { %v1151_v10 = vpack.c.bf16 %v1091_v9, %v1088_v35 }
 0x4c2   :  { %v4312_v12 = vpop.f32.mrf.mxu1 }
 0x4c3   :  { %4338 = vmatprep.mubr.bf16.mxu0 %v1151_v10 }
 0x4c4   :  { %v1104_v63 = vpop.f32.mrf.mxu1  ;;  %4339 = vmatmul.mubr.bf16.vlgmr.msra.gmra.mxu0 %v1152_v11 }
 0x4c5   :  { %4387 = vmatpush3.bf16.msra.mxu0 %v4874_v29 }
 0x4c6   :  { %v4313_v0 = vpop.f32.mrf.mxu1  ;;  %4388 = vmatprep.subr.bf16.mxu0 %v4876_v30 }
 0x4c7   :  { %v1154_v2 = vpack.c.bf16 %v4313_v0, %v4312_v12 }
 0x4c8   :  { %v1107_v1 = vpop.f32.mrf.mxu1 }
 0x4c9   :  { %v1153_v13 = vpack.c.bf16 %v1107_v1, %v1104_v63  ;;  %4389 = vmatpush3.bf16.msra.mxu0 %v4876_v30  ;;  %v4865_v30 = vld [vmem:[#allocation8 + $0x8] sm:$0xff]  }
 0x4ca   :  { %v4316_v14 = vpop.f32.mrf.mxu1  ;;  %4390 = vmatprep.subr.bf16.mxu0 %v4878_v31 }
 0x4cb   :  { %4342 = vmatprep.mubr.bf16.mxu0 %v1153_v13 }
 0x4cc   :  { %v1120_v3 = vpop.f32.mrf.mxu1  ;;  %4343 = vmatmul.mubr.bf16.gmra.mxu0 %v1154_v2 }
 0x4cd   :  { %4391 = vmatpush3.bf16.msra.mxu0 %v4878_v31  ;;  %v4866_v31 = vld [vmem:[#allocation8 + $0x10] sm:$0xff]  }
 0x4ce   :  { %v4317_v4 = vpop.f32.mrf.mxu1  ;;  %4392 = vmatprep.subr.bf16.mxu0 %v4880_v18 }
 0x4cf   :  { %v1156_v16 = vpack.c.bf16 %v4317_v4, %v4316_v14 }
 0x4d0   :  { %v1123_v5 = vpop.f32.mrf.mxu1 }
 0x4d1   :  { %v1155_v15 = vpack.c.bf16 %v1123_v5, %v1120_v3  ;;  %4393 = vmatpush3.bf16.msra.mxu0 %v4880_v18  ;;  %v4867_v18 = vld [vmem:[#allocation8 + $0x18] sm:$0xff]  }
 0x4d2   :  { %v4320_v23 = vpop.f32.mrf.mxu1  ;;  %4394 = vmatprep.subr.bf16.mxu0 %v4882_v32 }
 0x4d3   :  { %4346 = vmatprep.mubr.bf16.mxu0 %v1155_v15 }
 0x4d4   :  { %v1136_v24 = vpop.f32.mrf.mxu1  ;;  %4347 = vmatmul.mubr.bf16.gmra.mxu0 %v1156_v16 }
 0x4d5   :  { %4395 = vmatpush3.bf16.msra.mxu0 %v4882_v32  ;;  %v4868_v32 = vld [vmem:[#allocation8 + $0x20] sm:$0xff]  }
 0x4d6   :  { %v4321_v25 = vpop.f32.mrf.mxu1  ;;  %4396 = vmatprep.subr.bf16.mxu0 %v4884_v19 }
 0x4d7   :  { %v1158_v28 = vpack.c.bf16 %v4321_v25, %v4320_v23 }
 0x4d8   :  { %v1139_v26 = vpop.f32.mrf.mxu1 }
 0x4d9   :  { %v1157_v27 = vpack.c.bf16 %v1139_v26, %v1136_v24  ;;  %4397 = vmatpush3.bf16.msra.mxu0 %v4884_v19  ;;  %v4877_v19 = vld [vmem:[#allocation22 + $0x20] sm:$0xff]  }
 0x4db   :  { %4350 = vmatprep.mubr.bf16.mxu0 %v1157_v27 }
 0x4dc   :  { %4351 = vmatmul.mubr.bf16.gmra.mxu0 %v1158_v28 }
 0x584   :  { %v4340_v33 = vpop.f32.mrf.mxu0 }
 0x585   :  { %v1258_v24 = vadd.f32 %v4340_v33, %v5799_v58  ;;  %v4872_v58 = vld [vmem:[#allocation22 + $0x38] sm:$0xff]  }
 0x586   :  { %v1193_v34 = vpop.f32.mrf.mxu0  ;;  %v4879_v33 = vld [vmem:[#allocation22 + $0x18] sm:$0xff]  }
 0x587   :  { %v1256_v28 = vadd.f32 %v1193_v34, %v5805_v61  ;;  %v4875_v61 = vld [vmem:[#allocation22 + $0x28] sm:$0xff]   ;;  %v4869_v34 = vld [vmem:[#allocation8 + $0x28] sm:$0xff]  }
 0x588   :  { %v4341_v48 = vpop.f32.mrf.mxu0 }
 0x58a   :  { %v1196_v51 = vpop.f32.mrf.mxu0 }
 0x58b   :  { %v1257_v26 = vadd.f32 %v1196_v51, %v5801_v59  ;;  %v4873_v59 = vld [vmem:[#allocation22 + $0x30] sm:$0xff]  }
 0x58c   :  { %v4344_v54 = vpop.f32.mrf.mxu0  ;;  %v4881_v51 = vld [vmem:[#allocation22 + $0x10] sm:$0xff]  }
 0x58d   :  { %v1273_v17 = vmax.f32 %v1257_v26, 0.0 }
 0x58e   :  { %v1209_v43 = vpop.f32.mrf.mxu0 }
 0x58f   :  { %v1260_v16 = vadd.f32 %v1209_v43, %v5793_v55  ;;  %v4871_v43 = vld [vmem:[#allocation8 + $0x38] sm:$0xff]  }
 0x590   :  { %v4345_v57 = vpop.f32.mrf.mxu0 }
 0x591   :  { %v1276_v25 = vmax.f32 %v1260_v16, 0.0 }
 0x592   :  { %v1212_v22 = vpop.f32.mrf.mxu0 }
 0x593   :  { %v1261_v5 = vadd.f32 %v1212_v22, %v5789_v53  ;;  %v1274_v53 = vmax.f32 %v1258_v24, 0.0  ;;  %v4886_v22 = vld [vmem:[#allocation23 + $0x8] sm:$0xff]  }
 0x594   :  { %v4348_v40 = vpop.f32.mrf.mxu0  ;;  %4398 = vmatprep.subr.bf16.mxu0 %v4886_v22 }
 0x595   :  { %v1266_v12 = vadd.f32 %v4348_v40, %v5775_v46  ;;  %v4887_v40 = vld [vmem:[#allocation5] sm:$0xff]   ;;  %4399 = vmatpush3.bf16.msra.mxu0 %v4886_v22 }
 0x596   :  { %v1225_v60 = vpop.f32.mrf.mxu0 }
 0x598   :  { %v4349_v62 = vpop.f32.mrf.mxu0 }
 0x599   :  { %v1267_v37 = vadd.f32 %v4349_v62, %v5771_v44  ;;  %v1263_v44 = vadd.f32 %v4345_v57, %v5783_v50  ;;  %v1277_v50 = vmax.f32 %v1261_v5, 0.0  ;;  %v4885_v57 = vld [vmem:[#allocation22] sm:$0xff]  }
 0x59a   :  { %v1228_v45 = vpop.f32.mrf.mxu0  ;;  %v4889_v62 = vld [vmem:[#allocation23] sm:$0xff]  }
 0x59b   :  { %v1283_v13 = vmax.f32 %v1267_v37, 0.0  ;;  %v1279_v4 = vmax.f32 %v1263_v44, 0.0  ;;  %v1290_v27 = vpack.c.bf16 %v1277_v50, %v1276_v25  ;;  %4400 = vmatprep.subr.bf16.mxu0 %v4889_v62  ;;  %v4898_v37 = vld [vmem:[#allocation25 + $0x18] sm:$0xff]  }
 0x59c   :  { %v4352_v8 = vpop.f32.mrf.mxu0  ;;  %4401 = vmatpush3.bf16.msra.mxu0 %v4889_v62  ;;  %v4911_v44 = vld [vmem:[#allocation11 + $0x38] sm:$0xff]  }
 0x59d   :  { %v1270_v6 = vadd.f32 %v4352_v8, %v5761_v38  ;;  %v1265_v38 = vadd.f32 %v1228_v45, %v5777_v47  ;;  %v4890_v45 = vld [vmem:[#allocation25 + $0x38] sm:$0xff]   ;;  %v4891_v8 = vld [vmem:[#allocation5 + $0x10] sm:$0xff]  }
 0x59e   :  { %v1241_v21 = vpop.f32.mrf.mxu0 }
 0x59f   :  { %v1268_v7 = vadd.f32 %v1241_v21, %v5765_v41  ;;  %v1286_v9 = vmax.f32 %v1270_v6, 0.0  ;;  %v1282_v41 = vmax.f32 %v1266_v12, 0.0  ;;  %v1281_v3 = vmax.f32 %v1265_v38, 0.0  ;;  %v4892_v21 = vld [vmem:[#allocation25 + $0x30] sm:$0xff]   ;;  %v4902_v12 = vld [vmem:[#allocation25 + $0x8] sm:$0xff]  }
 0x5a0   :  { %v4353_v36 = vpop.f32.mrf.mxu0  ;;  %v4893_v6 = vld [vmem:[#allocation5 + $0x18] sm:$0xff]  }
 0x5a1   :  { %v1271_v20 = vadd.f32 %v4353_v36, %v5763_v39  ;;  %v1284_v63 = vmax.f32 %v1268_v7, 0.0  ;;  %v1264_v39 = vadd.f32 %v1225_v60, %v5781_v49  ;;  %v1293_v14 = vpack.c.bf16 %v1283_v13, %v1282_v41  ;;  %v4888_v60 = vld [vmem:[#allocation5 + $0x8] sm:$0xff]   ;;  %v4894_v36 = vld [vmem:[#allocation25 + $0x28] sm:$0xff]   ;;  %v4895_v7 = vld [vmem:[#allocation5 + $0x20] sm:$0xff]  }
 0x5a2   :  { %v1244_v35 = vpop.f32.mrf.mxu0  ;;  %v1259_v49 = vadd.f32 %v4341_v48, %v5795_v56  ;;  %v1272_v56 = vmax.f32 %v1256_v28, 0.0  ;;  %v4870_v48 = vld [vmem:[#allocation8 + $0x30] sm:$0xff]   ;;  %v4907_v38 = vld [vmem:[#allocation11 + $0x18] sm:$0xff]  }
 0x5a3   :  { %v1287_v10 = vmax.f32 %v1271_v20, 0.0  ;;  %v1269_v11 = vadd.f32 %v1244_v35, %v5767_v42  ;;  %v1262_v42 = vadd.f32 %v4344_v54, %v5787_v52  ;;  %v1280_v46 = vmax.f32 %v1264_v39, 0.0  ;;  %v4883_v54 = vld [vmem:[#allocation22 + $0x8] sm:$0xff]   ;;  %v4896_v20 = vld [vmem:[#allocation25 + $0x20] sm:$0xff]  }
 0x5a4   :  { %v1275_v52 = vmax.f32 %v1259_v49, 0.0  ;;  %v1288_v29 = vpack.c.bf16 %v1273_v17, %v1272_v56  ;;  %v4897_v35 = vld [vmem:[#allocation5 + $0x28] sm:$0xff]   ;;  %v4906_v13 = vld [vmem:[#allocation11 + $0x10] sm:$0xff]  }
 0x5a5   :  { %v1295_v0 = vpack.c.bf16 %v1287_v10, %v1286_v9  ;;  %v1285_v1 = vmax.f32 %v1269_v11, 0.0  ;;  %v1292_v47 = vpack.c.bf16 %v1281_v3, %v1280_v46  ;;  %v1278_v15 = vmax.f32 %v1262_v42, 0.0  ;;  %v4899_v9 = vld [vmem:[#allocation5 + $0x30] sm:$0xff]   ;;  %v4900_v10 = vld [vmem:[#allocation25 + $0x10] sm:$0xff]  }
 0x5a6   :  { %v1289_v55 = vpack.c.bf16 %v1275_v52, %v1274_v53  ;;  %v4901_v11 = vld [vmem:[#allocation5 + $0x38] sm:$0xff]   ;;  %v4909_v41 = vld [vmem:[#allocation11 + $0x28] sm:$0xff]  }
 0x5a7   :  { %v1294_v2 = vpack.c.bf16 %v1285_v1, %v1284_v63  ;;  %4354 = vmatprep.subr.bf16.mxu1 %v1295_v0  ;;  %v1291_v23 = vpack.c.bf16 %v1279_v4, %v1278_v15  ;;  %v4903_v63 = vld [vmem:[#allocation25] sm:$0xff]   ;;  %v4910_v39 = vld [vmem:[#allocation11 + $0x30] sm:$0xff]  }
 0x5a8   :  { %4355 = vmatpush3.bf16.msra.mxu1 %v1295_v0  ;;  %v4904_v0 = vld [vmem:[#allocation11] sm:$0xff]   ;;  %v4905_v1 = vld [vmem:[#allocation11 + $0x8] sm:$0xff]  }
 0x5a9   :  { %4356 = vmatprep.subr.bf16.mxu1 %v1294_v2 }
 0x5ac   :  { %4357 = vmatpush3.bf16.msra.mxu1 %v1294_v2  ;;  %v4908_v2 = vld [vmem:[#allocation11 + $0x20] sm:$0xff]  }
 0x5ad   :  { %4358 = vmatprep.subr.bf16.mxu1 %v1293_v14 }
 0x5b0   :  { %4359 = vmatpush3.bf16.msra.mxu1 %v1293_v14 }
 0x5b1   :  { %4360 = vmatprep.subr.bf16.mxu1 %v1292_v47 }
 0x5b4   :  { %4361 = vmatpush3.bf16.msra.mxu1 %v1292_v47 }
 0x5b5   :  { %4362 = vmatprep.subr.bf16.mxu1 %v1291_v23 }
 0x5b8   :  { %4363 = vmatpush3.bf16.msra.mxu1 %v1291_v23 }
 0x5b9   :  { %4364 = vmatprep.subr.bf16.mxu1 %v1290_v27 }
 0x5bc   :  { %4365 = vmatpush3.bf16.msra.mxu1 %v1290_v27 }
 0x5bd   :  { %4366 = vmatprep.subr.bf16.mxu1 %v1289_v55 }
 0x5c0   :  { %4367 = vmatpush3.bf16.msra.mxu1 %v1289_v55 }
 0x5c1   :  { %4368 = vmatprep.subr.bf16.mxu1 %v1288_v29 }
 0x5c4   :  { %4369 = vmatpush3.bf16.msra.mxu1 %v1288_v29 }
 0x5c5   :  { %4418 = vmatprep.subr.bf16.mxu1 %v4872_v58 }
 0x5c7   :  { %4371 = vmatmul.mubr.bf16.vlgmr.msra.gmra.mxu1 %v4865_v30  ;;  %v5471_v30 = vmov 0.0  }
 0x5c8   :  { %4374 = vmatprep.mubr.bf16.mxu1 %v4866_v31  ;;  %4419 = vmatpush3.bf16.msra.mxu1 %v4872_v58 }
 0x5c9   :  { %4420 = vmatprep.subr.bf16.mxu1 %v4873_v59  ;;  %4450 = vmatprep.subr.bf16.mxu0 %v5471_v30 }
 0x5cc   :  { %4421 = vmatpush3.bf16.msra.mxu1 %v4873_v59 }
 0x5cd   :  { %4422 = vmatprep.subr.bf16.mxu1 %v4875_v61 }
 0x5cf   :  { %4375 = vmatmul.mubr.bf16.gmra.mxu1 %v4867_v18 }
 0x5d0   :  { %4378 = vmatprep.mubr.bf16.mxu1 %v4868_v32  ;;  %4423 = vmatpush3.bf16.msra.mxu1 %v4875_v61 }
 0x5d1   :  { %4424 = vmatprep.subr.bf16.mxu1 %v4877_v19 }
 0x5d4   :  { %4425 = vmatpush3.bf16.msra.mxu1 %v4877_v19 }
 0x5d5   :  { %4426 = vmatprep.subr.bf16.mxu1 %v4879_v33 }
 0x5d7   :  { %4379 = vmatmul.mubr.bf16.gmra.mxu1 %v4869_v34 }
 0x5d8   :  { %4382 = vmatprep.mubr.bf16.mxu1 %v4870_v48  ;;  %4427 = vmatpush3.bf16.msra.mxu1 %v4879_v33 }
 0x5d9   :  { %4428 = vmatprep.subr.bf16.mxu1 %v4881_v51 }
 0x5dc   :  { %4429 = vmatpush3.bf16.msra.mxu1 %v4881_v51 }
 0x5dd   :  { %4430 = vmatprep.subr.bf16.mxu1 %v4883_v54 }
 0x5df   :  { %4383 = vmatmul.mubr.bf16.gmra.mxu1 %v4871_v43 }
 0x5e0   :  { %4431 = vmatpush3.bf16.msra.mxu1 %v4883_v54  ;;  %4434 = vmatprep.mubr.bf16.mxu1 %v4887_v40 }
 0x5e1   :  { %4432 = vmatprep.subr.bf16.mxu1 %v4885_v57 }
 0x5e4   :  { %4433 = vmatpush3.bf16.msra.mxu1 %v4885_v57 }
 0x5e5   :  { %4470 = vmatprep.subr.bf16.mxu1 %v4890_v45 }
 0x5e7   :  { %4435 = vmatmul.mubr.bf16.vlgmr.msra.gmra.mxu1 %v4888_v60 }
 0x5e8   :  { %4471 = vmatpush3.bf16.msra.mxu1 %v4890_v45  ;;  %4438 = vmatprep.mubr.bf16.mxu1 %v4891_v8 }
 0x5e9   :  { %4472 = vmatprep.subr.bf16.mxu1 %v4892_v21 }
 0x5ec   :  { %4473 = vmatpush3.bf16.msra.mxu1 %v4892_v21 }
 0x5ed   :  { %4474 = vmatprep.subr.bf16.mxu1 %v4894_v36 }
 0x5ef   :  { %4439 = vmatmul.mubr.bf16.gmra.mxu1 %v4893_v6 }
 0x5f0   :  { %4475 = vmatpush3.bf16.msra.mxu1 %v4894_v36  ;;  %4442 = vmatprep.mubr.bf16.mxu1 %v4895_v7 }
 0x5f1   :  { %4476 = vmatprep.subr.bf16.mxu1 %v4896_v20 }
 0x5f4   :  { %4477 = vmatpush3.bf16.msra.mxu1 %v4896_v20 }
 0x5f5   :  { %4478 = vmatprep.subr.bf16.mxu1 %v4898_v37 }
 0x5f7   :  { %4443 = vmatmul.mubr.bf16.gmra.mxu1 %v4897_v35 }
 0x5f8   :  { %4479 = vmatpush3.bf16.msra.mxu1 %v4898_v37  ;;  %4446 = vmatprep.mubr.bf16.mxu1 %v4899_v9 }
 0x5f9   :  { %4480 = vmatprep.subr.bf16.mxu1 %v4900_v10 }
 0x5fc   :  { %4481 = vmatpush3.bf16.msra.mxu1 %v4900_v10 }
 0x5fd   :  { %4482 = vmatprep.subr.bf16.mxu1 %v4902_v12 }
 0x5ff   :  { %4447 = vmatmul.mubr.bf16.gmra.mxu1 %v4901_v11 }
 0x600   :  { %4483 = vmatpush3.bf16.msra.mxu1 %v4902_v12  ;;  %4486 = vmatprep.mubr.bf16.mxu1 %v4904_v0 }
 0x601   :  { %4484 = vmatprep.subr.bf16.mxu1 %v4903_v63 }
 0x604   :  { %4485 = vmatpush3.bf16.msra.mxu1 %v4903_v63 }
 0x607   :  { %4487 = vmatmul.mubr.bf16.vlgmr.msra.gmra.mxu1 %v4905_v1 }
 0x608   :  { %4490 = vmatprep.mubr.bf16.mxu1 %v4906_v13 }
 0x60f   :  { %4491 = vmatmul.mubr.bf16.gmra.mxu1 %v4907_v38 }
 0x610   :  { %4494 = vmatprep.mubr.bf16.mxu1 %v4908_v2 }
 0x617   :  { %4495 = vmatmul.mubr.bf16.gmra.mxu1 %v4909_v41 }
 0x618   :  { %4498 = vmatprep.mubr.bf16.mxu1 %v4910_v39 }
 0x61f   :  { %4499 = vmatmul.mubr.bf16.gmra.mxu1 %v4911_v44  ;;  %v5924_v44 = vld [vmem:[%s6206_s16] ss:$0 sm:$0xff] }
 0x687   :  { %v4372_v14 = vpop.f32.mrf.mxu1 }
 0x689   :  { %v1378_v3 = vpop.f32.mrf.mxu1 }
 0x68b   :  { %v4373_v42 = vpop.f32.mrf.mxu1 }
 0x68c   :  { %v1442_v5 = vpack.c.bf16 %v4373_v42, %v4372_v14 }
 0x68d   :  { %v1381_v46 = vpop.f32.mrf.mxu1 }
 0x68e   :  { %v1441_v4 = vpack.c.bf16 %v1381_v46, %v1378_v3 }
 0x68f   :  { %v4376_v47 = vpop.f32.mrf.mxu1 }
 0x690   :  { %4402 = vmatprep.mubr.bf16.mxu0 %v1441_v4 }
 0x691   :  { %v1394_v15 = vpop.f32.mrf.mxu1  ;;  %4403 = vmatmul.mubr.bf16.vlgmr.msra.gmra.mxu0 %v1442_v5 }
 0x693   :  { %v4377_v16 = vpop.f32.mrf.mxu1 }
 0x694   :  { %v1444_v50 = vpack.c.bf16 %v4377_v16, %v4376_v47 }
 0x695   :  { %v1397_v49 = vpop.f32.mrf.mxu1 }
 0x696   :  { %v1443_v23 = vpack.c.bf16 %v1397_v49, %v1394_v15 }
 0x697   :  { %v4380_v24 = vpop.f32.mrf.mxu1 }
 0x698   :  { %4406 = vmatprep.mubr.bf16.mxu0 %v1443_v23 }
 0x699   :  { %v1410_v25 = vpop.f32.mrf.mxu1  ;;  %4407 = vmatmul.mubr.bf16.gmra.mxu0 %v1444_v50 }
 0x69b   :  { %v4381_v52 = vpop.f32.mrf.mxu1 }
 0x69c   :  { %v1446_v53 = vpack.c.bf16 %v4381_v52, %v4380_v24 }
 0x69d   :  { %v1413_v26 = vpop.f32.mrf.mxu1 }
 0x69e   :  { %v1445_v27 = vpack.c.bf16 %v1413_v26, %v1410_v25 }
 0x69f   :  { %v4384_v28 = vpop.f32.mrf.mxu1 }
 0x6a0   :  { %4410 = vmatprep.mubr.bf16.mxu0 %v1445_v27 }
 0x6a1   :  { %v1426_v55 = vpop.f32.mrf.mxu1  ;;  %4411 = vmatmul.mubr.bf16.gmra.mxu0 %v1446_v53 }
 0x6a3   :  { %v4385_v17 = vpop.f32.mrf.mxu1 }
 0x6a4   :  { %v1448_v58 = vpack.c.bf16 %v4385_v17, %v4384_v28 }
 0x6a5   :  { %v1429_v56 = vpop.f32.mrf.mxu1 }
 0x6a6   :  { %v1447_v29 = vpack.c.bf16 %v1429_v56, %v1426_v55 }
 0x6a7   :  { %v5883_v31 = vpop.f32.mrf.mxu1 }
 0x6a8   :  { %4414 = vmatprep.mubr.bf16.mxu0 %v1447_v29 }
 0x6a9   :  { %4415 = vmatmul.mubr.bf16.gmra.mxu0 %v1448_v58  ;;  %v5887_v59 = vpop.f32.mrf.mxu1 }
 0x6aa   :  { %4466 = vmatprep.mubr.msk.bf16.mxu0 %vm5472_vm0, %v5471_v30 }
 0x6ab   :  { %v5889_v61 = vpop.f32.mrf.mxu1 }
 0x6ad   :  { %v5891_v18 = vpop.f32.mrf.mxu1 }
 0x6af   :  { %v5893_v32 = vpop.f32.mrf.mxu1 }
 0x6b1   :  { %v5895_v19 = vpop.f32.mrf.mxu1 }
 0x6b3   :  { %v4441_v33 = vpop.f32.mrf.mxu1 }
 0x6b5   :  { %v5897_v34 = vpop.f32.mrf.mxu1 }
 0x6b7   :  { %v4444_v48 = vpop.f32.mrf.mxu1 }
 0x6b9   :  { %v1756_v51 = vpop.f32.mrf.mxu1 }
 0x6bb   :  { %v4445_v54 = vpop.f32.mrf.mxu1 }
 0x6bd   :  { %v1759_v43 = vpop.f32.mrf.mxu1 }
 0x6bf   :  { %v4448_v57 = vpop.f32.mrf.mxu1 }
 0x6c1   :  { %v1772_v22 = vpop.f32.mrf.mxu1 }
 0x6c3   :  { %v4449_v40 = vpop.f32.mrf.mxu1 }
 0x6c5   :  { %v1775_v60 = vpop.f32.mrf.mxu1 }
 0x6c7   :  { %v5901_v45 = vpop.f32.mrf.mxu1 }
 0x6c9   :  { %v5907_v6 = vpop.f32.mrf.mxu1 }
 0x6cb   :  { %v5911_v20 = vpop.f32.mrf.mxu1 }
 0x6cd   :  { %v5913_v9 = vpop.f32.mrf.mxu1 }
 0x6cf   :  { %v5915_v12 = vpop.f32.mrf.mxu1 }
 0x6d1   :  { %v5917_v1 = vpop.f32.mrf.mxu1 }
 0x6d3   :  { %v5919_v41 = vpop.f32.mrf.mxu1 }
 0x6d5   :  { %v5927_v4 = vpop.f32.mrf.mxu1 }
 0x6d7   :  { %v5932_v52 = vpop.f32.mrf.mxu1 }
 0x6d9   :  { %v5936_v29 = vpop.f32.mrf.mxu1 }
 0x751   :  { %v5899_v62 = vpop.f32.mrf.mxu0 }
 0x753   :  { %v5903_v8 = vpop.f32.mrf.mxu0 }
 0x755   :  { %v5905_v21 = vpop.f32.mrf.mxu0 }
 0x757   :  { %v5909_v36 = vpop.f32.mrf.mxu0 }
 0x759   :  { %v4408_v7 = vpop.f32.mrf.mxu0 }
 0x75b   :  { %v1547_v35 = vpop.f32.mrf.mxu0 }
 0x75d   :  { %v4409_v37 = vpop.f32.mrf.mxu0 }
 0x75e   :  { %v1752_v58 = vadd.f32 %v4441_v33, %v4409_v37  ;;  %v1741_v37 = vadd.f32 %v5895_v19, %v1547_v35 }
 0x75f   :  { %v1550_v10 = vpop.f32.mrf.mxu0 }
 0x761   :  { %v4412_v11 = vpop.f32.mrf.mxu0 }
 0x762   :  { %v1765_v49 = vadd.f32 %v4444_v48, %v4412_v11  ;;  %v1744_v11 = vadd.f32 %v5897_v34, %v1550_v10  ;;  %v1733_v34 = vadd.f32 %v5883_v31, %v5899_v62 }
 0x763   :  { %v1563_v63 = vpop.f32.mrf.mxu0 }
 0x764   :  { %v1803_v55 = vadd.f32 %v5924_v44, %v1765_v49  ;;  %v1757_v17 = vadd.f32 %v1756_v51, %v1563_v63  ;;  %v1800_v51 = vadd.f32 %v5924_v44, %v1752_v58  ;;  %v5984_v58 = vmax.f32 %v5936_v29, 0.0 }
 0x765   :  { %v4413_v0 = vpop.f32.mrf.mxu0  ;;  %v5999_v29 = vmax.f32 %v5917_v1, 0.0  ;;  %v6015_v1 = vmax.f32 %v5907_v6, 0.0  ;;  %v6030_v6 = vld [vmem:[#allocation14 + $0x18] sm:$0xff]  }
 0x766   :  { %v1768_v47 = vadd.f32 %v4445_v54, %v4413_v0 }
 0x767   :  { %v1566_v13 = vpop.f32.mrf.mxu0 }
 0x768   :  { %v1804_v26 = vadd.f32 %v5924_v44, %v1768_v47  ;;  %v1760_v27 = vadd.f32 %v1759_v43, %v1566_v13  ;;  %v1801_v43 = vadd.f32 %v5924_v44, %v1757_v17 }
 0x769   :  { %v4416_v38 = vpop.f32.mrf.mxu0 }
 0x76a   :  { %v1781_v2 = vadd.f32 %v4448_v57, %v4416_v38  ;;  %v1820_v48 = vmax.f32 %v1804_v26, 0.0  ;;  %v1802_v54 = vadd.f32 %v5924_v44, %v1760_v27  ;;  %v1817_v13 = vmax.f32 %v1801_v43, 0.0 }
 0x76b   :  { %v1579_v39 = vpop.f32.mrf.mxu0  ;;  %v1816_v38 = vmax.f32 %v1800_v51, 0.0 }
 0x76c   :  { %v1807_v3 = vadd.f32 %v5924_v44, %v1781_v2  ;;  %v1773_v42 = vadd.f32 %v1772_v22, %v1579_v39  ;;  %v1749_v22 = vadd.f32 %v5893_v32, %v4408_v7  ;;  %v1818_v0 = vmax.f32 %v1802_v54, 0.0 }
 0x76d   :  { %v4417_v14 = vpop.f32.mrf.mxu0  ;;  %v1736_v7 = vadd.f32 %v5889_v61, %v5905_v21  ;;  %v1798_v2 = vadd.f32 %v5924_v44, %v1744_v11  ;;  %v6026_v11 = vld [vmem:[#allocation14 + $0x10] sm:$0xff]  }
 0x76e   :  { %v1784_v46 = vadd.f32 %v4449_v40, %v4417_v14  ;;  %v1823_v23 = vmax.f32 %v1807_v3, 0.0  ;;  %v1805_v50 = vadd.f32 %v5924_v44, %v1773_v42  ;;  %v1819_v40 = vmax.f32 %v1803_v55, 0.0 }
 0x76f   :  { %v1582_v5 = vpop.f32.mrf.mxu0  ;;  %v1799_v33 = vadd.f32 %v5924_v44, %v1749_v22  ;;  %v1829_v39 = vpack.c.bf16 %v1818_v0, %v1817_v13  ;;  %v1797_v14 = vadd.f32 %v5924_v44, %v1741_v37  ;;  %v1796_v35 = vadd.f32 %v5924_v44, %v1736_v7  ;;  %v6038_v0 = vld [vmem:[#allocation14 + $0x30] sm:$0xff]   ;;  %v4920_v37 = vld [vmem:[#allocation26 + $0x38] sm:$0xff]   ;;  %v4923_v7 = vld [vmem:[#allocation26 + $0x20] sm:$0xff]  }
 0x770   :  { %v1808_v15 = vadd.f32 %v5924_v44, %v1784_v46  ;;  %v1776_v16 = vadd.f32 %v1775_v60, %v1582_v5  ;;  %v1821_v56 = vmax.f32 %v1805_v50, 0.0  ;;  %v4497_v60 = vpop.f32.mrf.mxu1  ;;  %v1830_v63 = vpack.c.bf16 %v1820_v48, %v1819_v40  ;;  %v4921_v13 = vld [vmem:[#allocation26 + $0x30] sm:$0xff]   ;;  %4534 = vmatprep.subr.bf16.mxu1 %v4920_v37 }
 0x771   :  { %v1815_v10 = vmax.f32 %v1799_v33, 0.0  ;;  %v1728_v3 = vadd.f32 %v5891_v18, %v5909_v36  ;;  %v1814_v21 = vmax.f32 %v1798_v2, 0.0  ;;  %v1795_v42 = vadd.f32 %v5924_v44, %v1733_v34  ;;  %v6042_v33 = vld [vmem:[#allocation14 + $0x38] sm:$0xff]   ;;  %4535 = vmatpush3.bf16.msra.mxu1 %v4920_v37  ;;  %v4927_v34 = vld [vmem:[#allocation26] sm:$0xff]  }
 0x772   :  { %v1824_v24 = vmax.f32 %v1808_v15, 0.0  ;;  %v1806_v25 = vadd.f32 %v5924_v44, %v1776_v16  ;;  %v2170_v32 = vpop.f32.mrf.mxu1  ;;  %v1725_v46 = vadd.f32 %v5887_v59, %v5903_v8  ;;  %v1813_v31 = vmax.f32 %v1797_v14, 0.0  ;;  %4536 = vmatprep.subr.bf16.mxu1 %v4921_v13  ;;  %v4925_v2 = vld [vmem:[#allocation26 + $0x10] sm:$0xff]  }
 0x773   :  { %v1828_v61 = vpack.c.bf16 %v1816_v38, %v1815_v10  ;;  %v1812_v5 = vmax.f32 %v1796_v35, 0.0  ;;  %v1794_v47 = vadd.f32 %v5924_v44, %v1728_v3  ;;  %v1811_v16 = vmax.f32 %v1795_v42, 0.0  ;;  %v4924_v38 = vld [vmem:[#allocation26 + $0x18] sm:$0xff]  }
 0x774   :  { %v1832_v53 = vpack.c.bf16 %v1824_v24, %v1823_v23  ;;  %v1822_v28 = vmax.f32 %v1806_v25, 0.0  ;;  %v4500_v19 = vpop.f32.mrf.mxu1  ;;  %v1827_v15 = vpack.c.bf16 %v1814_v21, %v1813_v31  ;;  %v1793_v49 = vadd.f32 %v5924_v44, %v1725_v46 }
 0x775   :  { %v1826_v36 = vpack.c.bf16 %v1812_v5, %v1811_v16  ;;  %v1810_v23 = vmax.f32 %v1794_v47, 0.0  ;;  %v5965_v50 = vmax.f32 %v4500_v19, 0.0  ;;  %v5977_v55 = vmax.f32 %v5932_v52, 0.0  ;;  %4537 = vmatpush3.bf16.msra.mxu1 %v4921_v13 }
 0x776   :  { %4451 = vmatpush3.bf16.msra.mxu0 %v1832_v53  ;;  %v1831_v57 = vpack.c.bf16 %v1822_v28, %v1821_v56  ;;  %v2183_v62 = vpop.f32.mrf.mxu1  ;;  %v1809_v8 = vmax.f32 %v1793_v49, 0.0  ;;  %v432_v53 = vld [vmem:[#allocation10] sm:$0xf]  ;;  %v4912_v28 = vld [vmem:[#allocation14] sm:$0xff]   ;;  %v5979_v17 = vmax.f32 %v4497_v60, 0.0  ;;  %v5986_v48 = vmax.f32 %v2170_v32, 0.0 }
 0x777   :  { %4452 = vmatprep.subr.bf16.mxu0 %v5471_v30  ;;  %v5970_v26 = vmax.f32 %v2183_v62, 0.0  ;;  %v5991_v52 = vmax.f32 %v5915_v12, 0.0  ;;  %v6002_v40 = vmax.f32 %v5927_v4, 0.0  ;;  %v6007_v12 = vmax.f32 %v5901_v45, 0.0  ;;  %v4922_v32 = vld [vmem:[#allocation26 + $0x28] sm:$0xff]  }
 0x778   :  { %v4501_v18 = vpop.f32.mrf.mxu1  ;;  %v1825_v25 = vpack.c.bf16 %v1810_v23, %v1809_v8  ;;  %v2219_v54 = vpack.c.bf16 %v5979_v17, %v5977_v55  ;;  %v2218_v22 = vpack.c.bf16 %v5986_v48, %v5984_v58  ;;  %v6018_v4 = vmax.f32 %v5913_v9, 0.0  ;;  %v6032_v9 = vld [vmem:[#allocation14 + $0x20] sm:$0xff]   ;;  %4538 = vmatprep.subr.bf16.mxu1 %v4922_v32 }
 0x779   :  { %v5967_v59 = vmax.f32 %v4501_v18, 0.0  ;;  %v2216_v60 = vpack.c.bf16 %v6002_v40, %v5999_v29  ;;  %4539 = vmatpush3.bf16.msra.mxu1 %v4922_v32 }
 0x77a   :  { %4453 = vmatpush3.bf16.msra.mxu0 %v1831_v57  ;;  %v2186_v24 = vpop.f32.mrf.mxu1  ;;  %v5994_v57 = vmax.f32 %v5919_v41, 0.0  ;;  %v6010_v41 = vmax.f32 %v5911_v20, 0.0  ;;  %v2214_v45 = vpack.c.bf16 %v6018_v4, %v6015_v1  ;;  %v6024_v20 = vld [vmem:[#allocation14 + $0x8] sm:$0xff]   ;;  %4540 = vmatprep.subr.bf16.mxu1 %v4923_v7 }
 0x77b   :  { %4454 = vmatprep.subr.bf16.mxu0 %v5471_v30  ;;  %v5972_v27 = vmax.f32 %v2186_v24, 0.0  ;;  %v2221_v44 = vpack.c.bf16 %v5967_v59, %v5965_v50 }
 0x77c   :  { %v2217_v43 = vpack.c.bf16 %v5994_v57, %v5991_v52  ;;  %v2215_v51 = vpack.c.bf16 %v6010_v41, %v6007_v12 }
 0x77d   :  { %v2220_v56 = vpack.c.bf16 %v5972_v27, %v5970_v26  ;;  %4541 = vmatpush3.bf16.msra.mxu1 %v4923_v7 }
 0x77e   :  { %4455 = vmatpush3.bf16.msra.mxu0 %v1830_v63  ;;  %v6036_v63 = vld [vmem:[#allocation14 + $0x28] sm:$0xff]   ;;  %4542 = vmatprep.subr.bf16.mxu1 %v4924_v38 }
 0x77f   :  { %4456 = vmatprep.subr.bf16.mxu0 %v5471_v30 }
 0x781   :  { %4543 = vmatpush3.bf16.msra.mxu1 %v4924_v38 }
 0x782   :  { %4457 = vmatpush3.bf16.msra.mxu0 %v1829_v39  ;;  %4544 = vmatprep.subr.bf16.mxu1 %v4925_v2  ;;  %v4926_v39 = vld [vmem:[#allocation26 + $0x8] sm:$0xff]  }
 0x783   :  { %4458 = vmatprep.subr.bf16.mxu0 %v5471_v30 }
 0x785   :  { %4545 = vmatpush3.bf16.msra.mxu1 %v4925_v2 }
 0x786   :  { %4459 = vmatpush3.bf16.msra.mxu0 %v1828_v61  ;;  %4546 = vmatprep.subr.bf16.mxu1 %v4926_v39 }
 0x787   :  { %4460 = vmatprep.subr.bf16.mxu0 %v5471_v30 }
 0x789   :  { %4547 = vmatpush3.bf16.msra.mxu1 %v4926_v39 }
 0x78a   :  { %4461 = vmatpush3.bf16.msra.mxu0 %v1827_v15  ;;  %4548 = vmatprep.subr.bf16.mxu1 %v4927_v34 }
 0x78b   :  { %4462 = vmatprep.subr.bf16.mxu0 %v5471_v30 }
 0x78d   :  { %4549 = vmatpush3.bf16.msra.mxu1 %v4927_v34 }
 0x78e   :  { %4463 = vmatpush3.bf16.msra.mxu0 %v1826_v36  ;;  %4598 = vmatprep.subr.bf16.mxu1 %v4920_v37 }
 0x78f   :  { %4464 = vmatprep.subr.bf16.mxu0 %v5471_v30 }
 0x792   :  { %4465 = vmatpush3.bf16.msra.mxu0 %v1825_v25 }
 0x793   :  { %4502 = vmatprep.subr.bf16.mxu0 %v2221_v44 }
 0x795   :  { %4467 = vmatmul.mubr.bf16.vlgmr.msra.gmra.mxu0 %v432_v53 }
 0x796   :  { %4503 = vmatpush3.bf16.msra.mxu0 %v2221_v44  ;;  %4518 = vmatprep.mubr.bf16.mxu0 %v4912_v28 }
 0x797   :  { %4504 = vmatprep.subr.bf16.mxu0 %v2220_v56 }
 0x79a   :  { %4505 = vmatpush3.bf16.msra.mxu0 %v2220_v56 }
 0x79b   :  { %4506 = vmatprep.subr.bf16.mxu0 %v2219_v54 }
 0x79e   :  { %4507 = vmatpush3.bf16.msra.mxu0 %v2219_v54 }
 0x79f   :  { %4508 = vmatprep.subr.bf16.mxu0 %v2218_v22 }
 0x7a2   :  { %4509 = vmatpush3.bf16.msra.mxu0 %v2218_v22 }
 0x7a3   :  { %4510 = vmatprep.subr.bf16.mxu0 %v2217_v43 }
 0x7a6   :  { %4511 = vmatpush3.bf16.msra.mxu0 %v2217_v43 }
 0x7a7   :  { %4512 = vmatprep.subr.bf16.mxu0 %v2216_v60 }
 0x7aa   :  { %4513 = vmatpush3.bf16.msra.mxu0 %v2216_v60 }
 0x7ab   :  { %4514 = vmatprep.subr.bf16.mxu0 %v2215_v51 }
 0x7ae   :  { %4515 = vmatpush3.bf16.msra.mxu0 %v2215_v51 }
 0x7af   :  { %4516 = vmatprep.subr.bf16.mxu0 %v2214_v45 }
 0x7b2   :  { %4517 = vmatpush3.bf16.msra.mxu0 %v2214_v45 }
 0x7b5   :  { %4519 = vmatmul.mubr.bf16.vlgmr.msra.gmra.mxu0 %v6024_v20 }
 0x7b6   :  { %4522 = vmatprep.mubr.bf16.mxu0 %v6026_v11 }
 0x7bd   :  { %4523 = vmatmul.mubr.bf16.gmra.mxu0 %v6030_v6 }
 0x7be   :  { %4526 = vmatprep.mubr.bf16.mxu0 %v6032_v9 }
 0x7c5   :  { %4527 = vmatmul.mubr.bf16.gmra.mxu0 %v6036_v63 }
 0x7c6   :  { %4530 = vmatprep.mubr.bf16.mxu0 %v6038_v0 }
 0x7cd   :  { %4531 = vmatmul.mubr.bf16.gmra.mxu0 %v6042_v33 }
 0x7ce   :  { %4582 = vmatprep.mubr.bf16.mxu0 %v4912_v28 }
 0x855   :  { %v6045_v10 = vpop.f32.mrf.mxu0 }
 0x857   :  { %v4468_v14 = vpop.f32.mrf.mxu0 }
 0x859   :  { %v1870_v19 = vpop.f32.mrf.mxu0 }
 0x85b   :  { %v4469_v35 = vpop.f32.mrf.mxu0 }
 0x875   :  { %v4520_v3 = vpop.f32.mrf.mxu0 }
 0x877   :  { %v2304_v61 = vpop.f32.mrf.mxu0 }
 0x879   :  { %v4521_v21 = vpop.f32.mrf.mxu0 }
 0x87a   :  { %v2368_v31 = vpack.c.bf16 %v4521_v21, %v4520_v3 }
 0x87b   :  { %v2307_v42 = vpop.f32.mrf.mxu0 }
 0x87c   :  { %v2367_v46 = vpack.c.bf16 %v2307_v42, %v2304_v61 }
 0x87d   :  { %v4524_v62 = vpop.f32.mrf.mxu0 }
 0x87e   :  { %4550 = vmatprep.mubr.bf16.mxu1 %v2367_v46 }
 0x87f   :  { %v2320_v5 = vpop.f32.mrf.mxu0  ;;  %4551 = vmatmul.mubr.bf16.vlgmr.msra.gmra.mxu1 %v2368_v31 }
 0x880   :  { %4599 = vmatpush3.bf16.msra.mxu1 %v4920_v37 }
 0x881   :  { %v4525_v47 = vpop.f32.mrf.mxu0  ;;  %4600 = vmatprep.subr.bf16.mxu1 %v4921_v13 }
 0x882   :  { %v2370_v49 = vpack.c.bf16 %v4525_v47, %v4524_v62 }
 0x883   :  { %v2323_v15 = vpop.f32.mrf.mxu0 }
 0x884   :  { %v2369_v16 = vpack.c.bf16 %v2323_v15, %v2320_v5  ;;  %4601 = vmatpush3.bf16.msra.mxu1 %v4921_v13 }
 0x885   :  { %v4528_v18 = vpop.f32.mrf.mxu0  ;;  %4602 = vmatprep.subr.bf16.mxu1 %v4922_v32 }
 0x886   :  { %4554 = vmatprep.mubr.bf16.mxu1 %v2369_v16 }
 0x887   :  { %v2336_v36 = vpop.f32.mrf.mxu0  ;;  %4555 = vmatmul.mubr.bf16.gmra.mxu1 %v2370_v49 }
 0x888   :  { %4603 = vmatpush3.bf16.msra.mxu1 %v4922_v32 }
 0x889   :  { %v4529_v23 = vpop.f32.mrf.mxu0  ;;  %4604 = vmatprep.subr.bf16.mxu1 %v4923_v7 }
 0x88a   :  { %v2372_v25 = vpack.c.bf16 %v4529_v23, %v4528_v18 }
 0x88b   :  { %v2339_v8 = vpop.f32.mrf.mxu0 }
 0x88c   :  { %v2371_v24 = vpack.c.bf16 %v2339_v8, %v2336_v36  ;;  %4605 = vmatpush3.bf16.msra.mxu1 %v4923_v7 }
 0x88d   :  { %v4532_v44 = vpop.f32.mrf.mxu0  ;;  %4606 = vmatprep.subr.bf16.mxu1 %v4924_v38 }
 0x88e   :  { %4558 = vmatprep.mubr.bf16.mxu1 %v2371_v24 }
 0x88f   :  { %v2352_v53 = vpop.f32.mrf.mxu0  ;;  %4559 = vmatmul.mubr.bf16.gmra.mxu1 %v2372_v25 }
 0x890   :  { %4607 = vmatpush3.bf16.msra.mxu1 %v4924_v38 }
 0x891   :  { %v4533_v28 = vpop.f32.mrf.mxu0  ;;  %4608 = vmatprep.subr.bf16.mxu1 %v4925_v2 }
 0x892   :  { %v2374_v22 = vpack.c.bf16 %v4533_v28, %v4532_v44 }
 0x893   :  { %v2355_v56 = vpop.f32.mrf.mxu0 }
 0x894   :  { %v2373_v54 = vpack.c.bf16 %v2355_v56, %v2352_v53  ;;  %4609 = vmatpush3.bf16.msra.mxu1 %v4925_v2 }
 0x895   :  { %4610 = vmatprep.subr.bf16.mxu1 %v4926_v39 }
 0x896   :  { %4562 = vmatprep.mubr.bf16.mxu1 %v2373_v54 }
 0x897   :  { %4563 = vmatmul.mubr.bf16.gmra.mxu1 %v2374_v22 }
 0x898   :  { %4611 = vmatpush3.bf16.msra.mxu1 %v4926_v39 }
 0x899   :  { %4612 = vmatprep.subr.bf16.mxu1 %v4927_v34 }
 0x89c   :  { %4613 = vmatpush3.bf16.msra.mxu1 %v4927_v34 }
 0x93f   :  { %v4552_v43 = vpop.f32.mrf.mxu1 }
 0x941   :  { %v2457_v60 = vpop.f32.mrf.mxu1 }
 0x943   :  { %v4553_v51 = vpop.f32.mrf.mxu1 }
 0x945   :  { %v2460_v45 = vpop.f32.mrf.mxu1 }
 0x947   :  { %v4556_v37 = vpop.f32.mrf.mxu1 }
 0x948   :  { %v2526_v28 = vadd.f32 %v4556_v37, %v5991_v52 }
 0x949   :  { %v2473_v13 = vpop.f32.mrf.mxu1 }
 0x94b   :  { %v4557_v32 = vpop.f32.mrf.mxu1 }
 0x94c   :  { %v2527_v25 = vadd.f32 %v4557_v32, %v5994_v57 }
 0x94d   :  { %v2476_v7 = vpop.f32.mrf.mxu1 }
 0x94e   :  { %v2543_v54 = vmax.f32 %v2527_v25, 0.0  ;;  %v2525_v22 = vadd.f32 %v2476_v7, %v6002_v40 }
 0x94f   :  { %v4560_v38 = vpop.f32.mrf.mxu1 }
 0x950   :  { %v2530_v47 = vadd.f32 %v4560_v38, %v5977_v55  ;;  %v2541_v32 = vmax.f32 %v2525_v22, 0.0  ;;  %v4944_v22 = vld [vmem:[#allocation29 + $0x20] sm:$0xff]  }
 0x951   :  { %v2489_v14 = vpop.f32.mrf.mxu1 }
 0x952   :  { %v2546_v8 = vmax.f32 %v2530_v47, 0.0  ;;  %v2528_v24 = vadd.f32 %v2489_v14, %v5984_v58  ;;  %v2523_v14 = vadd.f32 %v4553_v51, %v6010_v41 }
 0x953   :  { %v4561_v19 = vpop.f32.mrf.mxu1 }
 0x954   :  { %v2531_v46 = vadd.f32 %v4561_v19, %v5979_v17  ;;  %v2544_v56 = vmax.f32 %v2528_v24, 0.0  ;;  %v2542_v19 = vmax.f32 %v2526_v28, 0.0  ;;  %v2539_v37 = vmax.f32 %v2523_v14, 0.0  ;;  %v4938_v28 = vld [vmem:[#allocation29 + $0x38] sm:$0xff]  }
 0x955   :  { %v2492_v35 = vpop.f32.mrf.mxu1  ;;  %4662 = vmatprep.subr.bf16.mxu1 %v4938_v28 }
 0x956   :  { %v2547_v18 = vmax.f32 %v2531_v46, 0.0  ;;  %v2529_v36 = vadd.f32 %v2492_v35, %v5986_v48  ;;  %v2524_v35 = vadd.f32 %v2473_v13, %v5999_v29 }
 0x957   :  { %v4564_v2 = vpop.f32.mrf.mxu1 }
 0x958   :  { %v2534_v61 = vadd.f32 %v4564_v2, %v5965_v50  ;;  %v2557_v44 = vpack.c.bf16 %v2547_v18, %v2546_v8  ;;  %v2545_v53 = vmax.f32 %v2529_v36, 0.0  ;;  %v2555_v2 = vpack.c.bf16 %v2543_v54, %v2542_v19  ;;  %v4942_v54 = vld [vmem:[#allocation29 + $0x28] sm:$0xff]   ;;  %v4948_v19 = vld [vmem:[#allocation29 + $0x10] sm:$0xff]  }
 0x959   :  { %v2505_v3 = vpop.f32.mrf.mxu1 }
 0x95a   :  { %v2532_v39 = vadd.f32 %v2505_v3, %v5970_v26  ;;  %v2550_v31 = vmax.f32 %v2534_v61, 0.0  ;;  %v2556_v38 = vpack.c.bf16 %v2545_v53, %v2544_v56  ;;  %v2522_v3 = vadd.f32 %v4552_v43, %v6007_v12  ;;  %v4928_v53 = vld [vmem:[#allocation16] sm:$0xff]   ;;  %v4940_v56 = vld [vmem:[#allocation29 + $0x30] sm:$0xff]  }
 0x95b   :  { %v4565_v21 = vpop.f32.mrf.mxu1  ;;  %v2540_v61 = vmax.f32 %v2524_v35, 0.0 }
 0x95c   :  { %v2535_v34 = vadd.f32 %v4565_v21, %v5967_v59  ;;  %v2548_v15 = vmax.f32 %v2532_v39, 0.0  ;;  %v2521_v21 = vadd.f32 %v2460_v45, %v6018_v4  ;;  %v2538_v7 = vmax.f32 %v2522_v3, 0.0 }
 0x95d   :  { %v2508_v42 = vpop.f32.mrf.mxu1  ;;  %v2554_v39 = vpack.c.bf16 %v2541_v32, %v2540_v61 }
 0x95e   :  { %v2551_v62 = vmax.f32 %v2535_v34, 0.0  ;;  %v2533_v5 = vadd.f32 %v2508_v42, %v5972_v27  ;;  %v2520_v34 = vadd.f32 %v2457_v60, %v6015_v1  ;;  %v2553_v13 = vpack.c.bf16 %v2539_v37, %v2538_v7 }
 0x95f   :  { %v2537_v42 = vmax.f32 %v2521_v21, 0.0 }
 0x960   :  { %v2559_v16 = vpack.c.bf16 %v2551_v62, %v2550_v31  ;;  %v2549_v49 = vmax.f32 %v2533_v5, 0.0  ;;  %v2536_v51 = vmax.f32 %v2520_v34, 0.0 }
 0x962   :  { %v2558_v23 = vpack.c.bf16 %v2549_v49, %v2548_v15  ;;  %4566 = vmatprep.subr.bf16.mxu0 %v2559_v16  ;;  %v2552_v46 = vpack.c.bf16 %v2537_v42, %v2536_v51 }
 0x963   :  { %4567 = vmatpush3.bf16.msra.mxu0 %v2559_v16 }
 0x964   :  { %4568 = vmatprep.subr.bf16.mxu0 %v2558_v23 }
 0x967   :  { %4569 = vmatpush3.bf16.msra.mxu0 %v2558_v23 }
 0x968   :  { %4570 = vmatprep.subr.bf16.mxu0 %v2557_v44 }
 0x96b   :  { %4571 = vmatpush3.bf16.msra.mxu0 %v2557_v44 }
 0x96c   :  { %4572 = vmatprep.subr.bf16.mxu0 %v2556_v38 }
 0x96f   :  { %4573 = vmatpush3.bf16.msra.mxu0 %v2556_v38  ;;  %v4946_v38 = vld [vmem:[#allocation29 + $0x18] sm:$0xff]  }
 0x970   :  { %4574 = vmatprep.subr.bf16.mxu0 %v2555_v2 }
 0x973   :  { %4575 = vmatpush3.bf16.msra.mxu0 %v2555_v2 }
 0x974   :  { %4576 = vmatprep.subr.bf16.mxu0 %v2554_v39 }
 0x977   :  { %4577 = vmatpush3.bf16.msra.mxu0 %v2554_v39 }
 0x978   :  { %4578 = vmatprep.subr.bf16.mxu0 %v2553_v13 }
 0x97b   :  { %4579 = vmatpush3.bf16.msra.mxu0 %v2553_v13 }
 0x97c   :  { %4580 = vmatprep.subr.bf16.mxu0 %v2552_v46 }
 0x97f   :  { %4581 = vmatpush3.bf16.msra.mxu0 %v2552_v46 }
 0x982   :  { %4583 = vmatmul.mubr.bf16.vlgmr.msra.gmra.mxu0 %v6024_v20 }
 0x983   :  { %4586 = vmatprep.mubr.bf16.mxu0 %v6026_v11 }
 0x98a   :  { %4587 = vmatmul.mubr.bf16.gmra.mxu0 %v6030_v6 }
 0x98b   :  { %4590 = vmatprep.mubr.bf16.mxu0 %v6032_v9 }
 0x992   :  { %4591 = vmatmul.mubr.bf16.gmra.mxu0 %v6036_v63 }
 0x993   :  { %4594 = vmatprep.mubr.bf16.mxu0 %v6038_v0 }
 0x99a   :  { %4595 = vmatmul.mubr.bf16.gmra.mxu0 %v6042_v33 }
 0x99b   :  { %4646 = vmatprep.mubr.bf16.mxu0 %v4928_v53 }
 0xa42   :  { %v4584_v43 = vpop.f32.mrf.mxu0 }
 0xa44   :  { %v2594_v60 = vpop.f32.mrf.mxu0 }
 0xa46   :  { %v4585_v45 = vpop.f32.mrf.mxu0 }
 0xa47   :  { %v2658_v5 = vpack.c.bf16 %v4585_v45, %v4584_v43 }
 0xa48   :  { %v2597_v31 = vpop.f32.mrf.mxu0 }
 0xa49   :  { %v2657_v62 = vpack.c.bf16 %v2597_v31, %v2594_v60 }
 0xa4a   :  { %v4588_v47 = vpop.f32.mrf.mxu0 }
 0xa4b   :  { %4614 = vmatprep.mubr.bf16.mxu1 %v2657_v62 }
 0xa4c   :  { %v2610_v20 = vpop.f32.mrf.mxu0  ;;  %4615 = vmatmul.mubr.bf16.vlgmr.msra.gmra.mxu1 %v2658_v5 }
 0xa4d   :  { %4663 = vmatpush3.bf16.msra.mxu1 %v4938_v28 }
 0xa4e   :  { %v4589_v11 = vpop.f32.mrf.mxu0  ;;  %4664 = vmatprep.subr.bf16.mxu1 %v4940_v56 }
 0xa4f   :  { %v2660_v9 = vpack.c.bf16 %v4589_v11, %v4588_v47 }
 0xa50   :  { %v2613_v6 = vpop.f32.mrf.mxu0 }
 0xa51   :  { %v2659_v15 = vpack.c.bf16 %v2613_v6, %v2610_v20  ;;  %4665 = vmatpush3.bf16.msra.mxu1 %v4940_v56 }
 0xa52   :  { %v4592_v16 = vpop.f32.mrf.mxu0  ;;  %4666 = vmatprep.subr.bf16.mxu1 %v4942_v54 }
 0xa53   :  { %4618 = vmatprep.mubr.bf16.mxu1 %v2659_v15 }
 0xa54   :  { %v2626_v63 = vpop.f32.mrf.mxu0  ;;  %4619 = vmatmul.mubr.bf16.gmra.mxu1 %v2660_v9 }
 0xa55   :  { %4667 = vmatpush3.bf16.msra.mxu1 %v4942_v54 }
 0xa56   :  { %v4593_v0 = vpop.f32.mrf.mxu0  ;;  %4668 = vmatprep.subr.bf16.mxu1 %v4944_v22 }
 0xa57   :  { %v2662_v18 = vpack.c.bf16 %v4593_v0, %v4592_v16 }
 0xa58   :  { %v2629_v33 = vpop.f32.mrf.mxu0 }
 0xa59   :  { %v2661_v49 = vpack.c.bf16 %v2629_v33, %v2626_v63  ;;  %4669 = vmatpush3.bf16.msra.mxu1 %v4944_v22  ;;  %v4929_v22 = vld [vmem:[#allocation16 + $0x8] sm:$0xff]  }
 0xa5a   :  { %v4596_v36 = vpop.f32.mrf.mxu0  ;;  %4670 = vmatprep.subr.bf16.mxu1 %v4946_v38 }
 0xa5b   :  { %4622 = vmatprep.mubr.bf16.mxu1 %v2661_v49 }
 0xa5c   :  { %v2642_v23 = vpop.f32.mrf.mxu0  ;;  %4623 = vmatmul.mubr.bf16.gmra.mxu1 %v2662_v18 }
 0xa5d   :  { %4671 = vmatpush3.bf16.msra.mxu1 %v4946_v38  ;;  %v4930_v38 = vld [vmem:[#allocation16 + $0x10] sm:$0xff]  }
 0xa5e   :  { %v4597_v8 = vpop.f32.mrf.mxu0  ;;  %4672 = vmatprep.subr.bf16.mxu1 %v4948_v19 }
 0xa5f   :  { %v2664_v44 = vpack.c.bf16 %v4597_v8, %v4596_v36 }
 0xa60   :  { %v2645_v24 = vpop.f32.mrf.mxu0 }
 0xa61   :  { %v2663_v25 = vpack.c.bf16 %v2645_v24, %v2642_v23  ;;  %4673 = vmatpush3.bf16.msra.mxu1 %v4948_v19  ;;  %v4931_v19 = vld [vmem:[#allocation16 + $0x18] sm:$0xff]  }
 0xa63   :  { %4626 = vmatprep.mubr.bf16.mxu1 %v2663_v25 }
 0xa64   :  { %4627 = vmatmul.mubr.bf16.gmra.mxu1 %v2664_v44 }
 0xb0c   :  { %v4616_v35 = vpop.f32.mrf.mxu1 }
 0xb0d   :  { %v2764_v24 = vadd.f32 %v4616_v35, %v6007_v12  ;;  %v4936_v12 = vld [vmem:[#allocation28 + $0x38] sm:$0xff]  }
 0xb0e   :  { %v2699_v14 = vpop.f32.mrf.mxu1  ;;  %v4932_v35 = vld [vmem:[#allocation16 + $0x20] sm:$0xff]  }
 0xb0f   :  { %v2762_v28 = vadd.f32 %v2699_v14, %v6015_v1  ;;  %v4939_v1 = vld [vmem:[#allocation28 + $0x28] sm:$0xff]   ;;  %v4941_v14 = vld [vmem:[#allocation28 + $0x20] sm:$0xff]  }
 0xb10   :  { %v4617_v2 = vpop.f32.mrf.mxu1 }
 0xb12   :  { %v2702_v32 = vpop.f32.mrf.mxu1 }
 0xb13   :  { %v2763_v44 = vadd.f32 %v2702_v32, %v6018_v4  ;;  %v4937_v4 = vld [vmem:[#allocation28 + $0x30] sm:$0xff]   ;;  %v4933_v32 = vld [vmem:[#allocation16 + $0x28] sm:$0xff]  }
 0xb14   :  { %v4620_v3 = vpop.f32.mrf.mxu1 }
 0xb15   :  { %v2779_v56 = vmax.f32 %v2763_v44, 0.0  ;;  %v4970_v44 = vld [vmem:[#allocation32 + $0x28] sm:$0xff]  }
 0xb16   :  { %v2715_v61 = vpop.f32.mrf.mxu1 }
 0xb17   :  { %v2766_v23 = vadd.f32 %v2715_v61, %v5999_v29  ;;  %v4945_v61 = vld [vmem:[#allocation28 + $0x10] sm:$0xff]  }
 0xb18   :  { %v4621_v37 = vpop.f32.mrf.mxu1 }
 0xb19   :  { %v2782_v25 = vmax.f32 %v2766_v23, 0.0 }
 0xb1a   :  { %v2718_v21 = vpop.f32.mrf.mxu1 }
 0xb1b   :  { %v2767_v18 = vadd.f32 %v2718_v21, %v6002_v40  ;;  %v2780_v40 = vmax.f32 %v2764_v24, 0.0  ;;  %v4935_v21 = vld [vmem:[#allocation16 + $0x38] sm:$0xff]  }
 0xb1c   :  { %v4624_v39 = vpop.f32.mrf.mxu1 }
 0xb1d   :  { %v2772_v11 = vadd.f32 %v4624_v39, %v5977_v55  ;;  %v4949_v39 = vld [vmem:[#allocation28] sm:$0xff]  }
 0xb1e   :  { %v2731_v7 = vpop.f32.mrf.mxu1 }
 0xb20   :  { %v4625_v34 = vpop.f32.mrf.mxu1 }
 0xb21   :  { %v2773_v62 = vadd.f32 %v4625_v34, %v5979_v17  ;;  %v2769_v17 = vadd.f32 %v4621_v37, %v5994_v57  ;;  %v2783_v57 = vmax.f32 %v2767_v18, 0.0  ;;  %v4947_v37 = vld [vmem:[#allocation28 + $0x8] sm:$0xff]   ;;  %v4951_v34 = vld [vmem:[#allocation13] sm:$0xff]  }
 0xb22   :  { %v2734_v13 = vpop.f32.mrf.mxu1 }
 0xb23   :  { %v2789_v16 = vmax.f32 %v2773_v62, 0.0  ;;  %v2785_v49 = vmax.f32 %v2769_v17, 0.0  ;;  %v2796_v53 = vpack.c.bf16 %v2783_v57, %v2782_v25  ;;  %v4968_v57 = vld [vmem:[#allocation32 + $0x38] sm:$0xff]   ;;  %v4969_v25 = vld [vmem:[#allocation32 + $0x30] sm:$0xff]  }
 0xb24   :  { %v4628_v42 = vpop.f32.mrf.mxu1 }
 0xb25   :  { %v2776_v46 = vadd.f32 %v4628_v42, %v5965_v50  ;;  %v2771_v50 = vadd.f32 %v2734_v13, %v5986_v48  ;;  %v4952_v13 = vld [vmem:[#allocation13 + $0x8] sm:$0xff]  }
 0xb26   :  { %v2747_v51 = vpop.f32.mrf.mxu1  ;;  %v4953_v42 = vld [vmem:[#allocation29] sm:$0xff]  }
 0xb27   :  { %v2774_v60 = vadd.f32 %v2747_v51, %v5970_v26  ;;  %v2792_v5 = vmax.f32 %v2776_v46, 0.0  ;;  %v2788_v26 = vmax.f32 %v2772_v11, 0.0  ;;  %v2787_v33 = vmax.f32 %v2771_v50, 0.0  ;;  %v4954_v51 = vld [vmem:[#allocation13 + $0x10] sm:$0xff]   ;;  %v4955_v46 = vld [vmem:[#allocation13 + $0x18] sm:$0xff]  }
 0xb28   :  { %v4629_v43 = vpop.f32.mrf.mxu1 }
 0xb29   :  { %v2777_v45 = vadd.f32 %v4629_v43, %v5967_v59  ;;  %v2790_v6 = vmax.f32 %v2774_v60, 0.0  ;;  %v2770_v59 = vadd.f32 %v2731_v7, %v5984_v58  ;;  %v2799_v0 = vpack.c.bf16 %v2789_v16, %v2788_v26  ;;  %v4950_v7 = vld [vmem:[#allocation29 + $0x8] sm:$0xff]   ;;  %v4956_v43 = vld [vmem:[#allocation13 + $0x20] sm:$0xff]  }
 0xb2a   :  { %v2750_v31 = vpop.f32.mrf.mxu1  ;;  %v2765_v58 = vadd.f32 %v4617_v2, %v6010_v41  ;;  %v2778_v41 = vmax.f32 %v2762_v28, 0.0  ;;  %v4943_v2 = vld [vmem:[#allocation28 + $0x18] sm:$0xff]   ;;  %4674 = vmatprep.subr.bf16.mxu1 %v4950_v7  ;;  %v4957_v60 = vld [vmem:[#allocation13 + $0x28] sm:$0xff]  }
 0xb2b   :  { %v2793_v47 = vmax.f32 %v2777_v45, 0.0  ;;  %v2775_v20 = vadd.f32 %v2750_v31, %v5972_v27  ;;  %v2768_v27 = vadd.f32 %v4620_v3, %v5991_v52  ;;  %v2786_v55 = vmax.f32 %v2770_v59, 0.0  ;;  %v4934_v3 = vld [vmem:[#allocation16 + $0x30] sm:$0xff]   ;;  %4675 = vmatpush3.bf16.msra.mxu1 %v4950_v7  ;;  %v4959_v31 = vld [vmem:[#allocation13 + $0x38] sm:$0xff]  }
 0xb2c   :  { %v2781_v52 = vmax.f32 %v2765_v58, 0.0  ;;  %v2794_v54 = vpack.c.bf16 %v2779_v56, %v2778_v41  ;;  %4676 = vmatprep.subr.bf16.mxu1 %v4953_v42  ;;  %v4958_v45 = vld [vmem:[#allocation13 + $0x30] sm:$0xff]  }
 0xb2d   :  { %v2801_v15 = vpack.c.bf16 %v2793_v47, %v2792_v5  ;;  %v2791_v9 = vmax.f32 %v2775_v20, 0.0  ;;  %v2798_v48 = vpack.c.bf16 %v2787_v33, %v2786_v55  ;;  %v2784_v36 = vmax.f32 %v2768_v27, 0.0  ;;  %v4973_v41 = vld [vmem:[#allocation32 + $0x10] sm:$0xff]  }
 0xb2e   :  { %v2795_v29 = vpack.c.bf16 %v2781_v52, %v2780_v40  ;;  %v4971_v40 = vld [vmem:[#allocation32 + $0x20] sm:$0xff]  }
 0xb2f   :  { %v2800_v63 = vpack.c.bf16 %v2791_v9, %v2790_v6  ;;  %4630 = vmatprep.subr.bf16.mxu0 %v2801_v15  ;;  %v2797_v8 = vpack.c.bf16 %v2785_v49, %v2784_v36  ;;  %4677 = vmatpush3.bf16.msra.mxu1 %v4953_v42 }
 0xb30   :  { %4631 = vmatpush3.bf16.msra.mxu0 %v2801_v15  ;;  %4726 = vmatprep.subr.bf16.mxu1 %v5471_v30 }
 0xb31   :  { %4632 = vmatprep.subr.bf16.mxu0 %v2800_v63 }
 0xb34   :  { %4633 = vmatpush3.bf16.msra.mxu0 %v2800_v63 }
 0xb35   :  { %4634 = vmatprep.subr.bf16.mxu0 %v2799_v0 }
 0xb38   :  { %4635 = vmatpush3.bf16.msra.mxu0 %v2799_v0 }
 0xb39   :  { %4636 = vmatprep.subr.bf16.mxu0 %v2798_v48 }
 0xb3c   :  { %4637 = vmatpush3.bf16.msra.mxu0 %v2798_v48 }
 0xb3d   :  { %4638 = vmatprep.subr.bf16.mxu0 %v2797_v8 }
 0xb40   :  { %4639 = vmatpush3.bf16.msra.mxu0 %v2797_v8 }
 0xb41   :  { %4640 = vmatprep.subr.bf16.mxu0 %v2796_v53 }
 0xb44   :  { %4641 = vmatpush3.bf16.msra.mxu0 %v2796_v53 }
 0xb45   :  { %4642 = vmatprep.subr.bf16.mxu0 %v2795_v29 }
 0xb48   :  { %4643 = vmatpush3.bf16.msra.mxu0 %v2795_v29  ;;  %v4972_v29 = vld [vmem:[#allocation32 + $0x18] sm:$0xff]  }
 0xb49   :  { %4644 = vmatprep.subr.bf16.mxu0 %v2794_v54 }
 0xb4c   :  { %4645 = vmatpush3.bf16.msra.mxu0 %v2794_v54 }
 0xb4d   :  { %4694 = vmatprep.subr.bf16.mxu0 %v4936_v12 }
 0xb4f   :  { %4647 = vmatmul.mubr.bf16.vlgmr.msra.gmra.mxu0 %v4929_v22 }
 0xb50   :  { %4650 = vmatprep.mubr.bf16.mxu0 %v4930_v38  ;;  %4695 = vmatpush3.bf16.msra.mxu0 %v4936_v12  ;;  %v4974_v12 = vld [vmem:[#allocation32 + $0x8] sm:$0xff]  }
 0xb51   :  { %4696 = vmatprep.subr.bf16.mxu0 %v4937_v4 }
 0xb54   :  { %4697 = vmatpush3.bf16.msra.mxu0 %v4937_v4 }
 0xb55   :  { %4698 = vmatprep.subr.bf16.mxu0 %v4939_v1 }
 0xb57   :  { %4651 = vmatmul.mubr.bf16.gmra.mxu0 %v4931_v19 }
 0xb58   :  { %4654 = vmatprep.mubr.bf16.mxu0 %v4932_v35  ;;  %4699 = vmatpush3.bf16.msra.mxu0 %v4939_v1 }
 0xb59   :  { %4700 = vmatprep.subr.bf16.mxu0 %v4941_v14 }
 0xb5c   :  { %4701 = vmatpush3.bf16.msra.mxu0 %v4941_v14 }
 0xb5d   :  { %4702 = vmatprep.subr.bf16.mxu0 %v4943_v2 }
 0xb5f   :  { %4655 = vmatmul.mubr.bf16.gmra.mxu0 %v4933_v32 }
 0xb60   :  { %4658 = vmatprep.mubr.bf16.mxu0 %v4934_v3  ;;  %4703 = vmatpush3.bf16.msra.mxu0 %v4943_v2 }
 0xb61   :  { %4704 = vmatprep.subr.bf16.mxu0 %v4945_v61 }
 0xb64   :  { %4705 = vmatpush3.bf16.msra.mxu0 %v4945_v61 }
 0xb65   :  { %4706 = vmatprep.subr.bf16.mxu0 %v4947_v37 }
 0xb67   :  { %4659 = vmatmul.mubr.bf16.gmra.mxu0 %v4935_v21 }
 0xb68   :  { %4707 = vmatpush3.bf16.msra.mxu0 %v4947_v37  ;;  %4710 = vmatprep.mubr.bf16.mxu0 %v4951_v34 }
 0xb69   :  { %4708 = vmatprep.subr.bf16.mxu0 %v4949_v39 }
 0xb6c   :  { %4709 = vmatpush3.bf16.msra.mxu0 %v4949_v39 }
 0xb6d   :  { %4746 = vmatprep.subr.bf16.mxu0 %v5471_v30 }
 0xb6f   :  { %4711 = vmatmul.mubr.bf16.vlgmr.msra.gmra.mxu0 %v4952_v13 }
 0xb70   :  { %4714 = vmatprep.mubr.bf16.mxu0 %v4954_v51  ;;  %4747 = vmatpush3.bf16.msra.mxu0 %v4968_v57 }
 0xb71   :  { %4748 = vmatprep.subr.bf16.mxu0 %v5471_v30 }
 0xb74   :  { %4749 = vmatpush3.bf16.msra.mxu0 %v4969_v25 }
 0xb75   :  { %4750 = vmatprep.subr.bf16.mxu0 %v5471_v30 }
 0xb77   :  { %4715 = vmatmul.mubr.bf16.gmra.mxu0 %v4955_v46 }
 0xb78   :  { %4718 = vmatprep.mubr.bf16.mxu0 %v4956_v43  ;;  %4751 = vmatpush3.bf16.msra.mxu0 %v4970_v44 }
 0xb79   :  { %4752 = vmatprep.subr.bf16.mxu0 %v5471_v30 }
 0xb7c   :  { %4753 = vmatpush3.bf16.msra.mxu0 %v4971_v40 }
 0xb7d   :  { %4754 = vmatprep.subr.bf16.mxu0 %v5471_v30 }
 0xb7f   :  { %4719 = vmatmul.mubr.bf16.gmra.mxu0 %v4957_v60 }
 0xb80   :  { %4722 = vmatprep.mubr.bf16.mxu0 %v4958_v45  ;;  %4755 = vmatpush3.bf16.msra.mxu0 %v4972_v29 }
 0xb81   :  { %4756 = vmatprep.subr.bf16.mxu0 %v5471_v30 }
 0xb84   :  { %4757 = vmatpush3.bf16.msra.mxu0 %v4973_v41 }
 0xb85   :  { %4758 = vmatprep.subr.bf16.mxu0 %v5471_v30 }
 0xb87   :  { %4723 = vmatmul.mubr.bf16.gmra.mxu0 %v4959_v31  ;;  %v6120_v31 = vld [vmem:[%s6211_s21] ss:$0 sm:$0xff] }
 0xb88   :  { %4762 = vmatprep.mubr.msk.bf16.mxu0 %vm5472_vm0, %v5471_v30  ;;  %4759 = vmatpush3.bf16.msra.mxu0 %v4974_v12 }
 0xb89   :  { %4760 = vmatprep.subr.bf16.mxu0 %v5471_v30 }
 0xc0f   :  { %v4648_v62 = vpop.f32.mrf.mxu0 }
 0xc11   :  { %v2884_v5 = vpop.f32.mrf.mxu0 }
 0xc13   :  { %v4649_v47 = vpop.f32.mrf.mxu0 }
 0xc14   :  { %v2948_v6 = vpack.c.bf16 %v4649_v47, %v4648_v62 }
 0xc15   :  { %v2887_v20 = vpop.f32.mrf.mxu0 }
 0xc16   :  { %v2947_v11 = vpack.c.bf16 %v2887_v20, %v2884_v5 }
 0xc17   :  { %v4652_v15 = vpop.f32.mrf.mxu0 }
 0xc18   :  { %4678 = vmatprep.mubr.bf16.mxu1 %v2947_v11 }
 0xc19   :  { %v2900_v9 = vpop.f32.mrf.mxu0  ;;  %4679 = vmatmul.mubr.bf16.vlgmr.msra.gmra.mxu1 %v2948_v6 }
 0xc1b   :  { %v4653_v16 = vpop.f32.mrf.mxu0 }
 0xc1c   :  { %v2950_v26 = vpack.c.bf16 %v4653_v16, %v4652_v15 }
 0xc1d   :  { %v2903_v50 = vpop.f32.mrf.mxu0 }
 0xc1e   :  { %v2949_v63 = vpack.c.bf16 %v2903_v50, %v2900_v9 }
 0xc1f   :  { %v4656_v59 = vpop.f32.mrf.mxu0 }
 0xc20   :  { %4682 = vmatprep.mubr.bf16.mxu1 %v2949_v63 }
 0xc21   :  { %v2916_v17 = vpop.f32.mrf.mxu0  ;;  %4683 = vmatmul.mubr.bf16.gmra.mxu1 %v2950_v26 }
 0xc23   :  { %v4657_v0 = vpop.f32.mrf.mxu0 }
 0xc24   :  { %v2952_v55 = vpack.c.bf16 %v4657_v0, %v4656_v59 }
 0xc25   :  { %v2919_v33 = vpop.f32.mrf.mxu0 }
 0xc26   :  { %v2951_v27 = vpack.c.bf16 %v2919_v33, %v2916_v17 }
 0xc27   :  { %v4660_v49 = vpop.f32.mrf.mxu0 }
 0xc28   :  { %4686 = vmatprep.mubr.bf16.mxu1 %v2951_v27 }
 0xc29   :  { %v2932_v18 = vpop.f32.mrf.mxu0  ;;  %4687 = vmatmul.mubr.bf16.gmra.mxu1 %v2952_v55 }
 0xc2b   :  { %v4661_v48 = vpop.f32.mrf.mxu0 }
 0xc2c   :  { %v2954_v58 = vpack.c.bf16 %v4661_v48, %v4660_v49 }
 0xc2d   :  { %v2935_v36 = vpop.f32.mrf.mxu0 }
 0xc2e   :  { %v2953_v23 = vpack.c.bf16 %v2935_v36, %v2932_v18 }
 0xc2f   :  { %v6092_v8 = vpop.f32.mrf.mxu0 }
 0xc30   :  { %4690 = vmatprep.mubr.bf16.mxu1 %v2953_v23 }
 0xc31   :  { %4691 = vmatmul.mubr.bf16.gmra.mxu1 %v2954_v58  ;;  %v6094_v24 = vpop.f32.mrf.mxu0 }
 0xc32   :  { %4742 = vmatprep.mubr.msk.bf16.mxu1 %vm5472_vm0, %v5471_v30 }
 0xc33   :  { %v6097_v52 = vpop.f32.mrf.mxu0 }
 0xc35   :  { %v6100_v53 = vpop.f32.mrf.mxu0 }
 0xc37   :  { %v6103_v28 = vpop.f32.mrf.mxu0 }
 0xc39   :  { %v6106_v56 = vpop.f32.mrf.mxu0 }
 0xc3b   :  { %v4717_v54 = vpop.f32.mrf.mxu0 }
 0xc3d   :  { %v3249_v22 = vpop.f32.mrf.mxu0 }
 0xc3f   :  { %v4720_v1 = vpop.f32.mrf.mxu0 }
 0xc41   :  { %v3262_v14 = vpop.f32.mrf.mxu0 }
 0xc43   :  { %v4721_v3 = vpop.f32.mrf.mxu0 }
 0xc45   :  { %v3265_v21 = vpop.f32.mrf.mxu0 }
 0xc47   :  { %v4724_v34 = vpop.f32.mrf.mxu0 }
 0xc49   :  { %v3278_v42 = vpop.f32.mrf.mxu0 }
 0xc4b   :  { %v4725_v60 = vpop.f32.mrf.mxu0 }
 0xc4d   :  { %v3281_v11 = vpop.f32.mrf.mxu0 }
 0xcd9   :  { %v6111_v38 = vpop.f32.mrf.mxu1 }
 0xcdb   :  { %v6113_v4 = vpop.f32.mrf.mxu1 }
 0xcdd   :  { %v4681_v19 = vpop.f32.mrf.mxu1 }
 0xcdf   :  { %v6115_v35 = vpop.f32.mrf.mxu1 }
 0xce1   :  { %v4684_v2 = vpop.f32.mrf.mxu1 }
 0xce2   :  { %v3255_v25 = vadd.f32 %v6103_v28, %v4684_v2  ;;  %v3242_v28 = vadd.f32 %v6097_v52, %v4681_v19 }
 0xce3   :  { %v3053_v32 = vpop.f32.mrf.mxu1 }
 0xce5   :  { %v4685_v61 = vpop.f32.mrf.mxu1 }
 0xce6   :  { %v3258_v36 = vadd.f32 %v4717_v54, %v4685_v61  ;;  %v3247_v54 = vadd.f32 %v6106_v56, %v3053_v32  ;;  %v3302_v56 = vadd.f32 %v6120_v31, %v3242_v28  ;;  %v3234_v32 = vadd.f32 %v6100_v53, %v6115_v35 }
 0xce7   :  { %v3056_v37 = vpop.f32.mrf.mxu1 }
 0xce8   :  { %v3306_v29 = vadd.f32 %v6120_v31, %v3258_v36  ;;  %v3250_v41 = vadd.f32 %v3249_v22, %v3056_v37  ;;  %v3303_v37 = vadd.f32 %v6120_v31, %v3247_v54 }
 0xce9   :  { %v4688_v39 = vpop.f32.mrf.mxu1 }
 0xcea   :  { %v3271_v50 = vadd.f32 %v4720_v1, %v4688_v39  ;;  %v3322_v2 = vmax.f32 %v3306_v29, 0.0  ;;  %v3304_v61 = vadd.f32 %v6120_v31, %v3250_v41  ;;  %v3239_v39 = vadd.f32 %v6092_v8, %v6111_v38  ;;  %v3883_v29 = vld [vmem:[%s6214_s24] ss:$0 sm:$0xff]  ;;  %s5404_s24 = scalar_lea.vmem %s3719_s9, 128 }
 0xceb   :  { %v3069_v7 = vpop.f32.mrf.mxu1  ;;  %v3318_v8 = vmax.f32 %v3302_v56, 0.0  ;;  %v3300_v38 = vadd.f32 %v6120_v31, %v3234_v32  ;;  %p5405_p7 = scmp.ne.s32.totalorder %s3719_s9, %s5404_s24  ;;  %p5410_p9 = scmp.lt.s32.totalorder %s5404_s24, %s5404_s24 }
 0xcec   :  { %v3309_v49 = vadd.f32 %v6120_v31, %v3271_v50  ;;  %v3263_v18 = vadd.f32 %v3262_v14, %v3069_v7  ;;  %v3305_v14 = vadd.f32 %v6120_v31, %v3255_v25  ;;  %v3320_v52 = vmax.f32 %v3304_v61, 0.0  ;;  %v1939_v50 = vld [vmem:[%s6241_s4] sm:$0xff]  ;;  %v4982_v25 = vld [vmem:[#allocation34 + $0x8] sm:$0xff]  }
 0xced   :  { %v4689_v13 = vpop.f32.mrf.mxu1  ;;  %v3301_v19 = vadd.f32 %v6120_v31, %v3239_v39  ;;  %v3316_v35 = vmax.f32 %v3300_v38, 0.0  ;;  %p5411_p10 = por %p5410_p9, %p5409_p8 }
 0xcee   :  { %v3274_v15 = vadd.f32 %v4721_v3, %v4689_v13  ;;  %v3325_v44 = vmax.f32 %v3309_v49, 0.0  ;;  %v3307_v40 = vadd.f32 %v6120_v31, %v3263_v18  ;;  %v3321_v22 = vmax.f32 %v3305_v14, 0.0  ;;  %v4979_v49 = vld [vmem:[#allocation34 + $0x20] sm:$0xff]   ;;  %v4980_v18 = vld [vmem:[#allocation34 + $0x18] sm:$0xff]  }
 0xcef   :  { %v3072_v51 = vpop.f32.mrf.mxu1  ;;  %v3319_v13 = vmax.f32 %v3303_v37, 0.0  ;;  %p5412_p11 = pnand %p5411_p10, %p5405_p7 }
 0xcf0   :  { %v3310_v0 = vadd.f32 %v6120_v31, %v3274_v15  ;;  %v3266_v33 = vadd.f32 %v3265_v21, %v3072_v51  ;;  %v3323_v3 = vmax.f32 %v3307_v40, 0.0  ;;  %v3334_v7 = vpack.c.bf16 %v3322_v2, %v3321_v22  ;;  %v3884_v2 = vld [vmem:[%s6216_s26] ss:$0 sm:$0xff] }
 0xcf1   :  { %v4692_v46 = vpop.f32.mrf.mxu1  ;;  %v3317_v51 = vmax.f32 %v3301_v19, 0.0 }
 0xcf2   :  { %v3287_v43 = vadd.f32 %v4724_v34, %v4692_v46  ;;  %v3326_v23 = vmax.f32 %v3310_v0, 0.0  ;;  %v3308_v58 = vadd.f32 %v6120_v31, %v3266_v33  ;;  %v3231_v34 = vadd.f32 %v6094_v24, %v6113_v4  ;;  %v1938_v4 = vld [vmem:[#allocation17] sm:$0xf] }
 0xcf3   :  { %v3085_v45 = vpop.f32.mrf.mxu1  ;;  %v3332_v53 = vpack.c.bf16 %v3318_v8, %v3317_v51 }
 0xcf4   :  { %v3313_v5 = vadd.f32 %v6120_v31, %v3287_v43  ;;  %v3279_v47 = vadd.f32 %v3278_v42, %v3085_v45  ;;  %v3336_v12 = vpack.c.bf16 %v3326_v23, %v3325_v44  ;;  %v3324_v1 = vmax.f32 %v3308_v58, 0.0  ;;  %v4961_v45 = vld [vmem:[#allocation31 + $0x30] sm:$0xff]   ;;  %v4983_v44 = vld [vmem:[#allocation34] sm:$0xff]  }
 0xcf5   :  { %v4693_v62 = vpop.f32.mrf.mxu1  ;;  %v3333_v42 = vpack.c.bf16 %v3320_v52, %v3319_v13  ;;  %v3299_v46 = vadd.f32 %v6120_v31, %v3231_v34 }
 0xcf6   :  { %v3290_v20 = vadd.f32 %v4725_v60, %v4693_v62  ;;  %v3329_v63 = vmax.f32 %v3313_v5, 0.0  ;;  %v3311_v26 = vadd.f32 %v6120_v31, %v3279_v47  ;;  %v3335_v21 = vpack.c.bf16 %v3324_v1, %v3323_v3  ;;  %v4960_v60 = vld [vmem:[#allocation31 + $0x38] sm:$0xff]   ;;  %v4963_v62 = vld [vmem:[#allocation31 + $0x20] sm:$0xff]   ;;  %v4965_v47 = vld [vmem:[#allocation31 + $0x10] sm:$0xff]  }
 0xcf7   :  { %v3088_v6 = vpop.f32.mrf.mxu1  ;;  %v3315_v43 = vmax.f32 %v3299_v46, 0.0  ;;  %v4964_v5 = vld [vmem:[#allocation31 + $0x18] sm:$0xff]  }
 0xcf8   :  { %v3314_v9 = vadd.f32 %v6120_v31, %v3290_v20  ;;  %v3282_v16 = vadd.f32 %v3281_v11, %v3088_v6  ;;  %v3327_v48 = vmax.f32 %v3311_v26, 0.0  ;;  %v4966_v20 = vld [vmem:[#allocation31 + $0x8] sm:$0xff]   ;;  %v433_v11 = vld [vmem:[%s6240_s0] sm:$0xff]  ;;  %v4967_v6 = vld [vmem:[#allocation31] sm:$0xff]  }
 0xcf9   :  { %v3331_v24 = vpack.c.bf16 %v3316_v35, %v3315_v43  ;;  %v1873_v15 = vmul.f32 %v6045_v10, %v433_v11 }
 0xcfa   :  { %v3330_v59 = vmax.f32 %v3314_v9, 0.0  ;;  %v3312_v17 = vadd.f32 %v6120_v31, %v3282_v16  ;;  %v4962_v31 = vld [vmem:[#allocation31 + $0x28] sm:$0xff]   ;;  %v4975_v16 = vld [vmem:[#allocation32] sm:$0xff]  }
 0xcfb   :  { %v3380_v9 = vpack.c.bf16 %v1873_v15, %v1873_v15  ;;  %4761 = vmatpush3.bf16.msra.mxu0 %v4975_v16 }
 0xcfc   :  { %v3338_v27 = vpack.c.bf16 %v3330_v59, %v3329_v63  ;;  %v3328_v55 = vmax.f32 %v3312_v17, 0.0  ;;  %4786 = vmatprep.subr.bf16.mxu0 %v5471_v30  ;;  %v4976_v17 = vld [vmem:[#allocation34 + $0x38] sm:$0xff]  }
 0xcfe   :  { %4727 = vmatpush3.bf16.msra.mxu1 %v3338_v27  ;;  %v3337_v57 = vpack.c.bf16 %v3328_v55, %v3327_v48  ;;  %v4977_v27 = vld [vmem:[#allocation34 + $0x30] sm:$0xff]   ;;  %v4978_v55 = vld [vmem:[#allocation34 + $0x28] sm:$0xff]  }
 0xcff   :  { %4728 = vmatprep.subr.bf16.mxu1 %v5471_v30  ;;  %v4981_v48 = vld [vmem:[#allocation34 + $0x10] sm:$0xff]  }
 0xd02   :  { %4729 = vmatpush3.bf16.msra.mxu1 %v3337_v57 }
 0xd03   :  { %4730 = vmatprep.subr.bf16.mxu1 %v5471_v30 }
 0xd06   :  { %4731 = vmatpush3.bf16.msra.mxu1 %v3336_v12 }
 0xd07   :  { %4732 = vmatprep.subr.bf16.mxu1 %v5471_v30 }
 0xd0a   :  { %4733 = vmatpush3.bf16.msra.mxu1 %v3335_v21 }
 0xd0b   :  { %4734 = vmatprep.subr.bf16.mxu1 %v5471_v30 }
 0xd0e   :  { %4735 = vmatpush3.bf16.msra.mxu1 %v3334_v7 }
 0xd0f   :  { %4736 = vmatprep.subr.bf16.mxu1 %v5471_v30 }
 0xd12   :  { %4737 = vmatpush3.bf16.msra.mxu1 %v3333_v42 }
 0xd13   :  { %4738 = vmatprep.subr.bf16.mxu1 %v5471_v30 }
 0xd16   :  { %4739 = vmatpush3.bf16.msra.mxu1 %v3332_v53 }
 0xd17   :  { %4740 = vmatprep.subr.bf16.mxu1 %v5471_v30 }
 0xd1a   :  { %4741 = vmatpush3.bf16.msra.mxu1 %v3331_v24 }
 0xd1b   :  { %4766 = vmatprep.subr.bf16.mxu1 %v5471_v30 }
 0xd1d   :  { %4743 = vmatmul.mubr.bf16.vlgmr.msra.gmra.mxu1 %v1938_v4 }
 0xd1e   :  { %4767 = vmatpush3.bf16.msra.mxu1 %v4960_v60  ;;  %4782 = vmatprep.mubr.msk.bf16.mxu1 %vm5472_vm0, %v5471_v30 }
 0xd1f   :  { %4768 = vmatprep.subr.bf16.mxu1 %v5471_v30 }
 0xd22   :  { %4769 = vmatpush3.bf16.msra.mxu1 %v4961_v45 }
 0xd23   :  { %4770 = vmatprep.subr.bf16.mxu1 %v5471_v30 }
 0xd26   :  { %4771 = vmatpush3.bf16.msra.mxu1 %v4962_v31 }
 0xd27   :  { %4772 = vmatprep.subr.bf16.mxu1 %v5471_v30 }
 0xd2a   :  { %4773 = vmatpush3.bf16.msra.mxu1 %v4963_v62 }
 0xd2b   :  { %4774 = vmatprep.subr.bf16.mxu1 %v5471_v30 }
 0xd2e   :  { %4775 = vmatpush3.bf16.msra.mxu1 %v4964_v5 }
 0xd2f   :  { %4776 = vmatprep.subr.bf16.mxu1 %v5471_v30 }
 0xd32   :  { %4777 = vmatpush3.bf16.msra.mxu1 %v4965_v47 }
 0xd33   :  { %4778 = vmatprep.subr.bf16.mxu1 %v5471_v30 }
 0xd36   :  { %4779 = vmatpush3.bf16.msra.mxu1 %v4966_v20 }
 0xd37   :  { %4780 = vmatprep.subr.bf16.mxu1 %v5471_v30 }
 0xd3a   :  { %4781 = vmatpush3.bf16.msra.mxu1 %v4967_v6 }
 0xd3d   :  { %4783 = vmatmul.mubr.bf16.vlgmr.msra.gmra.mxu1 %v3380_v9 }
 0xddd   :  { %v3373_v63 = vpop.f32.mrf.mxu1 }
 0xdde   :  { %v3379_v26 = vmul.f32 %v3373_v63, %v1939_v50 }
 0xddf   :  { %v4744_v59 = vpop.f32.mrf.mxu1 }
 0xde0   :  { %v3397_v0 = vpack.c.bf16 %v3379_v26, %v3379_v26 }
 0xde1   :  { %v3376_v33 = vpop.f32.mrf.mxu1 }
 0xde2   :  { %4763 = vmatmul.mubr.bf16.vlgmr.msra.gmra.mxu0 %v3397_v0 }
 0xde3   :  { %v4745_v10 = vpop.f32.mrf.mxu1  ;;  %4787 = vmatpush3.bf16.msra.mxu0 %v4976_v17  ;;  %4802 = vmatprep.mubr.msk.bf16.mxu0 %vm5472_vm0, %v5471_v30 }
 0xde4   :  { %4788 = vmatprep.subr.bf16.mxu0 %v5471_v30 }
 0xde7   :  { %4789 = vmatpush3.bf16.msra.mxu0 %v4977_v27 }
 0xde8   :  { %4790 = vmatprep.subr.bf16.mxu0 %v5471_v30 }
 0xdeb   :  { %4791 = vmatpush3.bf16.msra.mxu0 %v4978_v55 }
 0xdec   :  { %4792 = vmatprep.subr.bf16.mxu0 %v5471_v30 }
 0xdef   :  { %4793 = vmatpush3.bf16.msra.mxu0 %v4979_v49 }
 0xdf0   :  { %4794 = vmatprep.subr.bf16.mxu0 %v5471_v30 }
 0xdf3   :  { %4795 = vmatpush3.bf16.msra.mxu0 %v4980_v18 }
 0xdf4   :  { %4796 = vmatprep.subr.bf16.mxu0 %v5471_v30 }
 0xdf7   :  { %4797 = vmatpush3.bf16.msra.mxu0 %v4981_v48 }
 0xdf8   :  { %4798 = vmatprep.subr.bf16.mxu0 %v5471_v30 }
 0xdfb   :  { %4799 = vmatpush3.bf16.msra.mxu0 %v4982_v25 }
 0xdfc   :  { %4800 = vmatprep.subr.bf16.mxu0 %v5471_v30 }
 0xdfd   :  { %v3584_v36 = vpop.f32.mrf.mxu1 }
 0xdff   :  { %v4784_v23 = vpop.f32.mrf.mxu1  ;;  %4801 = vmatpush3.bf16.msra.mxu0 %v4983_v44 }
 0xe01   :  { %v3587_v58 = vpop.f32.mrf.mxu1 }
 0xe03   :  { %v4785_v57 = vpop.f32.mrf.mxu1 }
 0xea2   :  { %v3496_v40 = vpop.f32.mrf.mxu0 }
 0xea3   :  { %v3585_v41 = vadd.f32 %v3584_v36, %v3496_v40 }
 0xea4   :  { %v4764_v12 = vpop.f32.mrf.mxu0 }
 0xea5   :  { %v3597_v1 = vadd.f32 %v3883_v29, %v3585_v41 }
 0xea6   :  { %v3499_v14 = vpop.f32.mrf.mxu0 }
 0xea7   :  { %v3598_v54 = vmax.f32 %v3597_v1, 0.0 }
 0xea8   :  { %v4765_v3 = vpop.f32.mrf.mxu0 }
 0xea9   :  { %v3599_v28 = vpack.c.bf16 %v3598_v54, %v3598_v54 }
 0xeab   :  { %4803 = vmatmul.mubr.bf16.vlgmr.msra.gmra.mxu0 %v3599_v28 }
 0xf6b   :  { %v3705_v30 = vpop.f32.mrf.mxu0 }
 0xf6c   :  { %v3706_v61 = vadd.f32 %v3884_v2, %v3705_v30 }
 0xf6d   :  { %v4804_v21 = vpop.f32.mrf.mxu0 }
 0xf6e   :  { %3711 = vst [vmem:[#allocation35] sm:$0xff] %v3706_v61 }
 0xf6f   :  { %v3708_v39 = vpop.f32.mrf.mxu0 }
 0xf70   :  { %5415 = shalt.err (!%p5412_p11)
}
 0xf71   :  { %3721 = dma.vmem_to_hbm [thread:$0]  %s3719_s9, 128, %s6217_s27, [#allocation4]   ;;  %v4805_v22 = vpop.f32.mrf.mxu0 }
 0xf72   :  { %5446 = dma.done.wait [#allocation4], 128  }
 0xf73   :  { %5447 = vsyncadd [#allocation4], 4294967168 }
 0xf74   :  { %3725 = vsyncpa [#allocation3], 1 }
 0xf75   :  { %3726 = vsyncpa [#allocation6], 1 }
 0xf76   :  { %3727 = vsyncpa [#allocation9], 1 }
 0xf77   :  { %3728 = vsyncpa [#allocation12], 1 }
 0xf78   :  { %3729 = vsyncpa [#allocation15], 1 }
 0xf79   :  { %3730 = vsyncpa [#allocation18], 1 }
 0xf7a   :  { %3731 = vsyncpa [#allocation21], 1 }
 0xf7b   :  { %3732 = vsyncpa [#allocation24], 1 }
 0xf7c   :  { %3733 = vsyncpa [#allocation27], 1 }
 0xf7d   :  { %3734 = vsyncpa [#allocation30], 1 }
 0xf7e   :  { %3735 = vsyncpa [#allocation33], 1 }
 0xf7f   :  { %3736 = vsyncpa [#allocation4], 1 }

</bundles_post_ra>
